<compile_context>
chip_gen: v6e
topology: v6e:2x2x1
jax: 0.10.0
libtpu: 0.0.40
codegen_flags: <defaults>
</compile_context>

<pallas_src>
import functools

import numpy as np

import jax
import jax.numpy as jnp
from jax.experimental import pallas as pl
from jax.experimental.pallas import tpu as pltpu


# ----------------------------------------------------------------------------
# Init-time constants: per-tap 0/1 routing matrices (numpy, shape-only)
# ----------------------------------------------------------------------------
def _conv_tap_selectors(ih, iw, k, stride, pad, in_dil=1):
    """Per-tap routing matrices S_t (O, I): S_t[o, i] = 1 iff input position i
    feeds output position o through kernel tap t, for a conv applied to an
    input that is (virtually) dilated by `in_dil` and zero-padded by `pad`."""
    dh, dw = (ih - 1) * in_dil + 1, (iw - 1) * in_dil + 1
    oh = (dh + 2 * pad - k) // stride + 1
    ow = (dw + 2 * pad - k) // stride + 1
    taps = []
    for ky in range(k):
        for kx in range(k):
            s = np.zeros((oh * ow, ih * iw), np.float32)
            for oi in range(oh):
                a = oi * stride + ky - pad
                if a < 0 or a >= dh or a % in_dil:
                    continue
                for oj in range(ow):
                    b = oj * stride + kx - pad
                    if b < 0 or b >= dw or b % in_dil:
                        continue
                    s[oi * ow + oj, (a // in_dil) * iw + (b // in_dil)] = 1.0
            taps.append(s)
    return taps, oh, ow


def _build_selectors():
    c = {}
    # MaxPool2d(2, stride=2) on the 10x10 conv1 output
    taps, _, _ = _conv_tap_selectors(10, 10, 2, 2, 0)
    c["sp1"] = np.stack([t.T for t in taps], 0)               # (4, 100, 25)
    # Conv2d(16, 8, 3, stride=2, padding=1) on 5x5
    taps, _, _ = _conv_tap_selectors(5, 5, 3, 2, 1)
    c["s2"] = np.stack([t.T for t in taps], 0)                # (9, 25, 9)
    # MaxPool2d(2, stride=1) on 3x3
    taps, _, _ = _conv_tap_selectors(3, 3, 2, 1, 0)
    c["sp2"] = np.stack([t.T for t in taps], 0)               # (4, 9, 4)
    # ConvTranspose2d(8,16,3,stride=2) == conv k3 s1 pad2 on input dilated by 2
    taps, _, _ = _conv_tap_selectors(2, 2, 3, 1, 2, in_dil=2)
    c["s3"] = np.stack([t.T for t in taps], 0)                # (9, 4, 25)
    # ConvTranspose2d(16,8,5,stride=3,padding=1) == conv k5 s1 pad3, dilation 3
    taps, _, _ = _conv_tap_selectors(5, 5, 5, 1, 3, in_dil=3)
    c["s4"] = np.stack([t.T for t in taps], 0)                # (25, 25, 225)
    # ConvTranspose2d(8,1,2,stride=2,padding=1) == conv k2 s1 pad0, dilation 2.
    # Every output pixel receives exactly ONE (tap, source) contribution, so it
    # collapses to a single gather + per-pixel 8-vector dot.
    taps, _, _ = _conv_tap_selectors(15, 15, 2, 1, 0, in_dil=2)
    c["s5"] = np.sum(taps, axis=0).T.astype(np.float32)       # (225, 784)
    c["tap5"] = np.stack([t.sum(axis=1) for t in taps], 1).astype(np.float32)  # (784, 4)
    return c


# ----------------------------------------------------------------------------
# Parameters (deterministic synthetic init, PyTorch layouts) + one-time prep
# ----------------------------------------------------------------------------
def _uniform(key, shape, fan_in):
    bound = 1.0 / (fan_in ** 0.5)
    return jax.random.uniform(key, shape, jnp.float32, -bound, bound)


def init_params(key):
    ks = jax.random.split(key, 10)
    p = {}
    # encoder
    p["c1_w"] = _uniform(ks[0], (16, 1, 3, 3), 1 * 3 * 3)
    p["c1_b"] = _uniform(ks[1], (16,), 1 * 3 * 3)
    p["c2_w"] = _uniform(ks[2], (8, 16, 3, 3), 16 * 3 * 3)
    p["c2_b"] = _uniform(ks[3], (8,), 16 * 3 * 3)
    # decoder (ConvTranspose2d weight shape: (Cin, Cout, KH, KW))
    p["d1_w"] = _uniform(ks[4], (8, 16, 3, 3), 16 * 3 * 3)
    p["d1_b"] = _uniform(ks[5], (16,), 16 * 3 * 3)
    p["d2_w"] = _uniform(ks[6], (16, 8, 5, 5), 8 * 5 * 5)
    p["d2_b"] = _uniform(ks[7], (8,), 8 * 5 * 5)
    p["d3_w"] = _uniform(ks[8], (8, 1, 2, 2), 1 * 2 * 2)
    p["d3_b"] = _uniform(ks[9], (1,), 1 * 2 * 2)
    return p


def prepare_params(params):
    """One-time transform of PyTorch-layout weights into the kernel layout
    (flip / channel-swap for transposed convs is applied HERE, not per call)."""
    sel = _build_selectors()
    prep = {k: jnp.asarray(v) for k, v in sel.items() if k != "tap5"}

    # conv weights -> per-tap (T, Cout, Cin); conv-transpose weights are first
    # converted to their equivalent-conv form (spatial flip + in/out swap).
    prep["w1"] = params["c1_w"].reshape(16, 9)                               # (Cout, T), Cin=1
    prep["w2"] = jnp.transpose(params["c2_w"], (2, 3, 0, 1)).reshape(9, 8, 16)

    wc3 = jnp.transpose(jnp.flip(params["d1_w"], (2, 3)), (1, 0, 2, 3))      # (16, 8, 3, 3)
    prep["w3"] = jnp.transpose(wc3, (2, 3, 0, 1)).reshape(9, 16, 8)

    wc4 = jnp.transpose(jnp.flip(params["d2_w"], (2, 3)), (1, 0, 2, 3))      # (8, 16, 5, 5)
    prep["w4"] = jnp.transpose(wc4, (2, 3, 0, 1)).reshape(25, 8, 16)

    wc5 = jnp.transpose(jnp.flip(params["d3_w"], (2, 3)), (1, 0, 2, 3))      # (1, 8, 2, 2)
    wtap5 = jnp.transpose(wc5[0], (1, 2, 0)).reshape(4, 8)                    # (T, Cin)
    prep["w5"] = (jnp.asarray(sel["tap5"]) @ wtap5).T                         # (8, 784)

    bias = jnp.zeros((16, 8), jnp.float32)
    bias = bias.at[:16, 0].set(params["c1_b"])
    bias = bias.at[:8, 1].set(params["c2_b"])
    bias = bias.at[:16, 2].set(params["d1_b"])
    bias = bias.at[:8, 3].set(params["d2_b"])
    bias = bias.at[0, 4].set(params["d3_b"][0])
    prep["bias"] = bias
    return prep


_CONST_ORDER = ("w1", "sp1", "w2", "s2", "sp2", "w3", "s3", "w4", "s4",
                "s5", "w5", "bias")


# ----------------------------------------------------------------------------
# The single fused Pallas kernel (one grid step == one image)
# ----------------------------------------------------------------------------
def _fused_kernel(x_ref, w1_ref, sp1_ref, w2_ref, s2_ref, sp2_ref,
                  w3_ref, s3_ref, w4_ref, s4_ref, s5_ref, w5_ref, b_ref,
                  o_ref):
    dot = functools.partial(jnp.dot, preferred_element_type=jnp.float32)
    bias = b_ref[...]                                         # (16, 8) packed biases

    def conv(x, w_ref, s_ref, n_taps, b):
        # Y^T = sum_t (W_t^T @ X^T) @ S_t^T + b ; activations are (C, positions)
        acc = dot(dot(w_ref[0], x), s_ref[0])
        for t in range(1, n_taps):
            acc = acc + dot(dot(w_ref[t], x), s_ref[t])
        return acc + b

    def maxpool(x, s_ref, n_phases):
        acc = dot(x, s_ref[0])
        for t in range(1, n_phases):
            acc = jnp.maximum(acc, dot(x, s_ref[t]))
        return acc

    relu = lambda v: jnp.maximum(v, 0.0)

    # ---- encoder ----
    y = relu(dot(w1_ref[...], x_ref[0]) + bias[:16, 0:1])     # Conv2d(1,16,3,s3,p1) -> (16,100)
    y = maxpool(y, sp1_ref, 4)                                # MaxPool2d(2,2)       -> (16, 25)
    y = relu(conv(y, w2_ref, s2_ref, 9, bias[:8, 1:2]))       # Conv2d(16,8,3,s2,p1) -> (8, 9)
    y = maxpool(y, sp2_ref, 4)                                # MaxPool2d(2,1)       -> (8, 4)

    # ---- decoder ----
    y = relu(conv(y, w3_ref, s3_ref, 9, bias[:16, 2:3]))      # ConvT(8,16,3,s2)     -> (16, 25)
    y = relu(conv(y, w4_ref, s4_ref, 25, bias[:8, 3:4]))      # ConvT(16,8,5,s3,p1)  -> (8, 225)

    # ConvT(8,1,2,s2,p1): one (source pixel, tap) per output -> gather + dot.
    g = dot(y, s5_ref[...])                                   # (8, 784) gathered sources
    v = jnp.sum(g * w5_ref[...], axis=0, keepdims=True) + bias[0:1, 4:5]   # (1, 784)
    o_ref[0] = 1.0 / (1.0 + jnp.exp(-v))                      # sigmoid


def encoder_model_forward(x_nchw, prep):
    """x_nchw: (B, 1, 28, 28) -> (B, 1, 28, 28), PyTorch EncoderModel semantics."""
    B = x_nchw.shape[0]
    x = x_nchw.astype(jnp.float32).reshape(B, 28, 28)
    xp = jnp.pad(x, ((0, 0), (1, 1), (1, 1)))
    # im2col for the first conv (k=3, stride=3, pad=1), done on the raw input;
    # rows are kernel taps, columns are the 100 output positions (lane axis).
    cols = [xp[:, ky:ky + 28:3, kx:kx + 28:3].reshape(B, 100)
            for ky in range(3) for kx in range(3)]
    patches = jnp.stack(cols, axis=1)                         # (B, 9, 100)

    consts = tuple(prep[k] for k in _CONST_ORDER)

    def const_spec(a):
        if a.ndim == 2:
            return pl.BlockSpec(a.shape, lambda b: (0, 0))
        return pl.BlockSpec(a.shape, lambda b: (0, 0, 0))

    out = pl.pallas_call(
        _fused_kernel,
        out_shape=jax.ShapeDtypeStruct((B, 1, 784), jnp.float32),
        grid=(B,),
        in_specs=[pl.BlockSpec((1, 9, 100), lambda b: (b, 0, 0))]
                 + [const_spec(a) for a in consts],
        out_specs=pl.BlockSpec((1, 1, 784), lambda b: (b, 0, 0)),
        compiler_params=pltpu.CompilerParams(
            dimension_semantics=("parallel",)),
    )(patches, *consts)
    return out.reshape(B, 1, 28, 28)


# ----------------------------------------------------------------------------
# Pure-jnp reference (same math as the verified previous version) for checking
# ----------------------------------------------------------------------------
def _ref_conv2d(x, w, b, stride, pad, act):
    B, H, W, C = x.shape
    cout, cin, kh, kw = w.shape
    xp = jnp.pad(x, ((0, 0), (pad, pad), (pad, pad), (0, 0)))
    oh = (H + 2 * pad - kh) // stride + 1
    ow = (W + 2 * pad - kw) // stride + 1
    cols = [xp[:, ky:ky + stride * (oh - 1) + 1:stride,
                  kx:kx + stride * (ow - 1) + 1:stride, :]
            for ky in range(kh) for kx in range(kw)]
    patches = jnp.concatenate(cols, axis=-1).reshape(B * oh * ow, kh * kw * cin)
    wm = jnp.transpose(w, (2, 3, 1, 0)).reshape(kh * kw * cin, cout)
    y = patches @ wm + b
    if act == "relu":
        y = jnp.maximum(y, 0.0)
    elif act == "sigmoid":
        y = jax.nn.sigmoid(y)
    return y.reshape(B, oh, ow, cout)


def _ref_conv_transpose2d(x, w, b, stride, pad, act):
    cin, cout, kh, kw = w.shape
    wc = jnp.transpose(jnp.flip(w, (2, 3)), (1, 0, 2, 3))
    if stride > 1:
        B, H, W, C = x.shape
        xd = jnp.zeros((B, (H - 1) * stride + 1, (W - 1) * stride + 1, C), x.dtype)
        xd = xd.at[:, ::stride, ::stride, :].set(x)
    else:
        xd = x
    return _ref_conv2d(xd, wc, b, 1, kh - 1 - pad, act)


def _ref_maxpool2d(x, k, s):
    B, H, W, C = x.shape
    oh = (H - k) // s + 1
    ow = (W - k) // s + 1
    wins = [x[:, ky:ky + s * (oh - 1) + 1:s, kx:kx + s * (ow - 1) + 1:s, :]
            for ky in range(k) for kx in range(k)]
    y = wins[0]
    for wv in wins[1:]:
        y = jnp.maximum(y, wv)
    return y


def reference_forward(x_nchw, p):
    x = jnp.transpose(x_nchw, (0, 2, 3, 1)).astype(jnp.float32)
    x = _ref_conv2d(x, p["c1_w"], p["c1_b"], 3, 1, "relu")
    x = _ref_maxpool2d(x, 2, 2)
    x = _ref_conv2d(x, p["c2_w"], p["c2_b"], 2, 1, "relu")
    x = _ref_maxpool2d(x, 2, 1)
    x = _ref_conv_transpose2d(x, p["d1_w"], p["d1_b"], 2, 0, "relu")
    x = _ref_conv_transpose2d(x, p["d2_w"], p["d2_b"], 3, 1, "relu")
    x = _ref_conv_transpose2d(x, p["d3_w"], p["d3_b"], 2, 1, "sigmoid")
    return jnp.transpose(x, (0, 3, 1, 2))


if __name__ == "__main__":
    x = jax.random.normal(jax.random.PRNGKey(0), (2, 1, 28, 28), dtype=jnp.float32)
    params = init_params(jax.random.PRNGKey(42))
    prep = prepare_params(params)            # one-time weight/selector prep (hoisted)

    fwd = jax.jit(encoder_model_forward)
    out = jax.block_until_ready(fwd(x, prep))

    assert out.shape == (2, 1, 28, 28), out.shape
    assert out.dtype == jnp.float32
    assert bool(jnp.all((out >= 0.0) & (out <= 1.0)))   # sigmoid range

    ref = reference_forward(x, params)       # pure-jnp reference with same semantics
    err = float(jnp.max(jnp.abs(out - ref)))
    assert err < 5e-2, f"mismatch vs reference: {err}"

    print("KERNEL_OK")
</pallas_src>

<mosaic_0001>
module attributes {stable_mosaic.version = 11 : i64} {
  func.func @_fused_kernel(%arg0: i32, %arg1: memref<1x9x100xf32, #tpu.memory_space<vmem>>, %arg2: memref<16x9xf32, #tpu.memory_space<vmem>>, %arg3: memref<4x100x25xf32, #tpu.memory_space<vmem>>, %arg4: memref<9x8x16xf32, #tpu.memory_space<vmem>>, %arg5: memref<9x25x9xf32, #tpu.memory_space<vmem>>, %arg6: memref<4x9x4xf32, #tpu.memory_space<vmem>>, %arg7: memref<9x16x8xf32, #tpu.memory_space<vmem>>, %arg8: memref<9x4x25xf32, #tpu.memory_space<vmem>>, %arg9: memref<25x8x16xf32, #tpu.memory_space<vmem>>, %arg10: memref<25x25x225xf32, #tpu.memory_space<vmem>>, %arg11: memref<225x784xf32, #tpu.memory_space<vmem>>, %arg12: memref<8x784xf32, #tpu.memory_space<vmem>>, %arg13: memref<16x8xf32, #tpu.memory_space<vmem>>, %arg14: memref<1x1x784xf32, #tpu.memory_space<vmem>>) attributes {dimension_semantics = [#tpu.dimension_semantics<parallel>], iteration_bounds = array<i64: 2>, scalar_prefetch = 0 : i64, scratch_operands = 0 : i64, tpu.core_type = #tpu.core_type<tc>, window_params = [{transform_indices = @transform_0, window_bounds = array<i64: 1, 9, 100>}, {pipeline_mode = #tpu.pipeline_mode<synchronous>, transform_indices = @transform_1, window_bounds = array<i64: 16, 9>}, {pipeline_mode = #tpu.pipeline_mode<synchronous>, transform_indices = @transform_2, window_bounds = array<i64: 4, 100, 25>}, {pipeline_mode = #tpu.pipeline_mode<synchronous>, transform_indices = @transform_3, window_bounds = array<i64: 9, 8, 16>}, {pipeline_mode = #tpu.pipeline_mode<synchronous>, transform_indices = @transform_4, window_bounds = array<i64: 9, 25, 9>}, {pipeline_mode = #tpu.pipeline_mode<synchronous>, transform_indices = @transform_5, window_bounds = array<i64: 4, 9, 4>}, {pipeline_mode = #tpu.pipeline_mode<synchronous>, transform_indices = @transform_6, window_bounds = array<i64: 9, 16, 8>}, {pipeline_mode = #tpu.pipeline_mode<synchronous>, transform_indices = @transform_7, window_bounds = array<i64: 9, 4, 25>}, {pipeline_mode = #tpu.pipeline_mode<synchronous>, transform_indices = @transform_8, window_bounds = array<i64: 25, 8, 16>}, {pipeline_mode = #tpu.pipeline_mode<synchronous>, transform_indices = @transform_9, window_bounds = array<i64: 25, 25, 225>}, {pipeline_mode = #tpu.pipeline_mode<synchronous>, transform_indices = @transform_10, window_bounds = array<i64: 225, 784>}, {pipeline_mode = #tpu.pipeline_mode<synchronous>, transform_indices = @transform_11, window_bounds = array<i64: 8, 784>}, {pipeline_mode = #tpu.pipeline_mode<synchronous>, transform_indices = @transform_12, window_bounds = array<i64: 16, 8>}, {transform_indices = @transform_13, window_bounds = array<i64: 1, 1, 784>}]} {
    %c0 = arith.constant 0 : index
    %c0_0 = arith.constant 0 : index
    %0 = vector.load %arg13[%c0, %c0_0] : memref<16x8xf32, #tpu.memory_space<vmem>>, vector<16x8xf32>
    %c0_1 = arith.constant 0 : index
    %c0_2 = arith.constant 0 : index
    %1 = vector.load %arg2[%c0_1, %c0_2] : memref<16x9xf32, #tpu.memory_space<vmem>>, vector<16x9xf32>
    %c0_3 = arith.constant 0 : index
    %c0_4 = arith.constant 0 : index
    %c0_5 = arith.constant 0 : index
    %2 = vector.load %arg1[%c0_3, %c0_4, %c0_5] : memref<1x9x100xf32, #tpu.memory_space<vmem>>, vector<1x9x100xf32>
    %3 = vector.shape_cast %2 : vector<1x9x100xf32> to vector<9x100xf32>
    %cst = arith.constant dense<0.000000e+00> : vector<16x100xf32>
    %4 = tpu.matmul %1, %3, %cst {dimension_numbers = #tpu.dot_dimension_numbers<[1], [0], [0], [1], [0, 0, 1, 1], [], []>} : vector<16x9xf32>, vector<9x100xf32>, vector<16x100xf32> -> vector<16x100xf32>
    %5 = vector.extract_strided_slice %0 {offsets = [0, 0], sizes = [16, 1], strides = [1, 1]} : vector<16x8xf32> to vector<16x1xf32>
    %6 = vector.broadcast %5 : vector<16x1xf32> to vector<16x100xf32>
    %7 = arith.addf %4, %6 : vector<16x100xf32>
    %cst_6 = arith.constant 0.000000e+00 : f32
    %8 = vector.broadcast %cst_6 : f32 to vector<16x100xf32>
    %9 = arith.maximumf %7, %8 : vector<16x100xf32>
    %c0_7 = arith.constant 0 : index
    %c0_8 = arith.constant 0 : index
    %c0_9 = arith.constant 0 : index
    %10 = vector.load %arg3[%c0_7, %c0_8, %c0_9] : memref<4x100x25xf32, #tpu.memory_space<vmem>>, vector<1x100x25xf32>
    %11 = vector.shape_cast %10 : vector<1x100x25xf32> to vector<100x25xf32>
    %cst_10 = arith.constant dense<0.000000e+00> : vector<16x25xf32>
    %12 = tpu.matmul %9, %11, %cst_10 {dimension_numbers = #tpu.dot_dimension_numbers<[1], [0], [0], [1], [0, 0, 1, 1], [], []>} : vector<16x100xf32>, vector<100x25xf32>, vector<16x25xf32> -> vector<16x25xf32>
    %c1 = arith.constant 1 : index
    %c0_11 = arith.constant 0 : index
    %c0_12 = arith.constant 0 : index
    %13 = vector.load %arg3[%c1, %c0_11, %c0_12] : memref<4x100x25xf32, #tpu.memory_space<vmem>>, vector<1x100x25xf32>
    %14 = vector.shape_cast %13 : vector<1x100x25xf32> to vector<100x25xf32>
    %cst_13 = arith.constant dense<0.000000e+00> : vector<16x25xf32>
    %15 = tpu.matmul %9, %14, %cst_13 {dimension_numbers = #tpu.dot_dimension_numbers<[1], [0], [0], [1], [0, 0, 1, 1], [], []>} : vector<16x100xf32>, vector<100x25xf32>, vector<16x25xf32> -> vector<16x25xf32>
    %16 = arith.maximumf %12, %15 : vector<16x25xf32>
    %c2 = arith.constant 2 : index
    %c0_14 = arith.constant 0 : index
    %c0_15 = arith.constant 0 : index
    %17 = vector.load %arg3[%c2, %c0_14, %c0_15] : memref<4x100x25xf32, #tpu.memory_space<vmem>>, vector<1x100x25xf32>
    %18 = vector.shape_cast %17 : vector<1x100x25xf32> to vector<100x25xf32>
    %cst_16 = arith.constant dense<0.000000e+00> : vector<16x25xf32>
    %19 = tpu.matmul %9, %18, %cst_16 {dimension_numbers = #tpu.dot_dimension_numbers<[1], [0], [0], [1], [0, 0, 1, 1], [], []>} : vector<16x100xf32>, vector<100x25xf32>, vector<16x25xf32> -> vector<16x25xf32>
    %20 = arith.maximumf %16, %19 : vector<16x25xf32>
    %c3 = arith.constant 3 : index
    %c0_17 = arith.constant 0 : index
    %c0_18 = arith.constant 0 : index
    %21 = vector.load %arg3[%c3, %c0_17, %c0_18] : memref<4x100x25xf32, #tpu.memory_space<vmem>>, vector<1x100x25xf32>
    %22 = vector.shape_cast %21 : vector<1x100x25xf32> to vector<100x25xf32>
    %cst_19 = arith.constant dense<0.000000e+00> : vector<16x25xf32>
    %23 = tpu.matmul %9, %22, %cst_19 {dimension_numbers = #tpu.dot_dimension_numbers<[1], [0], [0], [1], [0, 0, 1, 1], [], []>} : vector<16x100xf32>, vector<100x25xf32>, vector<16x25xf32> -> vector<16x25xf32>
    %24 = arith.maximumf %20, %23 : vector<16x25xf32>
    %25 = vector.extract_strided_slice %0 {offsets = [0, 1], sizes = [8, 1], strides = [1, 1]} : vector<16x8xf32> to vector<8x1xf32>
    %c0_20 = arith.constant 0 : index
    %c0_21 = arith.constant 0 : index
    %c0_22 = arith.constant 0 : index
    %26 = vector.load %arg4[%c0_20, %c0_21, %c0_22] : memref<9x8x16xf32, #tpu.memory_space<vmem>>, vector<1x8x16xf32>
    %27 = vector.shape_cast %26 : vector<1x8x16xf32> to vector<8x16xf32>
    %cst_23 = arith.constant dense<0.000000e+00> : vector<8x25xf32>
    %28 = tpu.matmul %27, %24, %cst_23 {dimension_numbers = #tpu.dot_dimension_numbers<[1], [0], [0], [1], [0, 0, 1, 1], [], []>} : vector<8x16xf32>, vector<16x25xf32>, vector<8x25xf32> -> vector<8x25xf32>
    %c0_24 = arith.constant 0 : index
    %c0_25 = arith.constant 0 : index
    %c0_26 = arith.constant 0 : index
    %29 = vector.load %arg5[%c0_24, %c0_25, %c0_26] : memref<9x25x9xf32, #tpu.memory_space<vmem>>, vector<1x25x9xf32>
    %30 = vector.shape_cast %29 : vector<1x25x9xf32> to vector<25x9xf32>
    %cst_27 = arith.constant dense<0.000000e+00> : vector<8x9xf32>
    %31 = tpu.matmul %28, %30, %cst_27 {dimension_numbers = #tpu.dot_dimension_numbers<[1], [0], [0], [1], [0, 0, 1, 1], [], []>} : vector<8x25xf32>, vector<25x9xf32>, vector<8x9xf32> -> vector<8x9xf32>
    %c1_28 = arith.constant 1 : index
    %c0_29 = arith.constant 0 : index
    %c0_30 = arith.constant 0 : index
    %32 = vector.load %arg4[%c1_28, %c0_29, %c0_30] : memref<9x8x16xf32, #tpu.memory_space<vmem>>, vector<1x8x16xf32>
    %33 = vector.shape_cast %32 : vector<1x8x16xf32> to vector<8x16xf32>
    %cst_31 = arith.constant dense<0.000000e+00> : vector<8x25xf32>
    %34 = tpu.matmul %33, %24, %cst_31 {dimension_numbers = #tpu.dot_dimension_numbers<[1], [0], [0], [1], [0, 0, 1, 1], [], []>} : vector<8x16xf32>, vector<16x25xf32>, vector<8x25xf32> -> vector<8x25xf32>
    %c1_32 = arith.constant 1 : index
    %c0_33 = arith.constant 0 : index
    %c0_34 = arith.constant 0 : index
    %35 = vector.load %arg5[%c1_32, %c0_33, %c0_34] : memref<9x25x9xf32, #tpu.memory_space<vmem>>, vector<1x25x9xf32>
    %36 = vector.shape_cast %35 : vector<1x25x9xf32> to vector<25x9xf32>
    %cst_35 = arith.constant dense<0.000000e+00> : vector<8x9xf32>
    %37 = tpu.matmul %34, %36, %cst_35 {dimension_numbers = #tpu.dot_dimension_numbers<[1], [0], [0], [1], [0, 0, 1, 1], [], []>} : vector<8x25xf32>, vector<25x9xf32>, vector<8x9xf32> -> vector<8x9xf32>
    %38 = arith.addf %31, %37 : vector<8x9xf32>
    %c2_36 = arith.constant 2 : index
    %c0_37 = arith.constant 0 : index
    %c0_38 = arith.constant 0 : index
    %39 = vector.load %arg4[%c2_36, %c0_37, %c0_38] : memref<9x8x16xf32, #tpu.memory_space<vmem>>, vector<1x8x16xf32>
    %40 = vector.shape_cast %39 : vector<1x8x16xf32> to vector<8x16xf32>
    %cst_39 = arith.constant dense<0.000000e+00> : vector<8x25xf32>
    %41 = tpu.matmul %40, %24, %cst_39 {dimension_numbers = #tpu.dot_dimension_numbers<[1], [0], [0], [1], [0, 0, 1, 1], [], []>} : vector<8x16xf32>, vector<16x25xf32>, vector<8x25xf32> -> vector<8x25xf32>
    %c2_40 = arith.constant 2 : index
    %c0_41 = arith.constant 0 : index
    %c0_42 = arith.constant 0 : index
    %42 = vector.load %arg5[%c2_40, %c0_41, %c0_42] : memref<9x25x9xf32, #tpu.memory_space<vmem>>, vector<1x25x9xf32>
    %43 = vector.shape_cast %42 : vector<1x25x9xf32> to vector<25x9xf32>
    %cst_43 = arith.constant dense<0.000000e+00> : vector<8x9xf32>
    %44 = tpu.matmul %41, %43, %cst_43 {dimension_numbers = #tpu.dot_dimension_numbers<[1], [0], [0], [1], [0, 0, 1, 1], [], []>} : vector<8x25xf32>, vector<25x9xf32>, vector<8x9xf32> -> vector<8x9xf32>
    %45 = arith.addf %38, %44 : vector<8x9xf32>
    %c3_44 = arith.constant 3 : index
    %c0_45 = arith.constant 0 : index
    %c0_46 = arith.constant 0 : index
    %46 = vector.load %arg4[%c3_44, %c0_45, %c0_46] : memref<9x8x16xf32, #tpu.memory_space<vmem>>, vector<1x8x16xf32>
    %47 = vector.shape_cast %46 : vector<1x8x16xf32> to vector<8x16xf32>
    %cst_47 = arith.constant dense<0.000000e+00> : vector<8x25xf32>
    %48 = tpu.matmul %47, %24, %cst_47 {dimension_numbers = #tpu.dot_dimension_numbers<[1], [0], [0], [1], [0, 0, 1, 1], [], []>} : vector<8x16xf32>, vector<16x25xf32>, vector<8x25xf32> -> vector<8x25xf32>
    %c3_48 = arith.constant 3 : index
    %c0_49 = arith.constant 0 : index
    %c0_50 = arith.constant 0 : index
    %49 = vector.load %arg5[%c3_48, %c0_49, %c0_50] : memref<9x25x9xf32, #tpu.memory_space<vmem>>, vector<1x25x9xf32>
    %50 = vector.shape_cast %49 : vector<1x25x9xf32> to vector<25x9xf32>
    %cst_51 = arith.constant dense<0.000000e+00> : vector<8x9xf32>
    %51 = tpu.matmul %48, %50, %cst_51 {dimension_numbers = #tpu.dot_dimension_numbers<[1], [0], [0], [1], [0, 0, 1, 1], [], []>} : vector<8x25xf32>, vector<25x9xf32>, vector<8x9xf32> -> vector<8x9xf32>
    %52 = arith.addf %45, %51 : vector<8x9xf32>
    %c4 = arith.constant 4 : index
    %c0_52 = arith.constant 0 : index
    %c0_53 = arith.constant 0 : index
    %53 = vector.load %arg4[%c4, %c0_52, %c0_53] : memref<9x8x16xf32, #tpu.memory_space<vmem>>, vector<1x8x16xf32>
    %54 = vector.shape_cast %53 : vector<1x8x16xf32> to vector<8x16xf32>
    %cst_54 = arith.constant dense<0.000000e+00> : vector<8x25xf32>
    %55 = tpu.matmul %54, %24, %cst_54 {dimension_numbers = #tpu.dot_dimension_numbers<[1], [0], [0], [1], [0, 0, 1, 1], [], []>} : vector<8x16xf32>, vector<16x25xf32>, vector<8x25xf32> -> vector<8x25xf32>
    %c4_55 = arith.constant 4 : index
    %c0_56 = arith.constant 0 : index
    %c0_57 = arith.constant 0 : index
    %56 = vector.load %arg5[%c4_55, %c0_56, %c0_57] : memref<9x25x9xf32, #tpu.memory_space<vmem>>, vector<1x25x9xf32>
    %57 = vector.shape_cast %56 : vector<1x25x9xf32> to vector<25x9xf32>
    %cst_58 = arith.constant dense<0.000000e+00> : vector<8x9xf32>
    %58 = tpu.matmul %55, %57, %cst_58 {dimension_numbers = #tpu.dot_dimension_numbers<[1], [0], [0], [1], [0, 0, 1, 1], [], []>} : vector<8x25xf32>, vector<25x9xf32>, vector<8x9xf32> -> vector<8x9xf32>
    %59 = arith.addf %52, %58 : vector<8x9xf32>
    %c5 = arith.constant 5 : index
    %c0_59 = arith.constant 0 : index
    %c0_60 = arith.constant 0 : index
    %60 = vector.load %arg4[%c5, %c0_59, %c0_60] : memref<9x8x16xf32, #tpu.memory_space<vmem>>, vector<1x8x16xf32>
    %61 = vector.shape_cast %60 : vector<1x8x16xf32> to vector<8x16xf32>
    %cst_61 = arith.constant dense<0.000000e+00> : vector<8x25xf32>
    %62 = tpu.matmul %61, %24, %cst_61 {dimension_numbers = #tpu.dot_dimension_numbers<[1], [0], [0], [1], [0, 0, 1, 1], [], []>} : vector<8x16xf32>, vector<16x25xf32>, vector<8x25xf32> -> vector<8x25xf32>
    %c5_62 = arith.constant 5 : index
    %c0_63 = arith.constant 0 : index
    %c0_64 = arith.constant 0 : index
    %63 = vector.load %arg5[%c5_62, %c0_63, %c0_64] : memref<9x25x9xf32, #tpu.memory_space<vmem>>, vector<1x25x9xf32>
    %64 = vector.shape_cast %63 : vector<1x25x9xf32> to vector<25x9xf32>
    %cst_65 = arith.constant dense<0.000000e+00> : vector<8x9xf32>
    %65 = tpu.matmul %62, %64, %cst_65 {dimension_numbers = #tpu.dot_dimension_numbers<[1], [0], [0], [1], [0, 0, 1, 1], [], []>} : vector<8x25xf32>, vector<25x9xf32>, vector<8x9xf32> -> vector<8x9xf32>
    %66 = arith.addf %59, %65 : vector<8x9xf32>
    %c6 = arith.constant 6 : index
    %c0_66 = arith.constant 0 : index
    %c0_67 = arith.constant 0 : index
    %67 = vector.load %arg4[%c6, %c0_66, %c0_67] : memref<9x8x16xf32, #tpu.memory_space<vmem>>, vector<1x8x16xf32>
    %68 = vector.shape_cast %67 : vector<1x8x16xf32> to vector<8x16xf32>
    %cst_68 = arith.constant dense<0.000000e+00> : vector<8x25xf32>
    %69 = tpu.matmul %68, %24, %cst_68 {dimension_numbers = #tpu.dot_dimension_numbers<[1], [0], [0], [1], [0, 0, 1, 1], [], []>} : vector<8x16xf32>, vector<16x25xf32>, vector<8x25xf32> -> vector<8x25xf32>
    %c6_69 = arith.constant 6 : index
    %c0_70 = arith.constant 0 : index
    %c0_71 = arith.constant 0 : index
    %70 = vector.load %arg5[%c6_69, %c0_70, %c0_71] : memref<9x25x9xf32, #tpu.memory_space<vmem>>, vector<1x25x9xf32>
    %71 = vector.shape_cast %70 : vector<1x25x9xf32> to vector<25x9xf32>
    %cst_72 = arith.constant dense<0.000000e+00> : vector<8x9xf32>
    %72 = tpu.matmul %69, %71, %cst_72 {dimension_numbers = #tpu.dot_dimension_numbers<[1], [0], [0], [1], [0, 0, 1, 1], [], []>} : vector<8x25xf32>, vector<25x9xf32>, vector<8x9xf32> -> vector<8x9xf32>
    %73 = arith.addf %66, %72 : vector<8x9xf32>
    %c7 = arith.constant 7 : index
    %c0_73 = arith.constant 0 : index
    %c0_74 = arith.constant 0 : index
    %74 = vector.load %arg4[%c7, %c0_73, %c0_74] : memref<9x8x16xf32, #tpu.memory_space<vmem>>, vector<1x8x16xf32>
    %75 = vector.shape_cast %74 : vector<1x8x16xf32> to vector<8x16xf32>
    %cst_75 = arith.constant dense<0.000000e+00> : vector<8x25xf32>
    %76 = tpu.matmul %75, %24, %cst_75 {dimension_numbers = #tpu.dot_dimension_numbers<[1], [0], [0], [1], [0, 0, 1, 1], [], []>} : vector<8x16xf32>, vector<16x25xf32>, vector<8x25xf32> -> vector<8x25xf32>
    %c7_76 = arith.constant 7 : index
    %c0_77 = arith.constant 0 : index
    %c0_78 = arith.constant 0 : index
    %77 = vector.load %arg5[%c7_76, %c0_77, %c0_78] : memref<9x25x9xf32, #tpu.memory_space<vmem>>, vector<1x25x9xf32>
    %78 = vector.shape_cast %77 : vector<1x25x9xf32> to vector<25x9xf32>
    %cst_79 = arith.constant dense<0.000000e+00> : vector<8x9xf32>
    %79 = tpu.matmul %76, %78, %cst_79 {dimension_numbers = #tpu.dot_dimension_numbers<[1], [0], [0], [1], [0, 0, 1, 1], [], []>} : vector<8x25xf32>, vector<25x9xf32>, vector<8x9xf32> -> vector<8x9xf32>
    %80 = arith.addf %73, %79 : vector<8x9xf32>
    %c8 = arith.constant 8 : index
    %c0_80 = arith.constant 0 : index
    %c0_81 = arith.constant 0 : index
    %81 = vector.load %arg4[%c8, %c0_80, %c0_81] : memref<9x8x16xf32, #tpu.memory_space<vmem>>, vector<1x8x16xf32>
    %82 = vector.shape_cast %81 : vector<1x8x16xf32> to vector<8x16xf32>
    %cst_82 = arith.constant dense<0.000000e+00> : vector<8x25xf32>
    %83 = tpu.matmul %82, %24, %cst_82 {dimension_numbers = #tpu.dot_dimension_numbers<[1], [0], [0], [1], [0, 0, 1, 1], [], []>} : vector<8x16xf32>, vector<16x25xf32>, vector<8x25xf32> -> vector<8x25xf32>
    %c8_83 = arith.constant 8 : index
    %c0_84 = arith.constant 0 : index
    %c0_85 = arith.constant 0 : index
    %84 = vector.load %arg5[%c8_83, %c0_84, %c0_85] : memref<9x25x9xf32, #tpu.memory_space<vmem>>, vector<1x25x9xf32>
    %85 = vector.shape_cast %84 : vector<1x25x9xf32> to vector<25x9xf32>
    %cst_86 = arith.constant dense<0.000000e+00> : vector<8x9xf32>
    %86 = tpu.matmul %83, %85, %cst_86 {dimension_numbers = #tpu.dot_dimension_numbers<[1], [0], [0], [1], [0, 0, 1, 1], [], []>} : vector<8x25xf32>, vector<25x9xf32>, vector<8x9xf32> -> vector<8x9xf32>
    %87 = arith.addf %80, %86 : vector<8x9xf32>
    %88 = vector.broadcast %25 : vector<8x1xf32> to vector<8x9xf32>
    %89 = arith.addf %87, %88 : vector<8x9xf32>
    %cst_87 = arith.constant 0.000000e+00 : f32
    %90 = vector.broadcast %cst_87 : f32 to vector<8x9xf32>
    %91 = arith.maximumf %89, %90 : vector<8x9xf32>
    %c0_88 = arith.constant 0 : index
    %c0_89 = arith.constant 0 : index
    %c0_90 = arith.constant 0 : index
    %92 = vector.load %arg6[%c0_88, %c0_89, %c0_90] : memref<4x9x4xf32, #tpu.memory_space<vmem>>, vector<1x9x4xf32>
    %93 = vector.shape_cast %92 : vector<1x9x4xf32> to vector<9x4xf32>
    %cst_91 = arith.constant dense<0.000000e+00> : vector<8x4xf32>
    %94 = tpu.matmul %91, %93, %cst_91 {dimension_numbers = #tpu.dot_dimension_numbers<[1], [0], [0], [1], [0, 0, 1, 1], [], []>} : vector<8x9xf32>, vector<9x4xf32>, vector<8x4xf32> -> vector<8x4xf32>
    %c1_92 = arith.constant 1 : index
    %c0_93 = arith.constant 0 : index
    %c0_94 = arith.constant 0 : index
    %95 = vector.load %arg6[%c1_92, %c0_93, %c0_94] : memref<4x9x4xf32, #tpu.memory_space<vmem>>, vector<1x9x4xf32>
    %96 = vector.shape_cast %95 : vector<1x9x4xf32> to vector<9x4xf32>
    %cst_95 = arith.constant dense<0.000000e+00> : vector<8x4xf32>
    %97 = tpu.matmul %91, %96, %cst_95 {dimension_numbers = #tpu.dot_dimension_numbers<[1], [0], [0], [1], [0, 0, 1, 1], [], []>} : vector<8x9xf32>, vector<9x4xf32>, vector<8x4xf32> -> vector<8x4xf32>
    %98 = arith.maximumf %94, %97 : vector<8x4xf32>
    %c2_96 = arith.constant 2 : index
    %c0_97 = arith.constant 0 : index
    %c0_98 = arith.constant 0 : index
    %99 = vector.load %arg6[%c2_96, %c0_97, %c0_98] : memref<4x9x4xf32, #tpu.memory_space<vmem>>, vector<1x9x4xf32>
    %100 = vector.shape_cast %99 : vector<1x9x4xf32> to vector<9x4xf32>
    %cst_99 = arith.constant dense<0.000000e+00> : vector<8x4xf32>
    %101 = tpu.matmul %91, %100, %cst_99 {dimension_numbers = #tpu.dot_dimension_numbers<[1], [0], [0], [1], [0, 0, 1, 1], [], []>} : vector<8x9xf32>, vector<9x4xf32>, vector<8x4xf32> -> vector<8x4xf32>
    %102 = arith.maximumf %98, %101 : vector<8x4xf32>
    %c3_100 = arith.constant 3 : index
    %c0_101 = arith.constant 0 : index
    %c0_102 = arith.constant 0 : index
    %103 = vector.load %arg6[%c3_100, %c0_101, %c0_102] : memref<4x9x4xf32, #tpu.memory_space<vmem>>, vector<1x9x4xf32>
    %104 = vector.shape_cast %103 : vector<1x9x4xf32> to vector<9x4xf32>
    %cst_103 = arith.constant dense<0.000000e+00> : vector<8x4xf32>
    %105 = tpu.matmul %91, %104, %cst_103 {dimension_numbers = #tpu.dot_dimension_numbers<[1], [0], [0], [1], [0, 0, 1, 1], [], []>} : vector<8x9xf32>, vector<9x4xf32>, vector<8x4xf32> -> vector<8x4xf32>
    %106 = arith.maximumf %102, %105 : vector<8x4xf32>
    %107 = vector.extract_strided_slice %0 {offsets = [0, 2], sizes = [16, 1], strides = [1, 1]} : vector<16x8xf32> to vector<16x1xf32>
    %c0_104 = arith.constant 0 : index
    %c0_105 = arith.constant 0 : index
    %c0_106 = arith.constant 0 : index
    %108 = vector.load %arg7[%c0_104, %c0_105, %c0_106] : memref<9x16x8xf32, #tpu.memory_space<vmem>>, vector<1x16x8xf32>
    %109 = vector.shape_cast %108 : vector<1x16x8xf32> to vector<16x8xf32>
    %cst_107 = arith.constant dense<0.000000e+00> : vector<16x4xf32>
    %110 = tpu.matmul %109, %106, %cst_107 {dimension_numbers = #tpu.dot_dimension_numbers<[1], [0], [0], [1], [0, 0, 1, 1], [], []>} : vector<16x8xf32>, vector<8x4xf32>, vector<16x4xf32> -> vector<16x4xf32>
    %c0_108 = arith.constant 0 : index
    %c0_109 = arith.constant 0 : index
    %c0_110 = arith.constant 0 : index
    %111 = vector.load %arg8[%c0_108, %c0_109, %c0_110] : memref<9x4x25xf32, #tpu.memory_space<vmem>>, vector<1x4x25xf32>
    %112 = vector.shape_cast %111 : vector<1x4x25xf32> to vector<4x25xf32>
    %cst_111 = arith.constant dense<0.000000e+00> : vector<16x25xf32>
    %113 = tpu.matmul %110, %112, %cst_111 {dimension_numbers = #tpu.dot_dimension_numbers<[1], [0], [0], [1], [0, 0, 1, 1], [], []>} : vector<16x4xf32>, vector<4x25xf32>, vector<16x25xf32> -> vector<16x25xf32>
    %c1_112 = arith.constant 1 : index
    %c0_113 = arith.constant 0 : index
    %c0_114 = arith.constant 0 : index
    %114 = vector.load %arg7[%c1_112, %c0_113, %c0_114] : memref<9x16x8xf32, #tpu.memory_space<vmem>>, vector<1x16x8xf32>
    %115 = vector.shape_cast %114 : vector<1x16x8xf32> to vector<16x8xf32>
    %cst_115 = arith.constant dense<0.000000e+00> : vector<16x4xf32>
    %116 = tpu.matmul %115, %106, %cst_115 {dimension_numbers = #tpu.dot_dimension_numbers<[1], [0], [0], [1], [0, 0, 1, 1], [], []>} : vector<16x8xf32>, vector<8x4xf32>, vector<16x4xf32> -> vector<16x4xf32>
    %c1_116 = arith.constant 1 : index
    %c0_117 = arith.constant 0 : index
    %c0_118 = arith.constant 0 : index
    %117 = vector.load %arg8[%c1_116, %c0_117, %c0_118] : memref<9x4x25xf32, #tpu.memory_space<vmem>>, vector<1x4x25xf32>
    %118 = vector.shape_cast %117 : vector<1x4x25xf32> to vector<4x25xf32>
    %cst_119 = arith.constant dense<0.000000e+00> : vector<16x25xf32>
    %119 = tpu.matmul %116, %118, %cst_119 {dimension_numbers = #tpu.dot_dimension_numbers<[1], [0], [0], [1], [0, 0, 1, 1], [], []>} : vector<16x4xf32>, vector<4x25xf32>, vector<16x25xf32> -> vector<16x25xf32>
    %120 = arith.addf %113, %119 : vector<16x25xf32>
    %c2_120 = arith.constant 2 : index
    %c0_121 = arith.constant 0 : index
    %c0_122 = arith.constant 0 : index
    %121 = vector.load %arg7[%c2_120, %c0_121, %c0_122] : memref<9x16x8xf32, #tpu.memory_space<vmem>>, vector<1x16x8xf32>
    %122 = vector.shape_cast %121 : vector<1x16x8xf32> to vector<16x8xf32>
    %cst_123 = arith.constant dense<0.000000e+00> : vector<16x4xf32>
    %123 = tpu.matmul %122, %106, %cst_123 {dimension_numbers = #tpu.dot_dimension_numbers<[1], [0], [0], [1], [0, 0, 1, 1], [], []>} : vector<16x8xf32>, vector<8x4xf32>, vector<16x4xf32> -> vector<16x4xf32>
    %c2_124 = arith.constant 2 : index
    %c0_125 = arith.constant 0 : index
    %c0_126 = arith.constant 0 : index
    %124 = vector.load %arg8[%c2_124, %c0_125, %c0_126] : memref<9x4x25xf32, #tpu.memory_space<vmem>>, vector<1x4x25xf32>
    %125 = vector.shape_cast %124 : vector<1x4x25xf32> to vector<4x25xf32>
    %cst_127 = arith.constant dense<0.000000e+00> : vector<16x25xf32>
    %126 = tpu.matmul %123, %125, %cst_127 {dimension_numbers = #tpu.dot_dimension_numbers<[1], [0], [0], [1], [0, 0, 1, 1], [], []>} : vector<16x4xf32>, vector<4x25xf32>, vector<16x25xf32> -> vector<16x25xf32>
    %127 = arith.addf %120, %126 : vector<16x25xf32>
    %c3_128 = arith.constant 3 : index
    %c0_129 = arith.constant 0 : index
    %c0_130 = arith.constant 0 : index
    %128 = vector.load %arg7[%c3_128, %c0_129, %c0_130] : memref<9x16x8xf32, #tpu.memory_space<vmem>>, vector<1x16x8xf32>
    %129 = vector.shape_cast %128 : vector<1x16x8xf32> to vector<16x8xf32>
    %cst_131 = arith.constant dense<0.000000e+00> : vector<16x4xf32>
    %130 = tpu.matmul %129, %106, %cst_131 {dimension_numbers = #tpu.dot_dimension_numbers<[1], [0], [0], [1], [0, 0, 1, 1], [], []>} : vector<16x8xf32>, vector<8x4xf32>, vector<16x4xf32> -> vector<16x4xf32>
    %c3_132 = arith.constant 3 : index
    %c0_133 = arith.constant 0 : index
    %c0_134 = arith.constant 0 : index
    %131 = vector.load %arg8[%c3_132, %c0_133, %c0_134] : memref<9x4x25xf32, #tpu.memory_space<vmem>>, vector<1x4x25xf32>
    %132 = vector.shape_cast %131 : vector<1x4x25xf32> to vector<4x25xf32>
    %cst_135 = arith.constant dense<0.000000e+00> : vector<16x25xf32>
    %133 = tpu.matmul %130, %132, %cst_135 {dimension_numbers = #tpu.dot_dimension_numbers<[1], [0], [0], [1], [0, 0, 1, 1], [], []>} : vector<16x4xf32>, vector<4x25xf32>, vector<16x25xf32> -> vector<16x25xf32>
    %134 = arith.addf %127, %133 : vector<16x25xf32>
    %c4_136 = arith.constant 4 : index
    %c0_137 = arith.constant 0 : index
    %c0_138 = arith.constant 0 : index
    %135 = vector.load %arg7[%c4_136, %c0_137, %c0_138] : memref<9x16x8xf32, #tpu.memory_space<vmem>>, vector<1x16x8xf32>
    %136 = vector.shape_cast %135 : vector<1x16x8xf32> to vector<16x8xf32>
    %cst_139 = arith.constant dense<0.000000e+00> : vector<16x4xf32>
    %137 = tpu.matmul %136, %106, %cst_139 {dimension_numbers = #tpu.dot_dimension_numbers<[1], [0], [0], [1], [0, 0, 1, 1], [], []>} : vector<16x8xf32>, vector<8x4xf32>, vector<16x4xf32> -> vector<16x4xf32>
    %c4_140 = arith.constant 4 : index
    %c0_141 = arith.constant 0 : index
    %c0_142 = arith.constant 0 : index
    %138 = vector.load %arg8[%c4_140, %c0_141, %c0_142] : memref<9x4x25xf32, #tpu.memory_space<vmem>>, vector<1x4x25xf32>
    %139 = vector.shape_cast %138 : vector<1x4x25xf32> to vector<4x25xf32>
    %cst_143 = arith.constant dense<0.000000e+00> : vector<16x25xf32>
    %140 = tpu.matmul %137, %139, %cst_143 {dimension_numbers = #tpu.dot_dimension_numbers<[1], [0], [0], [1], [0, 0, 1, 1], [], []>} : vector<16x4xf32>, vector<4x25xf32>, vector<16x25xf32> -> vector<16x25xf32>
    %141 = arith.addf %134, %140 : vector<16x25xf32>
    %c5_144 = arith.constant 5 : index
    %c0_145 = arith.constant 0 : index
    %c0_146 = arith.constant 0 : index
    %142 = vector.load %arg7[%c5_144, %c0_145, %c0_146] : memref<9x16x8xf32, #tpu.memory_space<vmem>>, vector<1x16x8xf32>
    %143 = vector.shape_cast %142 : vector<1x16x8xf32> to vector<16x8xf32>
    %cst_147 = arith.constant dense<0.000000e+00> : vector<16x4xf32>
    %144 = tpu.matmul %143, %106, %cst_147 {dimension_numbers = #tpu.dot_dimension_numbers<[1], [0], [0], [1], [0, 0, 1, 1], [], []>} : vector<16x8xf32>, vector<8x4xf32>, vector<16x4xf32> -> vector<16x4xf32>
    %c5_148 = arith.constant 5 : index
    %c0_149 = arith.constant 0 : index
    %c0_150 = arith.constant 0 : index
    %145 = vector.load %arg8[%c5_148, %c0_149, %c0_150] : memref<9x4x25xf32, #tpu.memory_space<vmem>>, vector<1x4x25xf32>
    %146 = vector.shape_cast %145 : vector<1x4x25xf32> to vector<4x25xf32>
    %cst_151 = arith.constant dense<0.000000e+00> : vector<16x25xf32>
    %147 = tpu.matmul %144, %146, %cst_151 {dimension_numbers = #tpu.dot_dimension_numbers<[1], [0], [0], [1], [0, 0, 1, 1], [], []>} : vector<16x4xf32>, vector<4x25xf32>, vector<16x25xf32> -> vector<16x25xf32>
    %148 = arith.addf %141, %147 : vector<16x25xf32>
    %c6_152 = arith.constant 6 : index
    %c0_153 = arith.constant 0 : index
    %c0_154 = arith.constant 0 : index
    %149 = vector.load %arg7[%c6_152, %c0_153, %c0_154] : memref<9x16x8xf32, #tpu.memory_space<vmem>>, vector<1x16x8xf32>
    %150 = vector.shape_cast %149 : vector<1x16x8xf32> to vector<16x8xf32>
    %cst_155 = arith.constant dense<0.000000e+00> : vector<16x4xf32>
    %151 = tpu.matmul %150, %106, %cst_155 {dimension_numbers = #tpu.dot_dimension_numbers<[1], [0], [0], [1], [0, 0, 1, 1], [], []>} : vector<16x8xf32>, vector<8x4xf32>, vector<16x4xf32> -> vector<16x4xf32>
    %c6_156 = arith.constant 6 : index
    %c0_157 = arith.constant 0 : index
    %c0_158 = arith.constant 0 : index
    %152 = vector.load %arg8[%c6_156, %c0_157, %c0_158] : memref<9x4x25xf32, #tpu.memory_space<vmem>>, vector<1x4x25xf32>
    %153 = vector.shape_cast %152 : vector<1x4x25xf32> to vector<4x25xf32>
    %cst_159 = arith.constant dense<0.000000e+00> : vector<16x25xf32>
    %154 = tpu.matmul %151, %153, %cst_159 {dimension_numbers = #tpu.dot_dimension_numbers<[1], [0], [0], [1], [0, 0, 1, 1], [], []>} : vector<16x4xf32>, vector<4x25xf32>, vector<16x25xf32> -> vector<16x25xf32>
    %155 = arith.addf %148, %154 : vector<16x25xf32>
    %c7_160 = arith.constant 7 : index
    %c0_161 = arith.constant 0 : index
    %c0_162 = arith.constant 0 : index
    %156 = vector.load %arg7[%c7_160, %c0_161, %c0_162] : memref<9x16x8xf32, #tpu.memory_space<vmem>>, vector<1x16x8xf32>
    %157 = vector.shape_cast %156 : vector<1x16x8xf32> to vector<16x8xf32>
    %cst_163 = arith.constant dense<0.000000e+00> : vector<16x4xf32>
    %158 = tpu.matmul %157, %106, %cst_163 {dimension_numbers = #tpu.dot_dimension_numbers<[1], [0], [0], [1], [0, 0, 1, 1], [], []>} : vector<16x8xf32>, vector<8x4xf32>, vector<16x4xf32> -> vector<16x4xf32>
    %c7_164 = arith.constant 7 : index
    %c0_165 = arith.constant 0 : index
    %c0_166 = arith.constant 0 : index
    %159 = vector.load %arg8[%c7_164, %c0_165, %c0_166] : memref<9x4x25xf32, #tpu.memory_space<vmem>>, vector<1x4x25xf32>
    %160 = vector.shape_cast %159 : vector<1x4x25xf32> to vector<4x25xf32>
    %cst_167 = arith.constant dense<0.000000e+00> : vector<16x25xf32>
    %161 = tpu.matmul %158, %160, %cst_167 {dimension_numbers = #tpu.dot_dimension_numbers<[1], [0], [0], [1], [0, 0, 1, 1], [], []>} : vector<16x4xf32>, vector<4x25xf32>, vector<16x25xf32> -> vector<16x25xf32>
    %162 = arith.addf %155, %161 : vector<16x25xf32>
    %c8_168 = arith.constant 8 : index
    %c0_169 = arith.constant 0 : index
    %c0_170 = arith.constant 0 : index
    %163 = vector.load %arg7[%c8_168, %c0_169, %c0_170] : memref<9x16x8xf32, #tpu.memory_space<vmem>>, vector<1x16x8xf32>
    %164 = vector.shape_cast %163 : vector<1x16x8xf32> to vector<16x8xf32>
    %cst_171 = arith.constant dense<0.000000e+00> : vector<16x4xf32>
    %165 = tpu.matmul %164, %106, %cst_171 {dimension_numbers = #tpu.dot_dimension_numbers<[1], [0], [0], [1], [0, 0, 1, 1], [], []>} : vector<16x8xf32>, vector<8x4xf32>, vector<16x4xf32> -> vector<16x4xf32>
    %c8_172 = arith.constant 8 : index
    %c0_173 = arith.constant 0 : index
    %c0_174 = arith.constant 0 : index
    %166 = vector.load %arg8[%c8_172, %c0_173, %c0_174] : memref<9x4x25xf32, #tpu.memory_space<vmem>>, vector<1x4x25xf32>
    %167 = vector.shape_cast %166 : vector<1x4x25xf32> to vector<4x25xf32>
    %cst_175 = arith.constant dense<0.000000e+00> : vector<16x25xf32>
    %168 = tpu.matmul %165, %167, %cst_175 {dimension_numbers = #tpu.dot_dimension_numbers<[1], [0], [0], [1], [0, 0, 1, 1], [], []>} : vector<16x4xf32>, vector<4x25xf32>, vector<16x25xf32> -> vector<16x25xf32>
    %169 = arith.addf %162, %168 : vector<16x25xf32>
    %170 = vector.broadcast %107 : vector<16x1xf32> to vector<16x25xf32>
    %171 = arith.addf %169, %170 : vector<16x25xf32>
    %cst_176 = arith.constant 0.000000e+00 : f32
    %172 = vector.broadcast %cst_176 : f32 to vector<16x25xf32>
    %173 = arith.maximumf %171, %172 : vector<16x25xf32>
    %174 = vector.extract_strided_slice %0 {offsets = [0, 3], sizes = [8, 1], strides = [1, 1]} : vector<16x8xf32> to vector<8x1xf32>
    %c0_177 = arith.constant 0 : index
    %c0_178 = arith.constant 0 : index
    %c0_179 = arith.constant 0 : index
    %175 = vector.load %arg9[%c0_177, %c0_178, %c0_179] : memref<25x8x16xf32, #tpu.memory_space<vmem>>, vector<1x8x16xf32>
    %176 = vector.shape_cast %175 : vector<1x8x16xf32> to vector<8x16xf32>
    %cst_180 = arith.constant dense<0.000000e+00> : vector<8x25xf32>
    %177 = tpu.matmul %176, %173, %cst_180 {dimension_numbers = #tpu.dot_dimension_numbers<[1], [0], [0], [1], [0, 0, 1, 1], [], []>} : vector<8x16xf32>, vector<16x25xf32>, vector<8x25xf32> -> vector<8x25xf32>
    %c0_181 = arith.constant 0 : index
    %c0_182 = arith.constant 0 : index
    %c0_183 = arith.constant 0 : index
    %178 = vector.load %arg10[%c0_181, %c0_182, %c0_183] : memref<25x25x225xf32, #tpu.memory_space<vmem>>, vector<1x25x225xf32>
    %179 = vector.shape_cast %178 : vector<1x25x225xf32> to vector<25x225xf32>
    %cst_184 = arith.constant dense<0.000000e+00> : vector<8x225xf32>
    %180 = tpu.matmul %177, %179, %cst_184 {dimension_numbers = #tpu.dot_dimension_numbers<[1], [0], [0], [1], [0, 0, 1, 1], [], []>} : vector<8x25xf32>, vector<25x225xf32>, vector<8x225xf32> -> vector<8x225xf32>
    %c1_185 = arith.constant 1 : index
    %c0_186 = arith.constant 0 : index
    %c0_187 = arith.constant 0 : index
    %181 = vector.load %arg9[%c1_185, %c0_186, %c0_187] : memref<25x8x16xf32, #tpu.memory_space<vmem>>, vector<1x8x16xf32>
    %182 = vector.shape_cast %181 : vector<1x8x16xf32> to vector<8x16xf32>
    %cst_188 = arith.constant dense<0.000000e+00> : vector<8x25xf32>
    %183 = tpu.matmul %182, %173, %cst_188 {dimension_numbers = #tpu.dot_dimension_numbers<[1], [0], [0], [1], [0, 0, 1, 1], [], []>} : vector<8x16xf32>, vector<16x25xf32>, vector<8x25xf32> -> vector<8x25xf32>
    %c1_189 = arith.constant 1 : index
    %c0_190 = arith.constant 0 : index
    %c0_191 = arith.constant 0 : index
    %184 = vector.load %arg10[%c1_189, %c0_190, %c0_191] : memref<25x25x225xf32, #tpu.memory_space<vmem>>, vector<1x25x225xf32>
    %185 = vector.shape_cast %184 : vector<1x25x225xf32> to vector<25x225xf32>
    %cst_192 = arith.constant dense<0.000000e+00> : vector<8x225xf32>
    %186 = tpu.matmul %183, %185, %cst_192 {dimension_numbers = #tpu.dot_dimension_numbers<[1], [0], [0], [1], [0, 0, 1, 1], [], []>} : vector<8x25xf32>, vector<25x225xf32>, vector<8x225xf32> -> vector<8x225xf32>
    %187 = arith.addf %180, %186 : vector<8x225xf32>
    %c2_193 = arith.constant 2 : index
    %c0_194 = arith.constant 0 : index
    %c0_195 = arith.constant 0 : index
    %188 = vector.load %arg9[%c2_193, %c0_194, %c0_195] : memref<25x8x16xf32, #tpu.memory_space<vmem>>, vector<1x8x16xf32>
    %189 = vector.shape_cast %188 : vector<1x8x16xf32> to vector<8x16xf32>
    %cst_196 = arith.constant dense<0.000000e+00> : vector<8x25xf32>
    %190 = tpu.matmul %189, %173, %cst_196 {dimension_numbers = #tpu.dot_dimension_numbers<[1], [0], [0], [1], [0, 0, 1, 1], [], []>} : vector<8x16xf32>, vector<16x25xf32>, vector<8x25xf32> -> vector<8x25xf32>
    %c2_197 = arith.constant 2 : index
    %c0_198 = arith.constant 0 : index
    %c0_199 = arith.constant 0 : index
    %191 = vector.load %arg10[%c2_197, %c0_198, %c0_199] : memref<25x25x225xf32, #tpu.memory_space<vmem>>, vector<1x25x225xf32>
    %192 = vector.shape_cast %191 : vector<1x25x225xf32> to vector<25x225xf32>
    %cst_200 = arith.constant dense<0.000000e+00> : vector<8x225xf32>
    %193 = tpu.matmul %190, %192, %cst_200 {dimension_numbers = #tpu.dot_dimension_numbers<[1], [0], [0], [1], [0, 0, 1, 1], [], []>} : vector<8x25xf32>, vector<25x225xf32>, vector<8x225xf32> -> vector<8x225xf32>
    %194 = arith.addf %187, %193 : vector<8x225xf32>
    %c3_201 = arith.constant 3 : index
    %c0_202 = arith.constant 0 : index
    %c0_203 = arith.constant 0 : index
    %195 = vector.load %arg9[%c3_201, %c0_202, %c0_203] : memref<25x8x16xf32, #tpu.memory_space<vmem>>, vector<1x8x16xf32>
    %196 = vector.shape_cast %195 : vector<1x8x16xf32> to vector<8x16xf32>
    %cst_204 = arith.constant dense<0.000000e+00> : vector<8x25xf32>
    %197 = tpu.matmul %196, %173, %cst_204 {dimension_numbers = #tpu.dot_dimension_numbers<[1], [0], [0], [1], [0, 0, 1, 1], [], []>} : vector<8x16xf32>, vector<16x25xf32>, vector<8x25xf32> -> vector<8x25xf32>
    %c3_205 = arith.constant 3 : index
    %c0_206 = arith.constant 0 : index
    %c0_207 = arith.constant 0 : index
    %198 = vector.load %arg10[%c3_205, %c0_206, %c0_207] : memref<25x25x225xf32, #tpu.memory_space<vmem>>, vector<1x25x225xf32>
    %199 = vector.shape_cast %198 : vector<1x25x225xf32> to vector<25x225xf32>
    %cst_208 = arith.constant dense<0.000000e+00> : vector<8x225xf32>
    %200 = tpu.matmul %197, %199, %cst_208 {dimension_numbers = #tpu.dot_dimension_numbers<[1], [0], [0], [1], [0, 0, 1, 1], [], []>} : vector<8x25xf32>, vector<25x225xf32>, vector<8x225xf32> -> vector<8x225xf32>
    %201 = arith.addf %194, %200 : vector<8x225xf32>
    %c4_209 = arith.constant 4 : index
    %c0_210 = arith.constant 0 : index
    %c0_211 = arith.constant 0 : index
    %202 = vector.load %arg9[%c4_209, %c0_210, %c0_211] : memref<25x8x16xf32, #tpu.memory_space<vmem>>, vector<1x8x16xf32>
    %203 = vector.shape_cast %202 : vector<1x8x16xf32> to vector<8x16xf32>
    %cst_212 = arith.constant dense<0.000000e+00> : vector<8x25xf32>
    %204 = tpu.matmul %203, %173, %cst_212 {dimension_numbers = #tpu.dot_dimension_numbers<[1], [0], [0], [1], [0, 0, 1, 1], [], []>} : vector<8x16xf32>, vector<16x25xf32>, vector<8x25xf32> -> vector<8x25xf32>
    %c4_213 = arith.constant 4 : index
    %c0_214 = arith.constant 0 : index
    %c0_215 = arith.constant 0 : index
    %205 = vector.load %arg10[%c4_213, %c0_214, %c0_215] : memref<25x25x225xf32, #tpu.memory_space<vmem>>, vector<1x25x225xf32>
    %206 = vector.shape_cast %205 : vector<1x25x225xf32> to vector<25x225xf32>
    %cst_216 = arith.constant dense<0.000000e+00> : vector<8x225xf32>
    %207 = tpu.matmul %204, %206, %cst_216 {dimension_numbers = #tpu.dot_dimension_numbers<[1], [0], [0], [1], [0, 0, 1, 1], [], []>} : vector<8x25xf32>, vector<25x225xf32>, vector<8x225xf32> -> vector<8x225xf32>
    %208 = arith.addf %201, %207 : vector<8x225xf32>
    %c5_217 = arith.constant 5 : index
    %c0_218 = arith.constant 0 : index
    %c0_219 = arith.constant 0 : index
    %209 = vector.load %arg9[%c5_217, %c0_218, %c0_219] : memref<25x8x16xf32, #tpu.memory_space<vmem>>, vector<1x8x16xf32>
    %210 = vector.shape_cast %209 : vector<1x8x16xf32> to vector<8x16xf32>
    %cst_220 = arith.constant dense<0.000000e+00> : vector<8x25xf32>
    %211 = tpu.matmul %210, %173, %cst_220 {dimension_numbers = #tpu.dot_dimension_numbers<[1], [0], [0], [1], [0, 0, 1, 1], [], []>} : vector<8x16xf32>, vector<16x25xf32>, vector<8x25xf32> -> vector<8x25xf32>
    %c5_221 = arith.constant 5 : index
    %c0_222 = arith.constant 0 : index
    %c0_223 = arith.constant 0 : index
    %212 = vector.load %arg10[%c5_221, %c0_222, %c0_223] : memref<25x25x225xf32, #tpu.memory_space<vmem>>, vector<1x25x225xf32>
    %213 = vector.shape_cast %212 : vector<1x25x225xf32> to vector<25x225xf32>
    %cst_224 = arith.constant dense<0.000000e+00> : vector<8x225xf32>
    %214 = tpu.matmul %211, %213, %cst_224 {dimension_numbers = #tpu.dot_dimension_numbers<[1], [0], [0], [1], [0, 0, 1, 1], [], []>} : vector<8x25xf32>, vector<25x225xf32>, vector<8x225xf32> -> vector<8x225xf32>
    %215 = arith.addf %208, %214 : vector<8x225xf32>
    %c6_225 = arith.constant 6 : index
    %c0_226 = arith.constant 0 : index
    %c0_227 = arith.constant 0 : index
    %216 = vector.load %arg9[%c6_225, %c0_226, %c0_227] : memref<25x8x16xf32, #tpu.memory_space<vmem>>, vector<1x8x16xf32>
    %217 = vector.shape_cast %216 : vector<1x8x16xf32> to vector<8x16xf32>
    %cst_228 = arith.constant dense<0.000000e+00> : vector<8x25xf32>
    %218 = tpu.matmul %217, %173, %cst_228 {dimension_numbers = #tpu.dot_dimension_numbers<[1], [0], [0], [1], [0, 0, 1, 1], [], []>} : vector<8x16xf32>, vector<16x25xf32>, vector<8x25xf32> -> vector<8x25xf32>
    %c6_229 = arith.constant 6 : index
    %c0_230 = arith.constant 0 : index
    %c0_231 = arith.constant 0 : index
    %219 = vector.load %arg10[%c6_229, %c0_230, %c0_231] : memref<25x25x225xf32, #tpu.memory_space<vmem>>, vector<1x25x225xf32>
    %220 = vector.shape_cast %219 : vector<1x25x225xf32> to vector<25x225xf32>
    %cst_232 = arith.constant dense<0.000000e+00> : vector<8x225xf32>
    %221 = tpu.matmul %218, %220, %cst_232 {dimension_numbers = #tpu.dot_dimension_numbers<[1], [0], [0], [1], [0, 0, 1, 1], [], []>} : vector<8x25xf32>, vector<25x225xf32>, vector<8x225xf32> -> vector<8x225xf32>
    %222 = arith.addf %215, %221 : vector<8x225xf32>
    %c7_233 = arith.constant 7 : index
    %c0_234 = arith.constant 0 : index
    %c0_235 = arith.constant 0 : index
    %223 = vector.load %arg9[%c7_233, %c0_234, %c0_235] : memref<25x8x16xf32, #tpu.memory_space<vmem>>, vector<1x8x16xf32>
    %224 = vector.shape_cast %223 : vector<1x8x16xf32> to vector<8x16xf32>
    %cst_236 = arith.constant dense<0.000000e+00> : vector<8x25xf32>
    %225 = tpu.matmul %224, %173, %cst_236 {dimension_numbers = #tpu.dot_dimension_numbers<[1], [0], [0], [1], [0, 0, 1, 1], [], []>} : vector<8x16xf32>, vector<16x25xf32>, vector<8x25xf32> -> vector<8x25xf32>
    %c7_237 = arith.constant 7 : index
    %c0_238 = arith.constant 0 : index
    %c0_239 = arith.constant 0 : index
    %226 = vector.load %arg10[%c7_237, %c0_238, %c0_239] : memref<25x25x225xf32, #tpu.memory_space<vmem>>, vector<1x25x225xf32>
    %227 = vector.shape_cast %226 : vector<1x25x225xf32> to vector<25x225xf32>
    %cst_240 = arith.constant dense<0.000000e+00> : vector<8x225xf32>
    %228 = tpu.matmul %225, %227, %cst_240 {dimension_numbers = #tpu.dot_dimension_numbers<[1], [0], [0], [1], [0, 0, 1, 1], [], []>} : vector<8x25xf32>, vector<25x225xf32>, vector<8x225xf32> -> vector<8x225xf32>
    %229 = arith.addf %222, %228 : vector<8x225xf32>
    %c8_241 = arith.constant 8 : index
    %c0_242 = arith.constant 0 : index
    %c0_243 = arith.constant 0 : index
    %230 = vector.load %arg9[%c8_241, %c0_242, %c0_243] : memref<25x8x16xf32, #tpu.memory_space<vmem>>, vector<1x8x16xf32>
    %231 = vector.shape_cast %230 : vector<1x8x16xf32> to vector<8x16xf32>
    %cst_244 = arith.constant dense<0.000000e+00> : vector<8x25xf32>
    %232 = tpu.matmul %231, %173, %cst_244 {dimension_numbers = #tpu.dot_dimension_numbers<[1], [0], [0], [1], [0, 0, 1, 1], [], []>} : vector<8x16xf32>, vector<16x25xf32>, vector<8x25xf32> -> vector<8x25xf32>
    %c8_245 = arith.constant 8 : index
    %c0_246 = arith.constant 0 : index
    %c0_247 = arith.constant 0 : index
    %233 = vector.load %arg10[%c8_245, %c0_246, %c0_247] : memref<25x25x225xf32, #tpu.memory_space<vmem>>, vector<1x25x225xf32>
    %234 = vector.shape_cast %233 : vector<1x25x225xf32> to vector<25x225xf32>
    %cst_248 = arith.constant dense<0.000000e+00> : vector<8x225xf32>
    %235 = tpu.matmul %232, %234, %cst_248 {dimension_numbers = #tpu.dot_dimension_numbers<[1], [0], [0], [1], [0, 0, 1, 1], [], []>} : vector<8x25xf32>, vector<25x225xf32>, vector<8x225xf32> -> vector<8x225xf32>
    %236 = arith.addf %229, %235 : vector<8x225xf32>
    %c9 = arith.constant 9 : index
    %c0_249 = arith.constant 0 : index
    %c0_250 = arith.constant 0 : index
    %237 = vector.load %arg9[%c9, %c0_249, %c0_250] : memref<25x8x16xf32, #tpu.memory_space<vmem>>, vector<1x8x16xf32>
    %238 = vector.shape_cast %237 : vector<1x8x16xf32> to vector<8x16xf32>
    %cst_251 = arith.constant dense<0.000000e+00> : vector<8x25xf32>
    %239 = tpu.matmul %238, %173, %cst_251 {dimension_numbers = #tpu.dot_dimension_numbers<[1], [0], [0], [1], [0, 0, 1, 1], [], []>} : vector<8x16xf32>, vector<16x25xf32>, vector<8x25xf32> -> vector<8x25xf32>
    %c9_252 = arith.constant 9 : index
    %c0_253 = arith.constant 0 : index
    %c0_254 = arith.constant 0 : index
    %240 = vector.load %arg10[%c9_252, %c0_253, %c0_254] : memref<25x25x225xf32, #tpu.memory_space<vmem>>, vector<1x25x225xf32>
    %241 = vector.shape_cast %240 : vector<1x25x225xf32> to vector<25x225xf32>
    %cst_255 = arith.constant dense<0.000000e+00> : vector<8x225xf32>
    %242 = tpu.matmul %239, %241, %cst_255 {dimension_numbers = #tpu.dot_dimension_numbers<[1], [0], [0], [1], [0, 0, 1, 1], [], []>} : vector<8x25xf32>, vector<25x225xf32>, vector<8x225xf32> -> vector<8x225xf32>
    %243 = arith.addf %236, %242 : vector<8x225xf32>
    %c10 = arith.constant 10 : index
    %c0_256 = arith.constant 0 : index
    %c0_257 = arith.constant 0 : index
    %244 = vector.load %arg9[%c10, %c0_256, %c0_257] : memref<25x8x16xf32, #tpu.memory_space<vmem>>, vector<1x8x16xf32>
    %245 = vector.shape_cast %244 : vector<1x8x16xf32> to vector<8x16xf32>
    %cst_258 = arith.constant dense<0.000000e+00> : vector<8x25xf32>
    %246 = tpu.matmul %245, %173, %cst_258 {dimension_numbers = #tpu.dot_dimension_numbers<[1], [0], [0], [1], [0, 0, 1, 1], [], []>} : vector<8x16xf32>, vector<16x25xf32>, vector<8x25xf32> -> vector<8x25xf32>
    %c10_259 = arith.constant 10 : index
    %c0_260 = arith.constant 0 : index
    %c0_261 = arith.constant 0 : index
    %247 = vector.load %arg10[%c10_259, %c0_260, %c0_261] : memref<25x25x225xf32, #tpu.memory_space<vmem>>, vector<1x25x225xf32>
    %248 = vector.shape_cast %247 : vector<1x25x225xf32> to vector<25x225xf32>
    %cst_262 = arith.constant dense<0.000000e+00> : vector<8x225xf32>
    %249 = tpu.matmul %246, %248, %cst_262 {dimension_numbers = #tpu.dot_dimension_numbers<[1], [0], [0], [1], [0, 0, 1, 1], [], []>} : vector<8x25xf32>, vector<25x225xf32>, vector<8x225xf32> -> vector<8x225xf32>
    %250 = arith.addf %243, %249 : vector<8x225xf32>
    %c11 = arith.constant 11 : index
    %c0_263 = arith.constant 0 : index
    %c0_264 = arith.constant 0 : index
    %251 = vector.load %arg9[%c11, %c0_263, %c0_264] : memref<25x8x16xf32, #tpu.memory_space<vmem>>, vector<1x8x16xf32>
    %252 = vector.shape_cast %251 : vector<1x8x16xf32> to vector<8x16xf32>
    %cst_265 = arith.constant dense<0.000000e+00> : vector<8x25xf32>
    %253 = tpu.matmul %252, %173, %cst_265 {dimension_numbers = #tpu.dot_dimension_numbers<[1], [0], [0], [1], [0, 0, 1, 1], [], []>} : vector<8x16xf32>, vector<16x25xf32>, vector<8x25xf32> -> vector<8x25xf32>
    %c11_266 = arith.constant 11 : index
    %c0_267 = arith.constant 0 : index
    %c0_268 = arith.constant 0 : index
    %254 = vector.load %arg10[%c11_266, %c0_267, %c0_268] : memref<25x25x225xf32, #tpu.memory_space<vmem>>, vector<1x25x225xf32>
    %255 = vector.shape_cast %254 : vector<1x25x225xf32> to vector<25x225xf32>
    %cst_269 = arith.constant dense<0.000000e+00> : vector<8x225xf32>
    %256 = tpu.matmul %253, %255, %cst_269 {dimension_numbers = #tpu.dot_dimension_numbers<[1], [0], [0], [1], [0, 0, 1, 1], [], []>} : vector<8x25xf32>, vector<25x225xf32>, vector<8x225xf32> -> vector<8x225xf32>
    %257 = arith.addf %250, %256 : vector<8x225xf32>
    %c12 = arith.constant 12 : index
    %c0_270 = arith.constant 0 : index
    %c0_271 = arith.constant 0 : index
    %258 = vector.load %arg9[%c12, %c0_270, %c0_271] : memref<25x8x16xf32, #tpu.memory_space<vmem>>, vector<1x8x16xf32>
    %259 = vector.shape_cast %258 : vector<1x8x16xf32> to vector<8x16xf32>
    %cst_272 = arith.constant dense<0.000000e+00> : vector<8x25xf32>
    %260 = tpu.matmul %259, %173, %cst_272 {dimension_numbers = #tpu.dot_dimension_numbers<[1], [0], [0], [1], [0, 0, 1, 1], [], []>} : vector<8x16xf32>, vector<16x25xf32>, vector<8x25xf32> -> vector<8x25xf32>
    %c12_273 = arith.constant 12 : index
    %c0_274 = arith.constant 0 : index
    %c0_275 = arith.constant 0 : index
    %261 = vector.load %arg10[%c12_273, %c0_274, %c0_275] : memref<25x25x225xf32, #tpu.memory_space<vmem>>, vector<1x25x225xf32>
    %262 = vector.shape_cast %261 : vector<1x25x225xf32> to vector<25x225xf32>
    %cst_276 = arith.constant dense<0.000000e+00> : vector<8x225xf32>
    %263 = tpu.matmul %260, %262, %cst_276 {dimension_numbers = #tpu.dot_dimension_numbers<[1], [0], [0], [1], [0, 0, 1, 1], [], []>} : vector<8x25xf32>, vector<25x225xf32>, vector<8x225xf32> -> vector<8x225xf32>
    %264 = arith.addf %257, %263 : vector<8x225xf32>
    %c13 = arith.constant 13 : index
    %c0_277 = arith.constant 0 : index
    %c0_278 = arith.constant 0 : index
    %265 = vector.load %arg9[%c13, %c0_277, %c0_278] : memref<25x8x16xf32, #tpu.memory_space<vmem>>, vector<1x8x16xf32>
    %266 = vector.shape_cast %265 : vector<1x8x16xf32> to vector<8x16xf32>
    %cst_279 = arith.constant dense<0.000000e+00> : vector<8x25xf32>
    %267 = tpu.matmul %266, %173, %cst_279 {dimension_numbers = #tpu.dot_dimension_numbers<[1], [0], [0], [1], [0, 0, 1, 1], [], []>} : vector<8x16xf32>, vector<16x25xf32>, vector<8x25xf32> -> vector<8x25xf32>
    %c13_280 = arith.constant 13 : index
    %c0_281 = arith.constant 0 : index
    %c0_282 = arith.constant 0 : index
    %268 = vector.load %arg10[%c13_280, %c0_281, %c0_282] : memref<25x25x225xf32, #tpu.memory_space<vmem>>, vector<1x25x225xf32>
    %269 = vector.shape_cast %268 : vector<1x25x225xf32> to vector<25x225xf32>
    %cst_283 = arith.constant dense<0.000000e+00> : vector<8x225xf32>
    %270 = tpu.matmul %267, %269, %cst_283 {dimension_numbers = #tpu.dot_dimension_numbers<[1], [0], [0], [1], [0, 0, 1, 1], [], []>} : vector<8x25xf32>, vector<25x225xf32>, vector<8x225xf32> -> vector<8x225xf32>
    %271 = arith.addf %264, %270 : vector<8x225xf32>
    %c14 = arith.constant 14 : index
    %c0_284 = arith.constant 0 : index
    %c0_285 = arith.constant 0 : index
    %272 = vector.load %arg9[%c14, %c0_284, %c0_285] : memref<25x8x16xf32, #tpu.memory_space<vmem>>, vector<1x8x16xf32>
    %273 = vector.shape_cast %272 : vector<1x8x16xf32> to vector<8x16xf32>
    %cst_286 = arith.constant dense<0.000000e+00> : vector<8x25xf32>
    %274 = tpu.matmul %273, %173, %cst_286 {dimension_numbers = #tpu.dot_dimension_numbers<[1], [0], [0], [1], [0, 0, 1, 1], [], []>} : vector<8x16xf32>, vector<16x25xf32>, vector<8x25xf32> -> vector<8x25xf32>
    %c14_287 = arith.constant 14 : index
    %c0_288 = arith.constant 0 : index
    %c0_289 = arith.constant 0 : index
    %275 = vector.load %arg10[%c14_287, %c0_288, %c0_289] : memref<25x25x225xf32, #tpu.memory_space<vmem>>, vector<1x25x225xf32>
    %276 = vector.shape_cast %275 : vector<1x25x225xf32> to vector<25x225xf32>
    %cst_290 = arith.constant dense<0.000000e+00> : vector<8x225xf32>
    %277 = tpu.matmul %274, %276, %cst_290 {dimension_numbers = #tpu.dot_dimension_numbers<[1], [0], [0], [1], [0, 0, 1, 1], [], []>} : vector<8x25xf32>, vector<25x225xf32>, vector<8x225xf32> -> vector<8x225xf32>
    %278 = arith.addf %271, %277 : vector<8x225xf32>
    %c15 = arith.constant 15 : index
    %c0_291 = arith.constant 0 : index
    %c0_292 = arith.constant 0 : index
    %279 = vector.load %arg9[%c15, %c0_291, %c0_292] : memref<25x8x16xf32, #tpu.memory_space<vmem>>, vector<1x8x16xf32>
    %280 = vector.shape_cast %279 : vector<1x8x16xf32> to vector<8x16xf32>
    %cst_293 = arith.constant dense<0.000000e+00> : vector<8x25xf32>
    %281 = tpu.matmul %280, %173, %cst_293 {dimension_numbers = #tpu.dot_dimension_numbers<[1], [0], [0], [1], [0, 0, 1, 1], [], []>} : vector<8x16xf32>, vector<16x25xf32>, vector<8x25xf32> -> vector<8x25xf32>
    %c15_294 = arith.constant 15 : index
    %c0_295 = arith.constant 0 : index
    %c0_296 = arith.constant 0 : index
    %282 = vector.load %arg10[%c15_294, %c0_295, %c0_296] : memref<25x25x225xf32, #tpu.memory_space<vmem>>, vector<1x25x225xf32>
    %283 = vector.shape_cast %282 : vector<1x25x225xf32> to vector<25x225xf32>
    %cst_297 = arith.constant dense<0.000000e+00> : vector<8x225xf32>
    %284 = tpu.matmul %281, %283, %cst_297 {dimension_numbers = #tpu.dot_dimension_numbers<[1], [0], [0], [1], [0, 0, 1, 1], [], []>} : vector<8x25xf32>, vector<25x225xf32>, vector<8x225xf32> -> vector<8x225xf32>
    %285 = arith.addf %278, %284 : vector<8x225xf32>
    %c16 = arith.constant 16 : index
    %c0_298 = arith.constant 0 : index
    %c0_299 = arith.constant 0 : index
    %286 = vector.load %arg9[%c16, %c0_298, %c0_299] : memref<25x8x16xf32, #tpu.memory_space<vmem>>, vector<1x8x16xf32>
    %287 = vector.shape_cast %286 : vector<1x8x16xf32> to vector<8x16xf32>
    %cst_300 = arith.constant dense<0.000000e+00> : vector<8x25xf32>
    %288 = tpu.matmul %287, %173, %cst_300 {dimension_numbers = #tpu.dot_dimension_numbers<[1], [0], [0], [1], [0, 0, 1, 1], [], []>} : vector<8x16xf32>, vector<16x25xf32>, vector<8x25xf32> -> vector<8x25xf32>
    %c16_301 = arith.constant 16 : index
    %c0_302 = arith.constant 0 : index
    %c0_303 = arith.constant 0 : index
    %289 = vector.load %arg10[%c16_301, %c0_302, %c0_303] : memref<25x25x225xf32, #tpu.memory_space<vmem>>, vector<1x25x225xf32>
    %290 = vector.shape_cast %289 : vector<1x25x225xf32> to vector<25x225xf32>
    %cst_304 = arith.constant dense<0.000000e+00> : vector<8x225xf32>
    %291 = tpu.matmul %288, %290, %cst_304 {dimension_numbers = #tpu.dot_dimension_numbers<[1], [0], [0], [1], [0, 0, 1, 1], [], []>} : vector<8x25xf32>, vector<25x225xf32>, vector<8x225xf32> -> vector<8x225xf32>
    %292 = arith.addf %285, %291 : vector<8x225xf32>
    %c17 = arith.constant 17 : index
    %c0_305 = arith.constant 0 : index
    %c0_306 = arith.constant 0 : index
    %293 = vector.load %arg9[%c17, %c0_305, %c0_306] : memref<25x8x16xf32, #tpu.memory_space<vmem>>, vector<1x8x16xf32>
    %294 = vector.shape_cast %293 : vector<1x8x16xf32> to vector<8x16xf32>
    %cst_307 = arith.constant dense<0.000000e+00> : vector<8x25xf32>
    %295 = tpu.matmul %294, %173, %cst_307 {dimension_numbers = #tpu.dot_dimension_numbers<[1], [0], [0], [1], [0, 0, 1, 1], [], []>} : vector<8x16xf32>, vector<16x25xf32>, vector<8x25xf32> -> vector<8x25xf32>
    %c17_308 = arith.constant 17 : index
    %c0_309 = arith.constant 0 : index
    %c0_310 = arith.constant 0 : index
    %296 = vector.load %arg10[%c17_308, %c0_309, %c0_310] : memref<25x25x225xf32, #tpu.memory_space<vmem>>, vector<1x25x225xf32>
    %297 = vector.shape_cast %296 : vector<1x25x225xf32> to vector<25x225xf32>
    %cst_311 = arith.constant dense<0.000000e+00> : vector<8x225xf32>
    %298 = tpu.matmul %295, %297, %cst_311 {dimension_numbers = #tpu.dot_dimension_numbers<[1], [0], [0], [1], [0, 0, 1, 1], [], []>} : vector<8x25xf32>, vector<25x225xf32>, vector<8x225xf32> -> vector<8x225xf32>
    %299 = arith.addf %292, %298 : vector<8x225xf32>
    %c18 = arith.constant 18 : index
    %c0_312 = arith.constant 0 : index
    %c0_313 = arith.constant 0 : index
    %300 = vector.load %arg9[%c18, %c0_312, %c0_313] : memref<25x8x16xf32, #tpu.memory_space<vmem>>, vector<1x8x16xf32>
    %301 = vector.shape_cast %300 : vector<1x8x16xf32> to vector<8x16xf32>
    %cst_314 = arith.constant dense<0.000000e+00> : vector<8x25xf32>
    %302 = tpu.matmul %301, %173, %cst_314 {dimension_numbers = #tpu.dot_dimension_numbers<[1], [0], [0], [1], [0, 0, 1, 1], [], []>} : vector<8x16xf32>, vector<16x25xf32>, vector<8x25xf32> -> vector<8x25xf32>
    %c18_315 = arith.constant 18 : index
    %c0_316 = arith.constant 0 : index
    %c0_317 = arith.constant 0 : index
    %303 = vector.load %arg10[%c18_315, %c0_316, %c0_317] : memref<25x25x225xf32, #tpu.memory_space<vmem>>, vector<1x25x225xf32>
    %304 = vector.shape_cast %303 : vector<1x25x225xf32> to vector<25x225xf32>
    %cst_318 = arith.constant dense<0.000000e+00> : vector<8x225xf32>
    %305 = tpu.matmul %302, %304, %cst_318 {dimension_numbers = #tpu.dot_dimension_numbers<[1], [0], [0], [1], [0, 0, 1, 1], [], []>} : vector<8x25xf32>, vector<25x225xf32>, vector<8x225xf32> -> vector<8x225xf32>
    %306 = arith.addf %299, %305 : vector<8x225xf32>
    %c19 = arith.constant 19 : index
    %c0_319 = arith.constant 0 : index
    %c0_320 = arith.constant 0 : index
    %307 = vector.load %arg9[%c19, %c0_319, %c0_320] : memref<25x8x16xf32, #tpu.memory_space<vmem>>, vector<1x8x16xf32>
    %308 = vector.shape_cast %307 : vector<1x8x16xf32> to vector<8x16xf32>
    %cst_321 = arith.constant dense<0.000000e+00> : vector<8x25xf32>
    %309 = tpu.matmul %308, %173, %cst_321 {dimension_numbers = #tpu.dot_dimension_numbers<[1], [0], [0], [1], [0, 0, 1, 1], [], []>} : vector<8x16xf32>, vector<16x25xf32>, vector<8x25xf32> -> vector<8x25xf32>
    %c19_322 = arith.constant 19 : index
    %c0_323 = arith.constant 0 : index
    %c0_324 = arith.constant 0 : index
    %310 = vector.load %arg10[%c19_322, %c0_323, %c0_324] : memref<25x25x225xf32, #tpu.memory_space<vmem>>, vector<1x25x225xf32>
    %311 = vector.shape_cast %310 : vector<1x25x225xf32> to vector<25x225xf32>
    %cst_325 = arith.constant dense<0.000000e+00> : vector<8x225xf32>
    %312 = tpu.matmul %309, %311, %cst_325 {dimension_numbers = #tpu.dot_dimension_numbers<[1], [0], [0], [1], [0, 0, 1, 1], [], []>} : vector<8x25xf32>, vector<25x225xf32>, vector<8x225xf32> -> vector<8x225xf32>
    %313 = arith.addf %306, %312 : vector<8x225xf32>
    %c20 = arith.constant 20 : index
    %c0_326 = arith.constant 0 : index
    %c0_327 = arith.constant 0 : index
    %314 = vector.load %arg9[%c20, %c0_326, %c0_327] : memref<25x8x16xf32, #tpu.memory_space<vmem>>, vector<1x8x16xf32>
    %315 = vector.shape_cast %314 : vector<1x8x16xf32> to vector<8x16xf32>
    %cst_328 = arith.constant dense<0.000000e+00> : vector<8x25xf32>
    %316 = tpu.matmul %315, %173, %cst_328 {dimension_numbers = #tpu.dot_dimension_numbers<[1], [0], [0], [1], [0, 0, 1, 1], [], []>} : vector<8x16xf32>, vector<16x25xf32>, vector<8x25xf32> -> vector<8x25xf32>
    %c20_329 = arith.constant 20 : index
    %c0_330 = arith.constant 0 : index
    %c0_331 = arith.constant 0 : index
    %317 = vector.load %arg10[%c20_329, %c0_330, %c0_331] : memref<25x25x225xf32, #tpu.memory_space<vmem>>, vector<1x25x225xf32>
    %318 = vector.shape_cast %317 : vector<1x25x225xf32> to vector<25x225xf32>
    %cst_332 = arith.constant dense<0.000000e+00> : vector<8x225xf32>
    %319 = tpu.matmul %316, %318, %cst_332 {dimension_numbers = #tpu.dot_dimension_numbers<[1], [0], [0], [1], [0, 0, 1, 1], [], []>} : vector<8x25xf32>, vector<25x225xf32>, vector<8x225xf32> -> vector<8x225xf32>
    %320 = arith.addf %313, %319 : vector<8x225xf32>
    %c21 = arith.constant 21 : index
    %c0_333 = arith.constant 0 : index
    %c0_334 = arith.constant 0 : index
    %321 = vector.load %arg9[%c21, %c0_333, %c0_334] : memref<25x8x16xf32, #tpu.memory_space<vmem>>, vector<1x8x16xf32>
    %322 = vector.shape_cast %321 : vector<1x8x16xf32> to vector<8x16xf32>
    %cst_335 = arith.constant dense<0.000000e+00> : vector<8x25xf32>
    %323 = tpu.matmul %322, %173, %cst_335 {dimension_numbers = #tpu.dot_dimension_numbers<[1], [0], [0], [1], [0, 0, 1, 1], [], []>} : vector<8x16xf32>, vector<16x25xf32>, vector<8x25xf32> -> vector<8x25xf32>
    %c21_336 = arith.constant 21 : index
    %c0_337 = arith.constant 0 : index
    %c0_338 = arith.constant 0 : index
    %324 = vector.load %arg10[%c21_336, %c0_337, %c0_338] : memref<25x25x225xf32, #tpu.memory_space<vmem>>, vector<1x25x225xf32>
    %325 = vector.shape_cast %324 : vector<1x25x225xf32> to vector<25x225xf32>
    %cst_339 = arith.constant dense<0.000000e+00> : vector<8x225xf32>
    %326 = tpu.matmul %323, %325, %cst_339 {dimension_numbers = #tpu.dot_dimension_numbers<[1], [0], [0], [1], [0, 0, 1, 1], [], []>} : vector<8x25xf32>, vector<25x225xf32>, vector<8x225xf32> -> vector<8x225xf32>
    %327 = arith.addf %320, %326 : vector<8x225xf32>
    %c22 = arith.constant 22 : index
    %c0_340 = arith.constant 0 : index
    %c0_341 = arith.constant 0 : index
    %328 = vector.load %arg9[%c22, %c0_340, %c0_341] : memref<25x8x16xf32, #tpu.memory_space<vmem>>, vector<1x8x16xf32>
    %329 = vector.shape_cast %328 : vector<1x8x16xf32> to vector<8x16xf32>
    %cst_342 = arith.constant dense<0.000000e+00> : vector<8x25xf32>
    %330 = tpu.matmul %329, %173, %cst_342 {dimension_numbers = #tpu.dot_dimension_numbers<[1], [0], [0], [1], [0, 0, 1, 1], [], []>} : vector<8x16xf32>, vector<16x25xf32>, vector<8x25xf32> -> vector<8x25xf32>
    %c22_343 = arith.constant 22 : index
    %c0_344 = arith.constant 0 : index
    %c0_345 = arith.constant 0 : index
    %331 = vector.load %arg10[%c22_343, %c0_344, %c0_345] : memref<25x25x225xf32, #tpu.memory_space<vmem>>, vector<1x25x225xf32>
    %332 = vector.shape_cast %331 : vector<1x25x225xf32> to vector<25x225xf32>
    %cst_346 = arith.constant dense<0.000000e+00> : vector<8x225xf32>
    %333 = tpu.matmul %330, %332, %cst_346 {dimension_numbers = #tpu.dot_dimension_numbers<[1], [0], [0], [1], [0, 0, 1, 1], [], []>} : vector<8x25xf32>, vector<25x225xf32>, vector<8x225xf32> -> vector<8x225xf32>
    %334 = arith.addf %327, %333 : vector<8x225xf32>
    %c23 = arith.constant 23 : index
    %c0_347 = arith.constant 0 : index
    %c0_348 = arith.constant 0 : index
    %335 = vector.load %arg9[%c23, %c0_347, %c0_348] : memref<25x8x16xf32, #tpu.memory_space<vmem>>, vector<1x8x16xf32>
    %336 = vector.shape_cast %335 : vector<1x8x16xf32> to vector<8x16xf32>
    %cst_349 = arith.constant dense<0.000000e+00> : vector<8x25xf32>
    %337 = tpu.matmul %336, %173, %cst_349 {dimension_numbers = #tpu.dot_dimension_numbers<[1], [0], [0], [1], [0, 0, 1, 1], [], []>} : vector<8x16xf32>, vector<16x25xf32>, vector<8x25xf32> -> vector<8x25xf32>
    %c23_350 = arith.constant 23 : index
    %c0_351 = arith.constant 0 : index
    %c0_352 = arith.constant 0 : index
    %338 = vector.load %arg10[%c23_350, %c0_351, %c0_352] : memref<25x25x225xf32, #tpu.memory_space<vmem>>, vector<1x25x225xf32>
    %339 = vector.shape_cast %338 : vector<1x25x225xf32> to vector<25x225xf32>
    %cst_353 = arith.constant dense<0.000000e+00> : vector<8x225xf32>
    %340 = tpu.matmul %337, %339, %cst_353 {dimension_numbers = #tpu.dot_dimension_numbers<[1], [0], [0], [1], [0, 0, 1, 1], [], []>} : vector<8x25xf32>, vector<25x225xf32>, vector<8x225xf32> -> vector<8x225xf32>
    %341 = arith.addf %334, %340 : vector<8x225xf32>
    %c24 = arith.constant 24 : index
    %c0_354 = arith.constant 0 : index
    %c0_355 = arith.constant 0 : index
    %342 = vector.load %arg9[%c24, %c0_354, %c0_355] : memref<25x8x16xf32, #tpu.memory_space<vmem>>, vector<1x8x16xf32>
    %343 = vector.shape_cast %342 : vector<1x8x16xf32> to vector<8x16xf32>
    %cst_356 = arith.constant dense<0.000000e+00> : vector<8x25xf32>
    %344 = tpu.matmul %343, %173, %cst_356 {dimension_numbers = #tpu.dot_dimension_numbers<[1], [0], [0], [1], [0, 0, 1, 1], [], []>} : vector<8x16xf32>, vector<16x25xf32>, vector<8x25xf32> -> vector<8x25xf32>
    %c24_357 = arith.constant 24 : index
    %c0_358 = arith.constant 0 : index
    %c0_359 = arith.constant 0 : index
    %345 = vector.load %arg10[%c24_357, %c0_358, %c0_359] : memref<25x25x225xf32, #tpu.memory_space<vmem>>, vector<1x25x225xf32>
    %346 = vector.shape_cast %345 : vector<1x25x225xf32> to vector<25x225xf32>
    %cst_360 = arith.constant dense<0.000000e+00> : vector<8x225xf32>
    %347 = tpu.matmul %344, %346, %cst_360 {dimension_numbers = #tpu.dot_dimension_numbers<[1], [0], [0], [1], [0, 0, 1, 1], [], []>} : vector<8x25xf32>, vector<25x225xf32>, vector<8x225xf32> -> vector<8x225xf32>
    %348 = arith.addf %341, %347 : vector<8x225xf32>
    %349 = vector.broadcast %174 : vector<8x1xf32> to vector<8x225xf32>
    %350 = arith.addf %348, %349 : vector<8x225xf32>
    %cst_361 = arith.constant 0.000000e+00 : f32
    %351 = vector.broadcast %cst_361 : f32 to vector<8x225xf32>
    %352 = arith.maximumf %350, %351 : vector<8x225xf32>
    %c0_362 = arith.constant 0 : index
    %c0_363 = arith.constant 0 : index
    %353 = vector.load %arg11[%c0_362, %c0_363] : memref<225x784xf32, #tpu.memory_space<vmem>>, vector<225x784xf32>
    %cst_364 = arith.constant dense<0.000000e+00> : vector<8x784xf32>
    %354 = tpu.matmul %352, %353, %cst_364 {dimension_numbers = #tpu.dot_dimension_numbers<[1], [0], [0], [1], [0, 0, 1, 1], [], []>} : vector<8x225xf32>, vector<225x784xf32>, vector<8x784xf32> -> vector<8x784xf32>
    %c0_365 = arith.constant 0 : index
    %c0_366 = arith.constant 0 : index
    %355 = vector.load %arg12[%c0_365, %c0_366] : memref<8x784xf32, #tpu.memory_space<vmem>>, vector<8x784xf32>
    %356 = arith.mulf %354, %355 : vector<8x784xf32>
    %cst_367 = arith.constant dense<0.000000e+00> : vector<784xf32>
    %357 = vector.multi_reduction <add>, %356, %cst_367 [0] : vector<8x784xf32> to vector<784xf32>
    %358 = vector.shape_cast %357 : vector<784xf32> to vector<1x784xf32>
    %359 = vector.extract_strided_slice %0 {offsets = [0, 4], sizes = [1, 1], strides = [1, 1]} : vector<16x8xf32> to vector<1x1xf32>
    %360 = vector.broadcast %359 : vector<1x1xf32> to vector<1x784xf32>
    %361 = arith.addf %358, %360 : vector<1x784xf32>
    %cst_368 = arith.constant 0.000000e+00 : f32
    %362 = vector.broadcast %cst_368 : f32 to vector<1x784xf32>
    %363 = arith.subf %362, %361 : vector<1x784xf32>
    %364 = math.exp %363 : vector<1x784xf32>
    %cst_369 = arith.constant 1.000000e+00 : f32
    %365 = vector.broadcast %cst_369 : f32 to vector<1x784xf32>
    %366 = arith.addf %365, %364 : vector<1x784xf32>
    %cst_370 = arith.constant 1.000000e+00 : f32
    %367 = vector.broadcast %cst_370 : f32 to vector<1x784xf32>
    %368 = arith.divf %367, %366 : vector<1x784xf32>
    %c0_371 = arith.constant 0 : index
    %c0_372 = arith.constant 0 : index
    %c0_373 = arith.constant 0 : index
    %369 = vector.load %arg14[%c0_371, %c0_372, %c0_373] : memref<1x1x784xf32, #tpu.memory_space<vmem>>, vector<1x1x784xf32>
    %370 = vector.shape_cast %369 : vector<1x1x784xf32> to vector<1x784xf32>
    %371 = vector.shape_cast %368 : vector<1x784xf32> to vector<1x1x784xf32>
    tpu.vector_store %arg14[%c0_371, %c0_372, %c0_373], %371 {strides = array<i32>} : memref<1x1x784xf32, #tpu.memory_space<vmem>>, vector<1x1x784xf32>,
    return
  }
  func.func @transform_0(%arg0: i32) -> (i32, i32, i32) {
    %c0_i32 = arith.constant 0 : i32
    %c0_i32_0 = arith.constant 0 : i32
    %c0_i32_1 = arith.constant 0 : i32
    return %arg0, %c0_i32, %c0_i32_0 : i32, i32, i32
  }
  func.func @transform_1(%arg0: i32) -> (i32, i32) {
    %c0_i32 = arith.constant 0 : i32
    %c0_i32_0 = arith.constant 0 : i32
    %c0_i32_1 = arith.constant 0 : i32
    return %c0_i32, %c0_i32_0 : i32, i32
  }
  func.func @transform_2(%arg0: i32) -> (i32, i32, i32) {
    %c0_i32 = arith.constant 0 : i32
    %c0_i32_0 = arith.constant 0 : i32
    %c0_i32_1 = arith.constant 0 : i32
    %c0_i32_2 = arith.constant 0 : i32
    return %c0_i32, %c0_i32_0, %c0_i32_1 : i32, i32, i32
  }
  func.func @transform_3(%arg0: i32) -> (i32, i32, i32) {
    %c0_i32 = arith.constant 0 : i32
    %c0_i32_0 = arith.constant 0 : i32
    %c0_i32_1 = arith.constant 0 : i32
    %c0_i32_2 = arith.constant 0 : i32
    return %c0_i32, %c0_i32_0, %c0_i32_1 : i32, i32, i32
  }
  func.func @transform_4(%arg0: i32) -> (i32, i32, i32) {
    %c0_i32 = arith.constant 0 : i32
    %c0_i32_0 = arith.constant 0 : i32
    %c0_i32_1 = arith.constant 0 : i32
    %c0_i32_2 = arith.constant 0 : i32
    return %c0_i32, %c0_i32_0, %c0_i32_1 : i32, i32, i32
  }
  func.func @transform_5(%arg0: i32) -> (i32, i32, i32) {
    %c0_i32 = arith.constant 0 : i32
    %c0_i32_0 = arith.constant 0 : i32
    %c0_i32_1 = arith.constant 0 : i32
    %c0_i32_2 = arith.constant 0 : i32
    return %c0_i32, %c0_i32_0, %c0_i32_1 : i32, i32, i32
  }
  func.func @transform_6(%arg0: i32) -> (i32, i32, i32) {
    %c0_i32 = arith.constant 0 : i32
    %c0_i32_0 = arith.constant 0 : i32
    %c0_i32_1 = arith.constant 0 : i32
    %c0_i32_2 = arith.constant 0 : i32
    return %c0_i32, %c0_i32_0, %c0_i32_1 : i32, i32, i32
  }
  func.func @transform_7(%arg0: i32) -> (i32, i32, i32) {
    %c0_i32 = arith.constant 0 : i32
    %c0_i32_0 = arith.constant 0 : i32
    %c0_i32_1 = arith.constant 0 : i32
    %c0_i32_2 = arith.constant 0 : i32
    return %c0_i32, %c0_i32_0, %c0_i32_1 : i32, i32, i32
  }
  func.func @transform_8(%arg0: i32) -> (i32, i32, i32) {
    %c0_i32 = arith.constant 0 : i32
    %c0_i32_0 = arith.constant 0 : i32
    %c0_i32_1 = arith.constant 0 : i32
    %c0_i32_2 = arith.constant 0 : i32
    return %c0_i32, %c0_i32_0, %c0_i32_1 : i32, i32, i32
  }
  func.func @transform_9(%arg0: i32) -> (i32, i32, i32) {
    %c0_i32 = arith.constant 0 : i32
    %c0_i32_0 = arith.constant 0 : i32
    %c0_i32_1 = arith.constant 0 : i32
    %c0_i32_2 = arith.constant 0 : i32
    return %c0_i32, %c0_i32_0, %c0_i32_1 : i32, i32, i32
  }
  func.func @transform_10(%arg0: i32) -> (i32, i32) {
    %c0_i32 = arith.constant 0 : i32
    %c0_i32_0 = arith.constant 0 : i32
    %c0_i32_1 = arith.constant 0 : i32
    return %c0_i32, %c0_i32_0 : i32, i32
  }
  func.func @transform_11(%arg0: i32) -> (i32, i32) {
    %c0_i32 = arith.constant 0 : i32
    %c0_i32_0 = arith.constant 0 : i32
    %c0_i32_1 = arith.constant 0 : i32
    return %c0_i32, %c0_i32_0 : i32, i32
  }
  func.func @transform_12(%arg0: i32) -> (i32, i32) {
    %c0_i32 = arith.constant 0 : i32
    %c0_i32_0 = arith.constant 0 : i32
    %c0_i32_1 = arith.constant 0 : i32
    return %c0_i32, %c0_i32_0 : i32, i32
  }
  func.func @transform_13(%arg0: i32) -> (i32, i32, i32) {
    %c0_i32 = arith.constant 0 : i32
    %c0_i32_0 = arith.constant 0 : i32
    %c0_i32_1 = arith.constant 0 : i32
    return %arg0, %c0_i32, %c0_i32_0 : i32, i32, i32
  }
}

</mosaic_0001>

<bundles_post_ra>
// kernel: encoder_model_forward.1
= control target key start
LH: loop header
LB: loop body
LE: loop exit
PB: predicated region body
PF: predicated region fallthrough
CT: control target
= control target key end

     0   :  { %s10630_s25 = smov 0   ;;  %s12982_s0 = inlined_call_operand.vmem [shape: f32[2,9,100], index: 0, kind: input, shape index: {}]   ;;  %s12983_s1 = inlined_call_operand.vmem [shape: f32[16,9], index: 1, kind: input, shape index: {}]   ;;  %s12984_s2 = inlined_call_operand.vmem [shape: f32[4,100,25], index: 2, kind: input, shape index: {}]   ;;  %s12985_s3 = inlined_call_operand.vmem [shape: f32[9,8,16], index: 3, kind: input, shape index: {}]   ;;  %s12986_s4 = inlined_call_operand.vmem [shape: f32[9,25,9], index: 4, kind: input, shape index: {}]   ;;  %s12987_s5 = inlined_call_operand.vmem [shape: f32[4,9,4], index: 5, kind: input, shape index: {}]   ;;  %s12988_s6 = inlined_call_operand.vmem [shape: f32[9,16,8], index: 6, kind: input, shape index: {}]   ;;  %s12989_s7 = inlined_call_operand.vmem [shape: f32[9,4,25], index: 7, kind: input, shape index: {}]   ;;  %s12990_s8 = inlined_call_operand.vmem [shape: f32[25,8,16], index: 8, kind: input, shape index: {}]   ;;  %s12991_s9 = inlined_call_operand.vmem [shape: f32[25,25,225], index: 9, kind: input, shape index: {}]   ;;  %s12992_s10 = inlined_call_operand.vmem [shape: f32[225,784], index: 10, kind: input, shape index: {}]   ;;  %s12993_s11 = inlined_call_operand.vmem [shape: f32[8,784], index: 11, kind: input, shape index: {}]   ;;  %s12994_s12 = inlined_call_operand.vmem [shape: f32[16,8], index: 12, kind: input, shape index: {}]   ;;  %s12995_s13 = inlined_call_operand.vmem [shape: f32[2,1,784], index: 13, kind: output, shape index: {}]  }
   0x1 LB: > { %s9093_s26 = sadd.s32 4294967295, %s10550_s25   ;;  %p9097_p0 = scmp.ge.s32.totalorder %s10550_s25, 1  ;;  %s10550_s25 = sphi %s10630_s25, %s23_s25  }
   0x2   : > { %p387_p1 = scmp.lt.s32.totalorder %s10550_s25, 3 }
   0x4   : > { %p388_p2 = pnand %p9097_p0, %p387_p1 }
   0x5   : > { %p430_p3 = scmp.lt.s32.totalorder (!%p388_p2), %s9093_s26, 1 }
   0x6   : > { %391 = sbr.rel (%p388_p2) target bundleno = 5528 (0x1598), region = 72 }
   0xb   : > { %v441_v0 = vld [vmem:[%s12983_s1] sm:$0xff]  ;;  %vm455_vm0 = vcmask 72704   ;;  %v10552_v1 = vmov 0   ;;  %vm563_vm1 = vcmask 1043456   ;;  %s12997_s26 = smov (!%p430_p3, %s9093_s26), 1  ;;  %v554_v4 = vld [vmem:[%s12984_s2 + $0x58] sm:$0xff] }
   0xc   : > { %9915 = vmatprep.mubr.msk.f32.mxu0 %vm455_vm0, %v441_v0  ;;  %10506 = vset.pattern.permute.xlu0 %v10552_v1  ;;  %v10645_v2 = vld [vmem:[%s12994_s12] sm:$0xff]  ;;  %v440_v5 = vld [vmem:[%s12994_s12 + $0x8] sm:$0xff]  ;;  %v553_v6 = vld [vmem:[%s12984_s2 + $0x50] sm:$0xff]  ;;  %s9633_s22 = sshll.u32 %s12997_s26, 4  ;;  %vm462_vm2 = vcmask 1040384   ;;  %vm556_vm3 = vcmask 818176  }
   0xd   : > { %v555_v3 = vld [vmem:[%s12984_s2 + $0x60] sm:$0xf]  ;;  %447 = vperm.xlu0 %10506, %v10645_v2   ;;  %s434_s27 = scalar_lea.vmem %s12982_s0, %s9633_s22  ;;  %v552_v7 = vld [vmem:[%s12984_s2 + $0x48] sm:$0xff]  ;;  %v550_v14 = vld [vmem:[%s12984_s2 + $0x38] sm:$0xff]  ;;  %vm10554_vm4 = vmmov 0   ;;  %vm925_vm5 = vcmask 130048  }
   0xe   : > { %9918 = vmatprep.subr.msk.mxu1 %vm563_vm1, %v555_v3  ;;  %v444_v8 = vld [vmem:[%s434_s27 + $0x8] sm:$0x1]  ;;  %v443_v9 = vld [vmem:[%s434_s27] sm:$0xff]  ;;  %v9116_v15 = vld [vmem:[%s12984_s2 + $0xb8] sm:$0xff]  ;;  %vm1083_vm6 = vcmask 203776   ;;  %vm2652_vm7 = vcmask 64512  }
   0xf   : > { %9919 = vmatpush3.msk.msra.mxu1 %vm563_vm1, %v555_v3  ;;  %9911 = vmatprep.subr.msk.mxu0 %vm462_vm2, %v444_v8  ;;  %v551_v10 = vld [vmem:[%s12984_s2 + $0x40] sm:$0xff]  ;;  %v442_v11 = vld [vmem:[%s12983_s1 + $0x8] sm:$0xff]  ;;  %v549_v16 = vld [vmem:[%s12984_s2 + $0x30] sm:$0xff]  ;;  %vm2821_vm8 = vcmask 31744   ;;  %vm8561_vm9 = vcmask 793600   ;;  %s10489_s22 = smul.u32 7, %s12997_s26 }
  0x10   : > { %9920 = vmatprep.subr.mxu1 %v554_v4  ;;  %9912 = vmatpush3.msk.msra.mxu0 %vm462_vm2, %v444_v8  ;;  %v9118_v12 = vld [vmem:[%s12984_s2 + $0xc8] sm:$0xf]  ;;  %v9117_v13 = vld [vmem:[%s12984_s2 + $0xc0] sm:$0xff]  ;;  %v9115_v17 = vld [vmem:[%s12984_s2 + $0xb0] sm:$0xff] }
  0x11   : > { %9921 = vmatpush3.msra.mxu1 %v554_v4  ;;  %452 = vperm.xlu0 %10506, %v440_v5   ;;  %v548_v18 = vld [vmem:[%s12984_s2 + $0x28] sm:$0xff]  ;;  %v547_v20 = vld [vmem:[%s12984_s2 + $0x20] sm:$0xff]  ;;  %v546_v22 = vld [vmem:[%s12984_s2 + $0x18] sm:$0xff]  ;;  %v10553_v4 = vmov 0.0   ;;  %s438_s27 = scalar_lea.vmem %s12995_s13, %s10489_s22 }
  0x12   : > { %9922 = vmatprep.subr.mxu1 %v553_v6  ;;  %9913 = vmatprep.subr.mxu0 %v443_v9  ;;  %v9114_v19 = vld [vmem:[%s12984_s2 + $0xa8] sm:$0xff]  ;;  %v9113_v21 = vld [vmem:[%s12984_s2 + $0xa0] sm:$0xff]  ;;  %v9112_v23 = vld [vmem:[%s12984_s2 + $0x98] sm:$0xff] }
  0x13   : > { %9923 = vmatpush3.msra.mxu1 %v553_v6  ;;  %9914 = vmatpush3.msra.mxu0 %v443_v9  ;;  %v9111_v24 = vld [vmem:[%s12984_s2 + $0x90] sm:$0xff]  ;;  %v9110_v25 = vld [vmem:[%s12984_s2 + $0x88] sm:$0xff]  ;;  %v9109_v26 = vld [vmem:[%s12984_s2 + $0x80] sm:$0xff] }
  0x14   : > { %9924 = vmatprep.subr.mxu1 %v552_v7  ;;  %9916 = vmatmul.mubr.msk.f32.vlgmr.msra.gmra.mxu0 %vm455_vm0, %v442_v11  ;;  %v545_v27 = vld [vmem:[%s12984_s2 + $0x10] sm:$0xff]  ;;  %v9108_v28 = vld [vmem:[%s12984_s2 + $0x78] sm:$0xff]  ;;  %v544_v29 = vld [vmem:[%s12984_s2 + $0x8] sm:$0xff] }
  0x15   : > { %9925 = vmatpush3.msra.mxu1 %v552_v7  ;;  %9947 = vmatprep.subr.msk.mxu0 %vm563_vm1, %v9118_v12  ;;  %v9107_v30 = vld [vmem:[%s12984_s2 + $0x70] sm:$0xff]  ;;  %v543_v31 = vld [vmem:[%s12984_s2] sm:$0xff]  ;;  %v9106_v32 = vld [vmem:[%s12984_s2 + $0x68] sm:$0xff] }
  0x16   : > { %9926 = vmatprep.subr.mxu1 %v551_v10  ;;  %9948 = vmatpush3.msk.msra.mxu0 %vm563_vm1, %v9118_v12  ;;  %v9134_v33 = vld [vmem:[%s12984_s2 + $0x130] sm:$0xf]  ;;  %v9150_v34 = vld [vmem:[%s12984_s2 + $0x198] sm:$0xf]  ;;  %v9133_v43 = vld [vmem:[%s12984_s2 + $0x128] sm:$0xff] }
  0x17   : > { %9927 = vmatpush3.msra.mxu1 %v551_v10  ;;  %9949 = vmatprep.subr.mxu0 %v9117_v13  ;;  %v9149_v44 = vld [vmem:[%s12984_s2 + $0x190] sm:$0xff]  ;;  %v9132_v45 = vld [vmem:[%s12984_s2 + $0x120] sm:$0xff]  ;;  %v9148_v46 = vld [vmem:[%s12984_s2 + $0x188] sm:$0xff] }
  0x18   : > { %9928 = vmatprep.subr.mxu1 %v550_v14  ;;  %9950 = vmatpush3.msra.mxu0 %v9117_v13  ;;  %v9131_v47 = vld [vmem:[%s12984_s2 + $0x118] sm:$0xff]  ;;  %v9147_v48 = vld [vmem:[%s12984_s2 + $0x180] sm:$0xff]  ;;  %v9130_v49 = vld [vmem:[%s12984_s2 + $0x110] sm:$0xff] }
  0x19   : > { %9929 = vmatpush3.msra.mxu1 %v550_v14  ;;  %9951 = vmatprep.subr.mxu0 %v9116_v15  ;;  %v9146_v50 = vld [vmem:[%s12984_s2 + $0x178] sm:$0xff]  ;;  %v9129_v51 = vld [vmem:[%s12984_s2 + $0x108] sm:$0xff]  ;;  %v9145_v52 = vld [vmem:[%s12984_s2 + $0x170] sm:$0xff] }
  0x1a   : > { %9930 = vmatprep.subr.mxu1 %v549_v16  ;;  %9952 = vmatpush3.msra.mxu0 %v9116_v15  ;;  %v9128_v53 = vld [vmem:[%s12984_s2 + $0x100] sm:$0xff]  ;;  %v9144_v54 = vld [vmem:[%s12984_s2 + $0x168] sm:$0xff]  ;;  %v9127_v55 = vld [vmem:[%s12984_s2 + $0xf8] sm:$0xff] }
  0x1b   : > { %9931 = vmatpush3.msra.mxu1 %v549_v16  ;;  %9953 = vmatprep.subr.mxu0 %v9115_v17  ;;  %v9143_v56 = vld [vmem:[%s12984_s2 + $0x160] sm:$0xff]  ;;  %v9126_v57 = vld [vmem:[%s12984_s2 + $0xf0] sm:$0xff]  ;;  %v9142_v58 = vld [vmem:[%s12984_s2 + $0x158] sm:$0xff] }
  0x1c   : > { %9932 = vmatprep.subr.mxu1 %v548_v18  ;;  %9954 = vmatpush3.msra.mxu0 %v9115_v17  ;;  %v9125_v59 = vld [vmem:[%s12984_s2 + $0xe8] sm:$0xff]  ;;  %v9141_v60 = vld [vmem:[%s12984_s2 + $0x150] sm:$0xff]  ;;  %v9124_v61 = vld [vmem:[%s12984_s2 + $0xe0] sm:$0xff] }
  0x1d   : > { %9933 = vmatpush3.msra.mxu1 %v548_v18  ;;  %9955 = vmatprep.subr.mxu0 %v9114_v19  ;;  %v9140_v62 = vld [vmem:[%s12984_s2 + $0x148] sm:$0xff]  ;;  %v9123_v63 = vld [vmem:[%s12984_s2 + $0xd8] sm:$0xff]  ;;  %v9139_v0 = vld [vmem:[%s12984_s2 + $0x140] sm:$0xff] }
  0x1e   : > { %9934 = vmatprep.subr.mxu1 %v547_v20  ;;  %9956 = vmatpush3.msra.mxu0 %v9114_v19  ;;  %v9122_v1 = vld [vmem:[%s12984_s2 + $0xd0] sm:$0xff]  ;;  %v9138_v3 = vld [vmem:[%s12984_s2 + $0x138] sm:$0xff]  ;;  %v924_v19 = vld [vmem:[%s12985_s3] sm:$0xff] }
  0x1f   : > { %9935 = vmatpush3.msra.mxu1 %v547_v20  ;;  %9957 = vmatprep.subr.mxu0 %v9113_v21  ;;  %v9155_v20 = vld [vmem:[%s12985_s3 + $0x8] sm:$0xff] }
  0x20   : > { %9936 = vmatprep.subr.mxu1 %v546_v22  ;;  %9958 = vmatpush3.msra.mxu0 %v9113_v21  ;;  %v9160_v21 = vld [vmem:[%s12986_s4 + $0x38] sm:$0x1] }
  0x21   : > { %9937 = vmatpush3.msra.mxu1 %v546_v22  ;;  %9959 = vmatprep.subr.mxu0 %v9112_v23  ;;  %v1002_v22 = vld [vmem:[%s12986_s4 + $0x18] sm:$0x1] }
  0x22   : > { %9960 = vmatpush3.msra.mxu0 %v9112_v23  ;;  %9938 = vmatprep.subr.mxu1 %v545_v27  ;;  %v9159_v23 = vld [vmem:[%s12986_s4 + $0x30] sm:$0xff] }
  0x23   : > { %9961 = vmatprep.subr.mxu0 %v9111_v24  ;;  %9939 = vmatpush3.msra.mxu1 %v545_v27  ;;  %v9157_v27 = vld [vmem:[%s12986_s4 + $0x20] sm:$0xff] }
  0x24   : > { %9962 = vmatpush3.msra.mxu0 %v9111_v24  ;;  %9940 = vmatprep.subr.mxu1 %v544_v29  ;;  %v1001_v24 = vld [vmem:[%s12986_s4 + $0x10] sm:$0xff] }
  0x25   : > { %9963 = vmatprep.subr.mxu0 %v9110_v25  ;;  %9941 = vmatpush3.msra.mxu1 %v544_v29 }
  0x26   : > { %9964 = vmatpush3.msra.mxu0 %v9110_v25  ;;  %9942 = vmatprep.subr.mxu1 %v543_v31  ;;  %v9158_v25 = vld [vmem:[%s12986_s4 + $0x28] sm:$0xff] }
  0x27   : > { %9965 = vmatprep.subr.mxu0 %v9109_v26  ;;  %9943 = vmatpush3.msra.mxu1 %v543_v31  ;;  %v9170_v31 = vld [vmem:[%s12986_s4 + $0x58] sm:$0x1] }
  0x28   : > { %9966 = vmatpush3.msra.mxu0 %v9109_v26  ;;  %9976 = vmatprep.subr.msk.mxu1 %vm563_vm1, %v9134_v33  ;;  %v1000_v26 = vld [vmem:[%s12986_s4 + $0x8] sm:$0xff] }
  0x29   : > { %9967 = vmatprep.subr.mxu0 %v9108_v28 }
  0x2a   : > { %9968 = vmatpush3.msra.mxu0 %v9108_v28  ;;  %v999_v28 = vld [vmem:[%s12986_s4] sm:$0xff] }
  0x2b   : > { %9969 = vmatprep.subr.mxu0 %v9107_v30 }
  0x2c   : > { %9970 = vmatpush3.msra.mxu0 %v9107_v30 }
  0x2d   : > { %9971 = vmatprep.subr.mxu0 %v9106_v32 }
  0x2e   : > { %9972 = vmatpush3.msra.mxu0 %v9106_v32 }
  0x2f   : > { %10005 = vmatprep.subr.msk.mxu0 %vm563_vm1, %v9150_v34 }
  0x88   : > { %v448_v35 = vpop.permute.xlu0 %447 }
  0x8c   : > { %v453_v36 = vpop.permute.xlu0 %452 }
  0xd4   : > { %v9917_v37 = vpop.f32.mrf.mxu0 }
  0xd5   : > { %v538_v38 = vadd.f32 %v9917_v37, %v453_v36  ;;  %v9173_v36 = vld [vmem:[%s12985_s3 + $0x18] sm:$0xff]  ;;  %v9168_v37 = vld [vmem:[%s12986_s4 + $0x48] sm:$0xff] }
  0xd6   : > { %v532_v39 = vpop.f32.mrf.mxu0 }
  0xd7   : > { %v533_v40 = vadd.f32 %v532_v39, %v448_v35  ;;  %v10753_v42 = vmax.f32 %v538_v38, 0.0  ;;  %v9169_v35 = vld [vmem:[%s12986_s4 + $0x50] sm:$0xff]  ;;  %v9178_v38 = vld [vmem:[%s12986_s4 + $0x78] sm:$0x1]  ;;  %v9167_v39 = vld [vmem:[%s12986_s4 + $0x40] sm:$0xff] }
  0xd9   : > { %v541_v41 = vmax.f32 %v533_v40, 0.0  ;;  %v9177_v40 = vld [vmem:[%s12986_s4 + $0x70] sm:$0xff] }
  0xdb   : > { %9944 = vmatprep.mubr.msk.f32.mxu1 %vm556_vm3, %v541_v41  ;;  %9973 = vmatprep.mubr.msk.f32.mxu0 %vm556_vm3, %v541_v41 }
  0xdc   : > { %9945 = vmatmul.mubr.msk.f32.vlgmr.msra.gmra.mxu1 %vm556_vm3, %v10753_v42  ;;  %9974 = vmatmul.mubr.msk.f32.vlgmr.msra.gmra.mxu0 %vm556_vm3, %v10753_v42 }
  0xdd   : > { %9977 = vmatpush3.msk.msra.mxu1 %vm563_vm1, %v9134_v33  ;;  %10006 = vmatpush3.msk.msra.mxu0 %vm563_vm1, %v9150_v34  ;;  %v9165_v33 = vld [vmem:[%s12985_s3 + $0x10] sm:$0xff] }
  0xde   : > { %9978 = vmatprep.subr.mxu1 %v9133_v43  ;;  %10002 = vmatprep.mubr.msk.f32.mxu1 %vm556_vm3, %v541_v41 }
  0xdf   : > { %10007 = vmatprep.subr.mxu0 %v9149_v44  ;;  %10031 = vmatprep.mubr.msk.f32.mxu0 %vm556_vm3, %v541_v41  ;;  %v9176_v41 = vld [vmem:[%s12986_s4 + $0x68] sm:$0xff] }
  0xe0   : > { %9979 = vmatpush3.msra.mxu1 %v9133_v43  ;;  %10008 = vmatpush3.msra.mxu0 %v9149_v44 }
  0xe1   : > { %9980 = vmatprep.subr.mxu1 %v9132_v45  ;;  %10009 = vmatprep.subr.mxu0 %v9148_v46 }
  0xe2   : > { %9981 = vmatpush3.msra.mxu1 %v9132_v45  ;;  %10010 = vmatpush3.msra.mxu0 %v9148_v46 }
  0xe3   : > { %9982 = vmatprep.subr.mxu1 %v9131_v47  ;;  %10011 = vmatprep.subr.mxu0 %v9147_v48 }
  0xe4   : > { %9983 = vmatpush3.msra.mxu1 %v9131_v47  ;;  %10012 = vmatpush3.msra.mxu0 %v9147_v48 }
  0xe5   : > { %9984 = vmatprep.subr.mxu1 %v9130_v49  ;;  %10013 = vmatprep.subr.mxu0 %v9146_v50 }
  0xe6   : > { %9985 = vmatpush3.msra.mxu1 %v9130_v49  ;;  %10014 = vmatpush3.msra.mxu0 %v9146_v50  ;;  %v9181_v50 = vld [vmem:[%s12985_s3 + $0x20] sm:$0xff] }
  0xe7   : > { %9986 = vmatprep.subr.mxu1 %v9129_v51  ;;  %10015 = vmatprep.subr.mxu0 %v9145_v52 }
  0xe8   : > { %9987 = vmatpush3.msra.mxu1 %v9129_v51  ;;  %10016 = vmatpush3.msra.mxu0 %v9145_v52  ;;  %v9186_v52 = vld [vmem:[%s12986_s4 + $0x98] sm:$0x1] }
  0xe9   : > { %9988 = vmatprep.subr.mxu1 %v9128_v53  ;;  %10017 = vmatprep.subr.mxu0 %v9144_v54 }
  0xea   : > { %9989 = vmatpush3.msra.mxu1 %v9128_v53  ;;  %10018 = vmatpush3.msra.mxu0 %v9144_v54  ;;  %v9189_v53 = vld [vmem:[%s12985_s3 + $0x28] sm:$0xff] }
  0xeb   : > { %9990 = vmatprep.subr.mxu1 %v9127_v55  ;;  %10019 = vmatprep.subr.mxu0 %v9143_v56 }
  0xec   : > { %9991 = vmatpush3.msra.mxu1 %v9127_v55  ;;  %10020 = vmatpush3.msra.mxu0 %v9143_v56  ;;  %v9185_v55 = vld [vmem:[%s12986_s4 + $0x90] sm:$0xff]  ;;  %v9184_v56 = vld [vmem:[%s12986_s4 + $0x88] sm:$0xff] }
  0xed   : > { %9992 = vmatprep.subr.mxu1 %v9126_v57  ;;  %10021 = vmatprep.subr.mxu0 %v9142_v58 }
  0xee   : > { %9993 = vmatpush3.msra.mxu1 %v9126_v57  ;;  %10022 = vmatpush3.msra.mxu0 %v9142_v58  ;;  %v9194_v57 = vld [vmem:[%s12986_s4 + $0xb8] sm:$0x1]  ;;  %v9183_v58 = vld [vmem:[%s12986_s4 + $0x80] sm:$0xff] }
  0xef   : > { %9994 = vmatprep.subr.mxu1 %v9125_v59  ;;  %10023 = vmatprep.subr.mxu0 %v9141_v60 }
  0xf0   : > { %9995 = vmatpush3.msra.mxu1 %v9125_v59  ;;  %10024 = vmatpush3.msra.mxu0 %v9141_v60  ;;  %v9193_v59 = vld [vmem:[%s12986_s4 + $0xb0] sm:$0xff]  ;;  %v9192_v60 = vld [vmem:[%s12986_s4 + $0xa8] sm:$0xff] }
  0xf1   : > { %9996 = vmatprep.subr.mxu1 %v9124_v61  ;;  %10025 = vmatprep.subr.mxu0 %v9140_v62 }
  0xf2   : > { %9997 = vmatpush3.msra.mxu1 %v9124_v61  ;;  %10026 = vmatpush3.msra.mxu0 %v9140_v62  ;;  %v9191_v61 = vld [vmem:[%s12986_s4 + $0xa0] sm:$0xff] }
  0xf3   : > { %9998 = vmatprep.subr.mxu1 %v9123_v63  ;;  %10027 = vmatprep.subr.mxu0 %v9139_v0 }
  0xf4   : > { %9999 = vmatpush3.msra.mxu1 %v9123_v63  ;;  %10028 = vmatpush3.msra.mxu0 %v9139_v0 }
  0xf5   : > { %10000 = vmatprep.subr.mxu1 %v9122_v1  ;;  %10029 = vmatprep.subr.mxu0 %v9138_v3 }
  0xf6   : > { %10001 = vmatpush3.msra.mxu1 %v9122_v1  ;;  %10030 = vmatpush3.msra.mxu0 %v9138_v3 }
  0xf7   : > { %10003 = vmatmul.mubr.msk.f32.vlgmr.msra.gmra.mxu1 %vm556_vm3, %v10753_v42  ;;  %10032 = vmatmul.mubr.msk.f32.vlgmr.msra.gmra.mxu0 %vm556_vm3, %v10753_v42  ;;  %v9175_v42 = vld [vmem:[%s12986_s4 + $0x60] sm:$0xff] }
  0xf8   : > { %10034 = vmatprep.subr.mxu1 %v10553_v4  ;;  %10041 = vmatprep.subr.mxu0 %v10553_v4 }
  0xf9   : > { %10038 = vmatprep.mubr.msk.f32.mxu1 %vm10554_vm4, %v10553_v4  ;;  %10045 = vmatprep.mubr.msk.f32.mxu0 %vm10554_vm4, %v10553_v4 }
 0x19c   : > { %v9946_v5 = vpop.f32.mrf.mxu1  ;;  %v9975_v6 = vpop.f32.mrf.mxu0 }
 0x19d   : > { %v735_v9 = vmax.f32 %v9946_v5, %v9975_v6 }
 0x19e   : > { %v633_v7 = vpop.f32.mrf.mxu1  ;;  %v725_v8 = vpop.f32.mrf.mxu0 }
 0x19f   : > { %v734_v12 = vmax.f32 %v633_v7, %v725_v8  ;;  %v9197_v8 = vld [vmem:[%s12985_s3 + $0x30] sm:$0xff] }
 0x1b7   : > { %v10004_v10 = vpop.f32.mrf.mxu1  ;;  %v10033_v11 = vpop.f32.mrf.mxu0 }
 0x1b8   : > { %v829_v13 = vmax.f32 %v735_v9, %v10004_v10  ;;  %v9202_v10 = vld [vmem:[%s12986_s4 + $0xd8] sm:$0x1] }
 0x1b9   : > { %v819_v14 = vpop.f32.mrf.mxu1  ;;  %v913_v17 = vpop.f32.mrf.mxu0 }
 0x1ba   : > { %v10847_v15 = vmax.f32 %v829_v13, %v10033_v11  ;;  %v828_v16 = vmax.f32 %v734_v12, %v819_v14  ;;  %v9205_v11 = vld [vmem:[%s12985_s3 + $0x38] sm:$0xff]  ;;  %v9201_v13 = vld [vmem:[%s12986_s4 + $0xd0] sm:$0xff]  ;;  %v9200_v14 = vld [vmem:[%s12986_s4 + $0xc8] sm:$0xff] }
 0x1bc   : > { %v10849_v18 = vmax.f32 %v828_v16, %v913_v17  ;;  %10035 = vmatpush3.msra.mxu1 %v10847_v15  ;;  %10042 = vmatpush3.msra.mxu0 %v10847_v15  ;;  %v9210_v16 = vld [vmem:[%s12986_s4 + $0xf8] sm:$0x1]  ;;  %v9199_v17 = vld [vmem:[%s12986_s4 + $0xc0] sm:$0xff] }
 0x1bd   : > { %10036 = vmatprep.subr.mxu1 %v10553_v4  ;;  %10043 = vmatprep.subr.mxu0 %v10553_v4 }
 0x1be   : > { %10037 = vmatpush3.msra.mxu1 %v10849_v18  ;;  %10044 = vmatpush3.msra.mxu0 %v10849_v18 }
 0x1bf   : > { %10039 = vmatmul.mubr.msk.f32.vlgmr.msra.gmra.mxu1 %vm925_vm5, %v924_v19  ;;  %10046 = vmatmul.mubr.msk.f32.vlgmr.msra.gmra.mxu0 %vm925_vm5, %v9155_v20  ;;  %v9209_v19 = vld [vmem:[%s12986_s4 + $0xf0] sm:$0xff]  ;;  %v9208_v20 = vld [vmem:[%s12986_s4 + $0xe8] sm:$0xff] }
 0x1c0   : > { %10048 = vmatprep.subr.mxu1 %v10553_v4  ;;  %10059 = vmatprep.subr.mxu0 %v10553_v4 }
 0x1c1   : > { %10049 = vmatpush3.msk.msra.mxu1 %vm462_vm2, %v9160_v21  ;;  %10060 = vmatpush3.msk.msra.mxu0 %vm462_vm2, %v1002_v22  ;;  %v9207_v21 = vld [vmem:[%s12986_s4 + $0xe0] sm:$0xff] }
 0x1c2   : > { %10050 = vmatprep.subr.mxu1 %v10553_v4  ;;  %10061 = vmatprep.subr.mxu0 %v10553_v4 }
 0x1c3   : > { %10051 = vmatpush3.msra.mxu1 %v9159_v23  ;;  %10062 = vmatpush3.msra.mxu0 %v1001_v24 }
 0x1c4   : > { %10052 = vmatprep.subr.mxu1 %v10553_v4  ;;  %10063 = vmatprep.subr.mxu0 %v10553_v4 }
 0x1c5   : > { %10053 = vmatpush3.msra.mxu1 %v9158_v25  ;;  %10064 = vmatpush3.msra.mxu0 %v1000_v26 }
 0x1c6   : > { %10054 = vmatprep.subr.mxu1 %v10553_v4  ;;  %10065 = vmatprep.subr.mxu0 %v10553_v4 }
 0x1c7   : > { %10055 = vmatpush3.msra.mxu1 %v9157_v27  ;;  %10056 = vmatprep.mubr.msk.f32.mxu1 %vm10554_vm4, %v10553_v4 }
 0x1c8   : > { %10067 = vmatprep.mubr.msk.f32.mxu0 %vm10554_vm4, %v10553_v4  ;;  %10070 = vmatprep.subr.mxu1 %v10553_v4 }
 0x1c9   : > { %10066 = vmatpush3.msra.mxu0 %v999_v28 }
 0x1ca   : > { %10077 = vmatprep.subr.mxu0 %v10553_v4 }
 0x27f   : > { %v995_v29 = vpop.f32.mrf.mxu1  ;;  %v1074_v30 = vpop.f32.mrf.mxu0 }
 0x280   : > { %10057 = vmatmul.mubr.msk.f32.vlgmr.msra.gmra.mxu1 %vm1083_vm6, %v1074_v30  ;;  %10068 = vmatmul.mubr.msk.f32.vlgmr.msra.gmra.mxu0 %vm1083_vm6, %v995_v29  ;;  %v9213_v30 = vld [vmem:[%s12985_s3 + $0x40] sm:$0xff] }
 0x281   : > { %10071 = vmatpush3.msra.mxu1 %v10847_v15  ;;  %v10047_v32 = vpop.f32.mrf.mxu0  ;;  %10074 = vmatprep.mubr.msk.f32.mxu1 %vm10554_vm4, %v10553_v4  ;;  %v10040_v34 = vpop.f32.mrf.mxu1 }
 0x282   : > { %10072 = vmatprep.subr.mxu1 %v10553_v4  ;;  %10078 = vmatpush3.msk.msra.mxu0 %vm462_vm2, %v9170_v31  ;;  %v9218_v32 = vld [vmem:[%s12986_s4 + $0x118] sm:$0x1]  ;;  %v9215_v34 = vld [vmem:[%s12986_s4 + $0x100] sm:$0xff] }
 0x283   : > { %10073 = vmatpush3.msra.mxu1 %v10849_v18  ;;  %10079 = vmatprep.subr.mxu0 %v10553_v4 }
 0x284   : > { %10088 = vmatprep.subr.mxu1 %v10553_v4  ;;  %10075 = vmatmul.mubr.msk.f32.vlgmr.msra.gmra.mxu1 %vm925_vm5, %v9165_v33  ;;  %v9216_v33 = vld [vmem:[%s12986_s4 + $0x108] sm:$0xff] }
 0x285   : > { %10089 = vmatpush3.msra.mxu1 %v10847_v15  ;;  %10092 = vmatprep.mubr.msk.f32.mxu1 %vm10554_vm4, %v10553_v4 }
 0x286   : > { %10090 = vmatprep.subr.mxu1 %v10553_v4  ;;  %10080 = vmatpush3.msra.mxu0 %v9169_v35  ;;  %v10555_v35 = vmov 1  }
 0x287   : > { %10091 = vmatpush3.msra.mxu1 %v10849_v18  ;;  %10081 = vmatprep.subr.mxu0 %v10553_v4 }
 0x288   : > { %10093 = vmatmul.mubr.msk.f32.vlgmr.msra.gmra.mxu1 %vm925_vm5, %v9173_v36  ;;  %10095 = vmatprep.subr.mxu1 %v10553_v4 }
 0x289   : > { %10085 = vmatprep.mubr.msk.f32.mxu0 %vm10554_vm4, %v10553_v4  ;;  %10103 = vmatprep.mubr.msk.f32.mxu1 %vm10554_vm4, %v10553_v4 }
 0x28a   : > { %10082 = vmatpush3.msra.mxu0 %v9168_v37  ;;  %10096 = vmatpush3.msk.msra.mxu1 %vm462_vm2, %v9178_v38 }
 0x28b   : > { %10083 = vmatprep.subr.mxu0 %v10553_v4  ;;  %10097 = vmatprep.subr.mxu1 %v10553_v4 }
 0x28c   : > { %10084 = vmatpush3.msra.mxu0 %v9167_v39  ;;  %10098 = vmatpush3.msra.mxu1 %v9177_v40 }
 0x28d   : > { %10099 = vmatprep.subr.mxu1 %v10553_v4  ;;  %10106 = vmatprep.subr.mxu0 %v10553_v4 }
 0x28e   : > { %10100 = vmatpush3.msra.mxu1 %v9176_v41  ;;  %10507 = vset.pattern.permute.xlu1 %v10555_v35 }
 0x28f   : > { %10101 = vmatprep.subr.mxu1 %v10553_v4  ;;  %2336 = vperm.xlu1 %10507, %v10645_v2   ;;  %v9228_v2 = vld [vmem:[%s12987_s5 + $0x28] sm:$0x1] }
 0x290   : > { %10102 = vmatpush3.msra.mxu1 %v9175_v42 }
 0x291   : > { %10124 = vmatprep.subr.mxu1 %v10553_v4 }
 0x340   : > { %v1156_v43 = vpop.f32.mrf.mxu1  ;;  %v1232_v44 = vpop.f32.mrf.mxu0 }
 0x341   : > { %v1233_v45 = vadd.f32 %v1232_v44, %v1156_v43  ;;  %v2342_v44 = vld [vmem:[%s12987_s5 + $0x8] sm:$0x1] }
 0x342   : > { %v10058_v46 = vpop.f32.mrf.mxu1  ;;  %v10069_v47 = vpop.f32.mrf.mxu0 }
 0x343   : > { %v9227_v46 = vld [vmem:[%s12987_s5 + $0x20] sm:$0xff] }
 0x344   : > { %v1307_v48 = vpop.f32.mrf.mxu1 }
 0x345   : > { %10086 = vmatmul.mubr.msk.f32.vlgmr.msra.gmra.mxu0 %vm1083_vm6, %v1307_v48  ;;  %v2337_v48 = vpop.permute.xlu1 %2336 }
 0x346   : > { %10107 = vmatpush3.msra.mxu0 %v10847_v15  ;;  %v10076_v49 = vpop.f32.mrf.mxu1  ;;  %10110 = vmatprep.mubr.msk.f32.mxu0 %vm10554_vm4, %v10553_v4 }
 0x347   : > { %10108 = vmatprep.subr.mxu0 %v10553_v4 }
 0x348   : > { %10109 = vmatpush3.msra.mxu0 %v10849_v18  ;;  %v1464_v51 = vpop.f32.mrf.mxu1 }
 0x349   : > { %10104 = vmatmul.mubr.msk.f32.vlgmr.msra.gmra.mxu1 %vm1083_vm6, %v1464_v51  ;;  %10111 = vmatmul.mubr.msk.f32.vlgmr.msra.gmra.mxu0 %vm925_vm5, %v9181_v50 }
 0x34a   : > { %10125 = vmatpush3.msra.mxu1 %v10847_v15  ;;  %10128 = vmatprep.mubr.msk.f32.mxu1 %vm10554_vm4, %v10553_v4  ;;  %v10094_v54 = vpop.f32.mrf.mxu1 }
 0x34b   : > { %10126 = vmatprep.subr.mxu1 %v10553_v4  ;;  %10113 = vmatprep.subr.mxu0 %v10553_v4  ;;  %v9223_v54 = vld [vmem:[%s12987_s5 + $0x10] sm:$0xff] }
 0x34c   : > { %10127 = vmatpush3.msra.mxu1 %v10849_v18  ;;  %10114 = vmatpush3.msk.msra.mxu0 %vm462_vm2, %v9186_v52 }
 0x34d   : > { %10129 = vmatmul.mubr.msk.f32.vlgmr.msra.gmra.mxu1 %vm925_vm5, %v9189_v53  ;;  %10115 = vmatprep.subr.mxu0 %v10553_v4  ;;  %v9224_v53 = vld [vmem:[%s12987_s5 + $0x18] sm:$0x1] }
 0x34e   : > { %10116 = vmatpush3.msra.mxu0 %v9185_v55  ;;  %10131 = vmatprep.subr.mxu1 %v10553_v4  ;;  %v9232_v55 = vld [vmem:[%s12987_s5 + $0x38] sm:$0x1] }
 0x34f   : > { %10117 = vmatprep.subr.mxu0 %v10553_v4  ;;  %10121 = vmatprep.mubr.msk.f32.mxu0 %vm10554_vm4, %v10553_v4 }
 0x350   : > { %10139 = vmatprep.mubr.msk.f32.mxu1 %vm10554_vm4, %v10553_v4  ;;  %10118 = vmatpush3.msra.mxu0 %v9184_v56  ;;  %v9231_v56 = vld [vmem:[%s12987_s5 + $0x30] sm:$0xff] }
 0x351   : > { %10132 = vmatpush3.msk.msra.mxu1 %vm462_vm2, %v9194_v57  ;;  %10119 = vmatprep.subr.mxu0 %v10553_v4  ;;  %v2650_v57 = vld [vmem:[%s12988_s6] sm:$0xff] }
 0x352   : > { %10133 = vmatprep.subr.mxu1 %v10553_v4  ;;  %10120 = vmatpush3.msra.mxu0 %v9183_v58  ;;  %v9237_v58 = vld [vmem:[%s12988_s6 + $0x10] sm:$0xff] }
 0x353   : > { %10134 = vmatpush3.msra.mxu1 %v9193_v59  ;;  %10142 = vmatprep.subr.mxu0 %v10553_v4 }
 0x354   : > { %10135 = vmatprep.subr.mxu1 %v10553_v4 }
 0x355   : > { %10136 = vmatpush3.msra.mxu1 %v9192_v60 }
 0x356   : > { %10137 = vmatprep.subr.mxu1 %v10553_v4 }
 0x357   : > { %10138 = vmatpush3.msra.mxu1 %v9191_v61 }
 0x358   : > { %10160 = vmatprep.subr.mxu1 %v10553_v4 }
 0x405   : > { %v1388_v62 = vpop.f32.mrf.mxu0 }
 0x406   : > { %v1392_v63 = vadd.f32 %v1388_v62, %v1233_v45  ;;  %v2341_v45 = vld [vmem:[%s12987_s5] sm:$0xff] }
 0x407   : > { %v10087_v0 = vpop.f32.mrf.mxu0 }
 0x409   : > { %v1545_v1 = vpop.f32.mrf.mxu1  ;;  %v1621_v3 = vpop.f32.mrf.mxu0 }
 0x40a   : > { %v1549_v5 = vadd.f32 %v1545_v1, %v1392_v63  ;;  %10122 = vmatmul.mubr.msk.f32.vlgmr.msra.gmra.mxu0 %vm1083_vm6, %v1621_v3 }
 0x40b   : > { %10143 = vmatpush3.msra.mxu0 %v10847_v15  ;;  %v10105_v6 = vpop.f32.mrf.mxu1  ;;  %v10112_v7 = vpop.f32.mrf.mxu0  ;;  %10146 = vmatprep.mubr.msk.f32.mxu0 %vm10554_vm4, %v10553_v4 }
 0x40c   : > { %10144 = vmatprep.subr.mxu0 %v10553_v4 }
 0x40d   : > { %10145 = vmatpush3.msra.mxu0 %v10849_v18  ;;  %v1778_v9 = vpop.f32.mrf.mxu1 }
 0x40e   : > { %10140 = vmatmul.mubr.msk.f32.vlgmr.msra.gmra.mxu1 %vm1083_vm6, %v1778_v9  ;;  %10147 = vmatmul.mubr.msk.f32.vlgmr.msra.gmra.mxu0 %vm925_vm5, %v9197_v8  ;;  %v2651_v8 = vld [vmem:[%s12988_s6 + $0x8] sm:$0xff]  ;;  %v9238_v9 = vld [vmem:[%s12988_s6 + $0x18] sm:$0xff] }
 0x40f   : > { %10161 = vmatpush3.msra.mxu1 %v10847_v15  ;;  %10164 = vmatprep.mubr.msk.f32.mxu1 %vm10554_vm4, %v10553_v4  ;;  %v10130_v12 = vpop.f32.mrf.mxu1 }
 0x410   : > { %10162 = vmatprep.subr.mxu1 %v10553_v4  ;;  %10149 = vmatprep.subr.mxu0 %v10553_v4 }
 0x411   : > { %10163 = vmatpush3.msra.mxu1 %v10849_v18  ;;  %10150 = vmatpush3.msk.msra.mxu0 %vm462_vm2, %v9202_v10  ;;  %v9241_v10 = vld [vmem:[%s12989_s7 + $0x4] sm:$0xf] }
 0x412   : > { %10165 = vmatmul.mubr.msk.f32.vlgmr.msra.gmra.mxu1 %vm925_vm5, %v9205_v11  ;;  %10151 = vmatprep.subr.mxu0 %v10553_v4  ;;  %v2734_v11 = vld [vmem:[%s12989_s7] sm:$0xf] }
 0x413   : > { %10152 = vmatpush3.msra.mxu0 %v9201_v13  ;;  %10167 = vmatprep.subr.mxu1 %v10553_v4 }
 0x414   : > { %10153 = vmatprep.subr.mxu0 %v10553_v4  ;;  %10157 = vmatprep.mubr.msk.f32.mxu0 %vm10554_vm4, %v10553_v4 }
 0x415   : > { %10175 = vmatprep.mubr.msk.f32.mxu1 %vm10554_vm4, %v10553_v4  ;;  %10154 = vmatpush3.msra.mxu0 %v9200_v14 }
 0x416   : > { %10155 = vmatprep.subr.mxu0 %v10553_v4  ;;  %10168 = vmatpush3.msk.msra.mxu1 %vm462_vm2, %v9210_v16 }
 0x417   : > { %10156 = vmatpush3.msra.mxu0 %v9199_v17  ;;  %10169 = vmatprep.subr.mxu1 %v10553_v4  ;;  %v9248_v17 = vld [vmem:[%s12988_s6 + $0x20] sm:$0xff] }
 0x418   : > { %10170 = vmatpush3.msra.mxu1 %v9209_v19  ;;  %10178 = vmatprep.subr.mxu0 %v10553_v4  ;;  %v9249_v19 = vld [vmem:[%s12988_s6 + $0x28] sm:$0xff] }
 0x419   : > { %10171 = vmatprep.subr.mxu1 %v10553_v4 }
 0x41a   : > { %10172 = vmatpush3.msra.mxu1 %v9208_v20  ;;  %v9256_v20 = vld [vmem:[%s12988_s6 + $0x30] sm:$0xff] }
 0x41b   : > { %10173 = vmatprep.subr.mxu1 %v10553_v4 }
 0x41c   : > { %10174 = vmatpush3.msra.mxu1 %v9207_v21  ;;  %v9257_v21 = vld [vmem:[%s12988_s6 + $0x38] sm:$0xff] }
 0x41d   : > { %10196 = vmatprep.subr.mxu1 %v10553_v4 }
 0x4ca   : > { %v1702_v22 = vpop.f32.mrf.mxu0 }
 0x4cb   : > { %v1706_v23 = vadd.f32 %v1702_v22, %v1549_v5  ;;  %v9264_v22 = vld [vmem:[%s12988_s6 + $0x40] sm:$0xff] }
 0x4cc   : > { %v10123_v24 = vpop.f32.mrf.mxu0 }
 0x4cd   : > { %v9272_v24 = vld [vmem:[%s12988_s6 + $0x50] sm:$0xff] }
 0x4ce   : > { %v1859_v25 = vpop.f32.mrf.mxu1  ;;  %v1935_v26 = vpop.f32.mrf.mxu0 }
 0x4cf   : > { %v1863_v27 = vadd.f32 %v1859_v25, %v1706_v23  ;;  %10158 = vmatmul.mubr.msk.f32.vlgmr.msra.gmra.mxu0 %vm1083_vm6, %v1935_v26  ;;  %v9265_v23 = vld [vmem:[%s12988_s6 + $0x48] sm:$0xff]  ;;  %v9273_v25 = vld [vmem:[%s12988_s6 + $0x58] sm:$0xff]  ;;  %v9280_v26 = vld [vmem:[%s12988_s6 + $0x60] sm:$0xff] }
 0x4d0   : > { %10179 = vmatpush3.msra.mxu0 %v10847_v15  ;;  %v10141_v28 = vpop.f32.mrf.mxu1  ;;  %v10148_v29 = vpop.f32.mrf.mxu0  ;;  %10182 = vmatprep.mubr.msk.f32.mxu0 %vm10554_vm4, %v10553_v4 }
 0x4d1   : > { %10180 = vmatprep.subr.mxu0 %v10553_v4  ;;  %v9288_v28 = vld [vmem:[%s12988_s6 + $0x70] sm:$0xff]  ;;  %v9289_v29 = vld [vmem:[%s12988_s6 + $0x78] sm:$0xff] }
 0x4d2   : > { %10181 = vmatpush3.msra.mxu0 %v10849_v18  ;;  %v2092_v31 = vpop.f32.mrf.mxu1  ;;  %v9217_v18 = vld [vmem:[%s12986_s4 + $0x110] sm:$0xff] }
 0x4d3   : > { %10176 = vmatmul.mubr.msk.f32.vlgmr.msra.gmra.mxu1 %vm1083_vm6, %v2092_v31  ;;  %10183 = vmatmul.mubr.msk.f32.vlgmr.msra.gmra.mxu0 %vm925_vm5, %v9213_v30  ;;  %v9296_v30 = vld [vmem:[%s12988_s6 + $0x80] sm:$0xff]  ;;  %v9297_v31 = vld [vmem:[%s12988_s6 + $0x88] sm:$0xff] }
 0x4d4   : > { %10185 = vmatprep.subr.mxu0 %v10553_v4  ;;  %v10166_v15 = vpop.f32.mrf.mxu1  ;;  %10193 = vmatprep.mubr.msk.f32.mxu0 %vm10554_vm4, %v10553_v4 }
 0x4d5   : > { %10186 = vmatpush3.msk.msra.mxu0 %vm462_vm2, %v9218_v32  ;;  %10200 = vmatprep.mubr.msk.f32.mxu1 %vm10554_vm4, %v10553_v4  ;;  %v9252_v32 = vld [vmem:[%s12989_s7 + $0x8] sm:$0xf]  ;;  %v9260_v15 = vld [vmem:[%s12989_s7 + $0xc] sm:$0xf] }
 0x4d6   : > { %10187 = vmatprep.subr.mxu0 %v10553_v4  ;;  %10197 = vmatpush3.msk.msra.mxu1 %vm462_vm2, %v2342_v44 }
 0x4d7   : > { %10188 = vmatpush3.msra.mxu0 %v9217_v18  ;;  %10198 = vmatprep.subr.mxu1 %v10553_v4  ;;  %v10556_v18 = vmov 2  }
 0x4d8   : > { %10189 = vmatprep.subr.mxu0 %v10553_v4  ;;  %10199 = vmatpush3.msra.mxu1 %v2341_v45 }
 0x4d9   : > { %10190 = vmatpush3.msra.mxu0 %v9216_v33  ;;  %10203 = vmatprep.subr.mxu1 %v10553_v4  ;;  %v10541_v33 = vld [vmem:[%s12994_s12 + $0x8] sm:$0xff] }
 0x4da   : > { %10191 = vmatprep.subr.mxu0 %v10553_v4  ;;  %10508 = vset.pattern.permute.xlu1 %v10556_v18 }
 0x4db   : > { %10192 = vmatpush3.msra.mxu0 %v9215_v34  ;;  %10509 = vset.pattern.permute.xlu0 %v10556_v18  ;;  %v10542_v34 = vld [vmem:[%s12994_s12] sm:$0xff] }
 0x4dc   : > { %10210 = vmatprep.subr.mxu0 %v10553_v4  ;;  %4199 = vperm.xlu1 %10508, %v10541_v33   ;;  %v4206_v18 = vld [vmem:[%s12990_s8] sm:$0xff]  ;;  %v9314_v33 = vld [vmem:[%s12991_s9 + $0x78] sm:$0x1] }
 0x4dd   : > { %4195 = vperm.xlu0 %10509, %v10542_v34   ;;  %v4287_v34 = vld [vmem:[%s12991_s9 + $0x38] sm:$0x1] }
 0x58f   : > { %v2016_v36 = vpop.f32.mrf.mxu0 }
 0x590   : > { %v2020_v37 = vadd.f32 %v2016_v36, %v1863_v27  ;;  %v9281_v27 = vld [vmem:[%s12988_s6 + $0x68] sm:$0xff] }
 0x591   : > { %v10159_v38 = vpop.f32.mrf.mxu0 }
 0x593   : > { %v2173_v39 = vpop.f32.mrf.mxu1  ;;  %v2249_v40 = vpop.f32.mrf.mxu0 }
 0x594   : > { %v2177_v41 = vadd.f32 %v2173_v39, %v2020_v37  ;;  %10194 = vmatmul.mubr.msk.f32.vlgmr.msra.gmra.mxu0 %vm1083_vm6, %v2249_v40  ;;  %v9268_v39 = vld [vmem:[%s12989_s7 + $0x10] sm:$0xf] }
 0x595   : > { %v10184_v42 = vpop.f32.mrf.mxu0  ;;  %v10177_v43 = vpop.f32.mrf.mxu1  ;;  %10214 = vmatprep.mubr.msk.f32.mxu0 %vm10554_vm4, %v10553_v4  ;;  %10211 = vmatpush3.msk.msra.mxu0 %vm462_vm2, %v9228_v2  ;;  %v9284_v2 = vld [vmem:[%s12989_s7 + $0x18] sm:$0xf] }
 0x596   : > { %10212 = vmatprep.subr.mxu0 %v10553_v4  ;;  %v9276_v42 = vld [vmem:[%s12989_s7 + $0x14] sm:$0xf] }
 0x597   : > { %10213 = vmatpush3.msra.mxu0 %v9227_v46 }
 0x654   : > { %v2330_v47 = vpop.f32.mrf.mxu0 }
 0x655   : > { %v2334_v49 = vadd.f32 %v2330_v47, %v2177_v41  ;;  %v9292_v47 = vld [vmem:[%s12989_s7 + $0x1c] sm:$0xf] }
 0x656   : > { %v10195_v50 = vpop.f32.mrf.mxu0 }
 0x657   : > { %v2339_v51 = vadd.f32 %v2337_v48, %v2334_v49  ;;  %v9300_v50 = vld [vmem:[%s12989_s7 + $0x20] sm:$0xf] }
 0x659   : > { %v2340_v52 = vmax.f32 %v2339_v51, 0.0 }
 0x65b   : > { %10201 = vmatmul.mubr.msk.f32.vlgmr.msra.gmra.mxu1 %vm455_vm0, %v2340_v52  ;;  %10215 = vmatmul.mubr.msk.f32.vlgmr.msra.gmra.mxu0 %vm455_vm0, %v2340_v52 }
 0x65c   : > { %10204 = vmatpush3.msk.msra.mxu1 %vm462_vm2, %v9224_v53  ;;  %10207 = vmatprep.mubr.msk.f32.mxu1 %vm10554_vm4, %v10553_v4 }
 0x65d   : > { %10205 = vmatprep.subr.mxu1 %v10553_v4  ;;  %10226 = vmatprep.mubr.msk.f32.mxu0 %vm2652_vm7, %v2650_v57 }
 0x65e   : > { %10206 = vmatpush3.msra.mxu1 %v9223_v54 }
 0x65f   : > { %10208 = vmatmul.mubr.msk.f32.vlgmr.msra.gmra.mxu1 %vm455_vm0, %v2340_v52  ;;  %10217 = vmatprep.subr.mxu1 %v10553_v4 }
 0x660   : > { %10218 = vmatpush3.msk.msra.mxu1 %vm462_vm2, %v9232_v55  ;;  %10221 = vmatprep.mubr.msk.f32.mxu1 %vm10554_vm4, %v10553_v4 }
 0x661   : > { %10219 = vmatprep.subr.mxu1 %v10553_v4 }
 0x662   : > { %10220 = vmatpush3.msra.mxu1 %v9231_v56 }
 0x663   : > { %10222 = vmatmul.mubr.msk.f32.vlgmr.msra.gmra.mxu1 %vm455_vm0, %v2340_v52 }
 0x664   : > { %10231 = vmatprep.mubr.msk.f32.mxu1 %vm2652_vm7, %v9237_v58 }
 0x71b   : > { %v2415_v59 = vpop.f32.mrf.mxu1  ;;  %v2568_v60 = vpop.f32.mrf.mxu0 }
 0x71d   : > { %v10202_v61 = vpop.f32.mrf.mxu1  ;;  %v10216_v62 = vpop.f32.mrf.mxu0 }
 0x71f   : > { %v2491_v63 = vpop.f32.mrf.mxu1 }
 0x720   : > { %v2495_v0 = vmax.f32 %v2415_v59, %v2491_v63 }
 0x721   : > { %v10209_v1 = vpop.f32.mrf.mxu1 }
 0x722   : > { %v2572_v3 = vmax.f32 %v2495_v0, %v2568_v60 }
 0x723   : > { %v2645_v5 = vpop.f32.mrf.mxu1 }
 0x724   : > { %v11172_v6 = vmax.f32 %v2572_v3, %v2645_v5 }
 0x725   : > { %v10223_v7 = vpop.f32.mrf.mxu1 }
 0x726   : > { %10224 = vmatprep.subr.mxu0 %v11172_v6  ;;  %10229 = vmatprep.subr.mxu1 %v11172_v6 }
 0x727   : > { %10225 = vmatpush3.msra.mxu0 %v11172_v6  ;;  %10230 = vmatpush3.msra.mxu1 %v11172_v6 }
 0x728   : > { %10227 = vmatmul.mubr.msk.f32.vlgmr.msra.gmra.mxu0 %vm2652_vm7, %v2651_v8  ;;  %10232 = vmatmul.mubr.msk.f32.vlgmr.msra.gmra.mxu1 %vm2652_vm7, %v9238_v9 }
 0x729   : > { %10234 = vmatprep.subr.msk.mxu0 %vm563_vm1, %v9241_v10  ;;  %10239 = vmatprep.subr.msk.mxu1 %vm563_vm1, %v2734_v11 }
 0x72a   : > { %10235 = vmatpush3.msk.msra.mxu0 %vm563_vm1, %v9241_v10  ;;  %10240 = vmatpush3.msk.msra.mxu1 %vm563_vm1, %v2734_v11 }
 0x72b   : > { %10244 = vmatprep.subr.mxu0 %v11172_v6  ;;  %10249 = vmatprep.subr.msk.mxu1 %vm563_vm1, %v9252_v32 }
 0x7e8   : > { %v10228_v12 = vpop.f32.mrf.mxu0  ;;  %v10233_v13 = vpop.f32.mrf.mxu1 }
 0x7ea   : > { %v2725_v14 = vpop.f32.mrf.mxu0  ;;  %v2810_v16 = vpop.f32.mrf.mxu1 }
 0x7eb   : > { %10236 = vmatprep.mubr.msk.f32.mxu0 %vm2821_vm8, %v2810_v16  ;;  %10241 = vmatprep.mubr.msk.f32.mxu1 %vm2821_vm8, %v2725_v14 }
 0x7ec   : > { %10237 = vmatmul.mubr.msk.f32.vlgmr.msra.gmra.mxu0 %vm2821_vm8, %v10233_v13  ;;  %10242 = vmatmul.mubr.msk.f32.vlgmr.msra.gmra.mxu1 %vm2821_vm8, %v10228_v12 }
 0x7ed   : > { %10245 = vmatpush3.msra.mxu0 %v11172_v6  ;;  %10246 = vmatprep.mubr.msk.f32.mxu0 %vm2652_vm7, %v9248_v17 }
 0x7ee   : > { %10254 = vmatprep.subr.mxu0 %v11172_v6  ;;  %10250 = vmatpush3.msk.msra.mxu1 %vm563_vm1, %v9252_v32 }
 0x7ef   : > { %10259 = vmatprep.subr.msk.mxu1 %vm563_vm1, %v9260_v15 }
 0x7f0   : > { %10247 = vmatmul.mubr.msk.f32.vlgmr.msra.gmra.mxu0 %vm2652_vm7, %v9249_v19 }
 0x7f1   : > { %10255 = vmatpush3.msra.mxu0 %v11172_v6  ;;  %10256 = vmatprep.mubr.msk.f32.mxu0 %vm2652_vm7, %v9256_v20 }
 0x7f2   : > { %10264 = vmatprep.subr.mxu0 %v11172_v6 }
 0x7f4   : > { %10257 = vmatmul.mubr.msk.f32.vlgmr.msra.gmra.mxu0 %vm2652_vm7, %v9257_v21 }
 0x7f5   : > { %10265 = vmatpush3.msra.mxu0 %v11172_v6  ;;  %10266 = vmatprep.mubr.msk.f32.mxu0 %vm2652_vm7, %v9264_v22 }
 0x7f6   : > { %10274 = vmatprep.subr.mxu0 %v11172_v6 }
 0x7f8   : > { %10267 = vmatmul.mubr.msk.f32.vlgmr.msra.gmra.mxu0 %vm2652_vm7, %v9265_v23  ;;  %v4200_v23 = vpop.permute.xlu1 %4199 }
 0x7f9   : > { %10275 = vmatpush3.msra.mxu0 %v11172_v6  ;;  %10276 = vmatprep.mubr.msk.f32.mxu0 %vm2652_vm7, %v9272_v24 }
 0x7fa   : > { %10284 = vmatprep.subr.mxu0 %v11172_v6 }
 0x7fc   : > { %10277 = vmatmul.mubr.msk.f32.vlgmr.msra.gmra.mxu0 %vm2652_vm7, %v9273_v25 }
 0x7fd   : > { %10285 = vmatpush3.msra.mxu0 %v11172_v6  ;;  %10286 = vmatprep.mubr.msk.f32.mxu0 %vm2652_vm7, %v9280_v26 }
 0x7fe   : > { %10294 = vmatprep.subr.mxu0 %v11172_v6 }
 0x800   : > { %10287 = vmatmul.mubr.msk.f32.vlgmr.msra.gmra.mxu0 %vm2652_vm7, %v9281_v27  ;;  %v4196_v27 = vpop.permute.xlu0 %4195 }
 0x801   : > { %10295 = vmatpush3.msra.mxu0 %v11172_v6  ;;  %10296 = vmatprep.mubr.msk.f32.mxu0 %vm2652_vm7, %v9288_v28 }
 0x802   : > { %10304 = vmatprep.subr.mxu0 %v11172_v6 }
 0x804   : > { %10297 = vmatmul.mubr.msk.f32.vlgmr.msra.gmra.mxu0 %vm2652_vm7, %v9289_v29 }
 0x805   : > { %10305 = vmatpush3.msra.mxu0 %v11172_v6  ;;  %10306 = vmatprep.mubr.msk.f32.mxu0 %vm2652_vm7, %v9296_v30 }
 0x806   : > { %10314 = vmatprep.subr.mxu0 %v10553_v4 }
 0x808   : > { %10307 = vmatmul.mubr.msk.f32.vlgmr.msra.gmra.mxu0 %vm2652_vm7, %v9297_v31 }
 0x809   : > { %10318 = vmatprep.mubr.msk.f32.mxu0 %vm10554_vm4, %v10553_v4 }
 0x8ac   : > { %v10238_v35 = vpop.f32.mrf.mxu0  ;;  %v10243_v55 = vpop.f32.mrf.mxu1 }
 0x8ad   : > { %v2987_v63 = vadd.f32 %v10243_v55, %v10238_v35  ;;  %v9313_v35 = vld [vmem:[%s12991_s9 + $0x70] sm:$0x1] }
 0x8ae   : > { %v2897_v36 = vpop.f32.mrf.mxu0  ;;  %v2981_v56 = vpop.f32.mrf.mxu1 }
 0x8af   : > { %v2982_v1 = vadd.f32 %v2981_v56, %v2897_v36  ;;  %v4286_v36 = vld [vmem:[%s12991_s9 + $0x30] sm:$0x1]  ;;  %v9327_v56 = vld [vmem:[%s12991_s9 + $0xa0] sm:$0xff] }
 0x8b0   : > { %v10248_v37 = vpop.f32.mrf.mxu0 }
 0x8b2   : > { %v3065_v38 = vpop.f32.mrf.mxu0 }
 0x8b3   : > { %10251 = vmatprep.mubr.msk.f32.mxu1 %vm2821_vm8, %v3065_v38  ;;  %v4285_v38 = vld [vmem:[%s12991_s9 + $0x28] sm:$0xff] }
 0x8b4   : > { %10252 = vmatmul.mubr.msk.f32.vlgmr.msra.gmra.mxu1 %vm2821_vm8, %v10248_v37  ;;  %v10258_v40 = vpop.f32.mrf.mxu0  ;;  %v9312_v37 = vld [vmem:[%s12991_s9 + $0x68] sm:$0xff] }
 0x8b5   : > { %10260 = vmatpush3.msk.msra.mxu1 %vm563_vm1, %v9260_v15  ;;  %v9305_v15 = vld [vmem:[%s12990_s8 + $0x8] sm:$0xff] }
 0x8b6   : > { %v3237_v41 = vpop.f32.mrf.mxu0  ;;  %10269 = vmatprep.subr.msk.mxu1 %vm563_vm1, %v9268_v39 }
 0x8b7   : > { %10261 = vmatprep.mubr.msk.f32.mxu1 %vm2821_vm8, %v3237_v41  ;;  %v9310_v41 = vld [vmem:[%s12991_s9 + $0x58] sm:$0xff] }
 0x8b8   : > { %10262 = vmatmul.mubr.msk.f32.vlgmr.msra.gmra.mxu1 %vm2821_vm8, %v10258_v40  ;;  %v10268_v43 = vpop.f32.mrf.mxu0  ;;  %v4284_v40 = vld [vmem:[%s12991_s9 + $0x20] sm:$0xff] }
 0x8b9   : > { %10270 = vmatpush3.msk.msra.mxu1 %vm563_vm1, %v9268_v39  ;;  %v9311_v39 = vld [vmem:[%s12991_s9 + $0x60] sm:$0xff] }
 0x8ba   : > { %v3409_v44 = vpop.f32.mrf.mxu0  ;;  %10279 = vmatprep.subr.msk.mxu1 %vm563_vm1, %v9276_v42 }
 0x8bb   : > { %10271 = vmatprep.mubr.msk.f32.mxu1 %vm2821_vm8, %v3409_v44  ;;  %v4282_v44 = vld [vmem:[%s12991_s9 + $0x10] sm:$0xff] }
 0x8bc   : > { %10272 = vmatmul.mubr.msk.f32.vlgmr.msra.gmra.mxu1 %vm2821_vm8, %v10268_v43  ;;  %v10278_v45 = vpop.f32.mrf.mxu0  ;;  %v9309_v43 = vld [vmem:[%s12991_s9 + $0x50] sm:$0xff] }
 0x8bd   : > { %10280 = vmatpush3.msk.msra.mxu1 %vm563_vm1, %v9276_v42  ;;  %v4283_v42 = vld [vmem:[%s12991_s9 + $0x18] sm:$0xff] }
 0x8be   : > { %v3581_v46 = vpop.f32.mrf.mxu0  ;;  %10289 = vmatprep.subr.msk.mxu1 %vm563_vm1, %v9284_v2 }
 0x8bf   : > { %10281 = vmatprep.mubr.msk.f32.mxu1 %vm2821_vm8, %v3581_v46  ;;  %v4281_v46 = vld [vmem:[%s12991_s9 + $0x8] sm:$0xff] }
 0x8c0   : > { %10282 = vmatmul.mubr.msk.f32.vlgmr.msra.gmra.mxu1 %vm2821_vm8, %v10278_v45  ;;  %v10288_v48 = vpop.f32.mrf.mxu0  ;;  %v9307_v45 = vld [vmem:[%s12991_s9 + $0x40] sm:$0xff] }
 0x8c1   : > { %10290 = vmatpush3.msk.msra.mxu1 %vm563_vm1, %v9284_v2  ;;  %v9308_v2 = vld [vmem:[%s12991_s9 + $0x48] sm:$0xff] }
 0x8c2   : > { %v3753_v49 = vpop.f32.mrf.mxu0  ;;  %10299 = vmatprep.subr.msk.mxu1 %vm563_vm1, %v9292_v47 }
 0x8c3   : > { %10291 = vmatprep.mubr.msk.f32.mxu1 %vm2821_vm8, %v3753_v49 }
 0x8c4   : > { %10292 = vmatmul.mubr.msk.f32.vlgmr.msra.gmra.mxu1 %vm2821_vm8, %v10288_v48  ;;  %v10298_v51 = vpop.f32.mrf.mxu0  ;;  %v9330_v48 = vld [vmem:[%s12991_s9 + $0xb8] sm:$0x1] }
 0x8c5   : > { %10300 = vmatpush3.msk.msra.mxu1 %vm563_vm1, %v9292_v47  ;;  %v4280_v47 = vld [vmem:[%s12991_s9] sm:$0xff] }
 0x8c6   : > { %v3925_v52 = vpop.f32.mrf.mxu0  ;;  %10309 = vmatprep.subr.msk.mxu1 %vm563_vm1, %v9300_v50 }
 0x8c7   : > { %10301 = vmatprep.mubr.msk.f32.mxu1 %vm2821_vm8, %v3925_v52  ;;  %v9328_v52 = vld [vmem:[%s12991_s9 + $0xa8] sm:$0xff] }
 0x8c8   : > { %10302 = vmatmul.mubr.msk.f32.vlgmr.msra.gmra.mxu1 %vm2821_vm8, %v10298_v51  ;;  %v10308_v53 = vpop.f32.mrf.mxu0  ;;  %v9329_v51 = vld [vmem:[%s12991_s9 + $0xb0] sm:$0x1] }
 0x8c9   : > { %10310 = vmatpush3.msk.msra.mxu1 %vm563_vm1, %v9300_v50 }
 0x8ca   : > { %v4097_v54 = vpop.f32.mrf.mxu0  ;;  %10321 = vmatprep.subr.mxu1 %v10553_v4 }
 0x8cb   : > { %10311 = vmatprep.mubr.msk.f32.mxu1 %vm2821_vm8, %v4097_v54  ;;  %v9321_v54 = vld [vmem:[%s12990_s8 + $0x10] sm:$0xff] }
 0x8cc   : > { %10312 = vmatmul.mubr.msk.f32.vlgmr.msra.gmra.mxu1 %vm2821_vm8, %v10308_v53 }
 0x8cd   : > { %10325 = vmatprep.mubr.msk.f32.mxu1 %vm10554_vm4, %v10553_v4 }
 0x974   : > { %v10253_v57 = vpop.f32.mrf.mxu1 }
 0x975   : > { %v3161_v3 = vadd.f32 %v10253_v57, %v2987_v63  ;;  %v9334_v57 = vld [vmem:[%s12990_s8 + $0x18] sm:$0xff]  ;;  %v9341_v63 = vld [vmem:[%s12991_s9 + $0xe8] sm:$0xff] }
 0x976   : > { %v3151_v58 = vpop.f32.mrf.mxu1 }
 0x977   : > { %v3160_v6 = vadd.f32 %v3151_v58, %v2982_v1  ;;  %v9326_v58 = vld [vmem:[%s12991_s9 + $0x98] sm:$0xff]  ;;  %v9340_v1 = vld [vmem:[%s12991_s9 + $0xe0] sm:$0xff] }
 0x978   : > { %v10263_v59 = vpop.f32.mrf.mxu1 }
 0x979   : > { %v3333_v7 = vadd.f32 %v10263_v59, %v3161_v3  ;;  %v9343_v59 = vld [vmem:[%s12991_s9 + $0xf8] sm:$0x1] }
 0x97a   : > { %v3323_v60 = vpop.f32.mrf.mxu1  ;;  %v9339_v3 = vld [vmem:[%s12991_s9 + $0xd8] sm:$0xff] }
 0x97b   : > { %v3332_v9 = vadd.f32 %v3323_v60, %v3160_v6  ;;  %v9325_v60 = vld [vmem:[%s12991_s9 + $0x90] sm:$0xff]  ;;  %v9337_v6 = vld [vmem:[%s12991_s9 + $0xc8] sm:$0xff] }
 0x97c   : > { %v10273_v61 = vpop.f32.mrf.mxu1 }
 0x97d   : > { %v3505_v10 = vadd.f32 %v10273_v61, %v3333_v7  ;;  %v9342_v61 = vld [vmem:[%s12991_s9 + $0xf0] sm:$0x1]  ;;  %v9336_v7 = vld [vmem:[%s12991_s9 + $0xc0] sm:$0xff] }
 0x97e   : > { %v3495_v62 = vpop.f32.mrf.mxu1 }
 0x97f   : > { %v3504_v12 = vadd.f32 %v3495_v62, %v3332_v9  ;;  %v9324_v62 = vld [vmem:[%s12991_s9 + $0x88] sm:$0xff] }
 0x980   : > { %v10283_v0 = vpop.f32.mrf.mxu1 }
 0x981   : > { %v3677_v13 = vadd.f32 %v10283_v0, %v3505_v10  ;;  %v9323_v0 = vld [vmem:[%s12991_s9 + $0x80] sm:$0xff] }
 0x982   : > { %v3667_v5 = vpop.f32.mrf.mxu1 }
 0x983   : > { %v3676_v16 = vadd.f32 %v3667_v5, %v3504_v12  ;;  %v9338_v5 = vld [vmem:[%s12991_s9 + $0xd0] sm:$0xff] }
 0x984   : > { %v10293_v8 = vpop.f32.mrf.mxu1 }
 0x985   : > { %v3849_v17 = vadd.f32 %v10293_v8, %v3677_v13 }
 0x986   : > { %v3839_v11 = vpop.f32.mrf.mxu1 }
 0x987   : > { %v3848_v20 = vadd.f32 %v3839_v11, %v3676_v16 }
 0x988   : > { %v10303_v14 = vpop.f32.mrf.mxu1 }
 0x989   : > { %v4021_v21 = vadd.f32 %v10303_v14, %v3849_v17  ;;  %v9347_v14 = vld [vmem:[%s12990_s8 + $0x20] sm:$0xff]  ;;  %v9356_v17 = vld [vmem:[%s12991_s9 + $0x138] sm:$0x1] }
 0x98a   : > { %v4011_v19 = vpop.f32.mrf.mxu1 }
 0x98b   : > { %v4020_v24 = vadd.f32 %v4011_v19, %v3848_v20  ;;  %v9355_v19 = vld [vmem:[%s12991_s9 + $0x130] sm:$0x1]  ;;  %v9360_v20 = vld [vmem:[%s12990_s8 + $0x28] sm:$0xff] }
 0x98c   : > { %v10313_v22 = vpop.f32.mrf.mxu1 }
 0x98d   : > { %v4193_v25 = vadd.f32 %v10313_v22, %v4021_v21  ;;  %v9354_v21 = vld [vmem:[%s12991_s9 + $0x128] sm:$0xff] }
 0x98e   : > { %v4183_v26 = vpop.f32.mrf.mxu1 }
 0x98f   : > { %v4203_v28 = vadd.f32 %v4200_v23, %v4193_v25  ;;  %v4192_v29 = vadd.f32 %v4183_v26, %v4020_v24  ;;  %v9353_v23 = vld [vmem:[%s12991_s9 + $0x120] sm:$0xff]  ;;  %v9352_v24 = vld [vmem:[%s12991_s9 + $0x118] sm:$0xff]  ;;  %v9351_v26 = vld [vmem:[%s12991_s9 + $0x110] sm:$0xff] }
 0x990   : > { %v9369_v25 = vld [vmem:[%s12991_s9 + $0x178] sm:$0x1] }
 0x991   : > { %v11331_v30 = vmax.f32 %v4203_v28, 0.0  ;;  %v4202_v31 = vadd.f32 %v4196_v27, %v4192_v29  ;;  %v9368_v27 = vld [vmem:[%s12991_s9 + $0x170] sm:$0x1]  ;;  %v9350_v28 = vld [vmem:[%s12991_s9 + $0x108] sm:$0xff] }
 0x992   : > { %v9367_v29 = vld [vmem:[%s12991_s9 + $0x168] sm:$0xff] }
 0x993   : > { %v11333_v32 = vmax.f32 %v4202_v31, 0.0  ;;  %10315 = vmatpush3.msra.mxu0 %v11331_v30  ;;  %10322 = vmatpush3.msra.mxu1 %v11331_v30  ;;  %v9349_v31 = vld [vmem:[%s12991_s9 + $0x100] sm:$0xff] }
 0x994   : > { %10316 = vmatprep.subr.mxu0 %v10553_v4  ;;  %10323 = vmatprep.subr.mxu1 %v10553_v4 }
 0x995   : > { %10317 = vmatpush3.msra.mxu0 %v11333_v32  ;;  %10324 = vmatpush3.msra.mxu1 %v11333_v32 }
 0x996   : > { %10326 = vmatmul.mubr.msk.f32.vlgmr.msra.gmra.mxu1 %vm925_vm5, %v9305_v15  ;;  %10319 = vmatmul.mubr.msk.f32.vlgmr.msra.gmra.mxu0 %vm925_vm5, %v4206_v18  ;;  %v9366_v15 = vld [vmem:[%s12991_s9 + $0x160] sm:$0xff]  ;;  %v9365_v18 = vld [vmem:[%s12991_s9 + $0x158] sm:$0xff] }
 0x997   : > { %9315 = vmatprep.subr.msk.mxu0 %vm462_vm2, %v9314_v33  ;;  %9318 = vmatprep.subr.msk.mxu1 %vm462_vm2, %v4287_v34  ;;  %v9364_v33 = vld [vmem:[%s12991_s9 + $0x150] sm:$0xff]  ;;  %v9363_v34 = vld [vmem:[%s12991_s9 + $0x148] sm:$0xff] }
 0x998   : > { %9316 = vmatpush1.msk.msra.mxu0 %vm462_vm2, %v9313_v35  ;;  %9319 = vmatpush1.msk.msra.mxu1 %vm462_vm2, %v4286_v36  ;;  %v9362_v35 = vld [vmem:[%s12991_s9 + $0x140] sm:$0xff] }
 0x999   : > { %4407 = vmatprep.subr.mxu0 %v9312_v37  ;;  %4487 = vmatprep.subr.mxu1 %v4285_v38 }
 0x99a   : > { %4408 = vmatpush1.msra.mxu0 %v9311_v39  ;;  %4488 = vmatpush1.msra.mxu1 %v4284_v40 }
 0x99b   : > { %4409 = vmatprep.subr.mxu0 %v9310_v41  ;;  %4489 = vmatprep.subr.mxu1 %v4283_v42 }
 0x99c   : > { %4410 = vmatpush1.msra.mxu0 %v9309_v43  ;;  %4490 = vmatpush1.msra.mxu1 %v4282_v44 }
 0x99d   : > { %4411 = vmatprep.subr.mxu0 %v9308_v2  ;;  %4445 = vmatprep.mubr.f32.mxu0 %v10553_v4 }
 0x99e   : > { %4412 = vmatpush1.msra.mxu0 %v9307_v45  ;;  %4525 = vmatprep.mubr.f32.mxu1 %v10553_v4 }
 0x99f   : > { %10328 = vmatprep.subr.mxu0 %v10553_v4  ;;  %4491 = vmatprep.subr.mxu1 %v4281_v46  ;;  %v9373_v46 = vld [vmem:[%s12990_s8 + $0x30] sm:$0xff] }
 0x9a0   : > { %4492 = vmatpush1.msra.mxu1 %v4280_v47 }
 0x9a1   : > { %9331 = vmatprep.subr.msk.mxu1 %vm462_vm2, %v9330_v48 }
 0xa56   : > { %v4359_v49 = vpop.f32.mrf.mxu1  ;;  %v4276_v50 = vpop.f32.mrf.mxu0 }
 0xa57   : > { %9317 = vmatmul.mubr.msk.f32.vlgmr.msra.gmra.mxu0 %vm1083_vm6, %v4359_v49  ;;  %9320 = vmatmul.mubr.msk.f32.vlgmr.msra.gmra.mxu1 %vm1083_vm6, %v4276_v50  ;;  %v9382_v49 = vld [vmem:[%s12991_s9 + $0x1b8] sm:$0x1]  ;;  %v9381_v50 = vld [vmem:[%s12991_s9 + $0x1b0] sm:$0x1] }
 0xa58   : > { %10329 = vmatpush3.msra.mxu0 %v11331_v30  ;;  %v10327_v53 = vpop.f32.mrf.mxu1  ;;  %10332 = vmatprep.mubr.msk.f32.mxu0 %vm10554_vm4, %v10553_v4  ;;  %v10320_v55 = vpop.f32.mrf.mxu0 }
 0xa59   : > { %10330 = vmatprep.subr.mxu0 %v10553_v4  ;;  %9332 = vmatpush1.msk.msra.mxu1 %vm462_vm2, %v9329_v51  ;;  %v9386_v51 = vld [vmem:[%s12990_s8 + $0x38] sm:$0xff] }
 0xa5a   : > { %10331 = vmatpush3.msra.mxu0 %v11333_v32  ;;  %4651 = vmatprep.subr.mxu1 %v9328_v52  ;;  %v9380_v52 = vld [vmem:[%s12991_s9 + $0x1a8] sm:$0xff]  ;;  %v9378_v55 = vld [vmem:[%s12991_s9 + $0x198] sm:$0xff] }
 0xa5b   : > { %10335 = vmatprep.subr.mxu0 %v10553_v4  ;;  %10333 = vmatmul.mubr.msk.f32.vlgmr.msra.gmra.mxu0 %vm925_vm5, %v9321_v54  ;;  %v9379_v54 = vld [vmem:[%s12991_s9 + $0x1a0] sm:$0xff] }
 0xa5c   : > { %10336 = vmatpush3.msra.mxu0 %v11331_v30  ;;  %10339 = vmatprep.mubr.msk.f32.mxu0 %vm10554_vm4, %v10553_v4 }
 0xa5d   : > { %10337 = vmatprep.subr.mxu0 %v10553_v4  ;;  %4652 = vmatpush1.msra.mxu1 %v9327_v56  ;;  %v9395_v56 = vld [vmem:[%s12991_s9 + $0x1f8] sm:$0x1] }
 0xa5e   : > { %10338 = vmatpush3.msra.mxu0 %v11333_v32  ;;  %4689 = vmatprep.mubr.f32.mxu1 %v10553_v4 }
 0xa5f   : > { %10340 = vmatmul.mubr.msk.f32.vlgmr.msra.gmra.mxu0 %vm925_vm5, %v9334_v57  ;;  %4653 = vmatprep.subr.mxu1 %v9326_v58  ;;  %v9377_v57 = vld [vmem:[%s12991_s9 + $0x190] sm:$0xff] }
 0xa60   : > { %4855 = vmatprep.mubr.f32.mxu0 %v10553_v4  ;;  %9344 = vmatprep.subr.msk.mxu0 %vm462_vm2, %v9343_v59  ;;  %v9394_v58 = vld [vmem:[%s12991_s9 + $0x1f0] sm:$0x1]  ;;  %v9376_v59 = vld [vmem:[%s12991_s9 + $0x188] sm:$0xff] }
 0xa61   : > { %4654 = vmatpush1.msra.mxu1 %v9325_v60  ;;  %9345 = vmatpush1.msk.msra.mxu0 %vm462_vm2, %v9342_v61  ;;  %v9393_v60 = vld [vmem:[%s12991_s9 + $0x1e8] sm:$0xff]  ;;  %v9375_v61 = vld [vmem:[%s12991_s9 + $0x180] sm:$0xff] }
 0xa62   : > { %4655 = vmatprep.subr.mxu1 %v9324_v62  ;;  %4817 = vmatprep.subr.mxu0 %v9341_v63  ;;  %v9392_v62 = vld [vmem:[%s12991_s9 + $0x1e0] sm:$0xff]  ;;  %v9391_v63 = vld [vmem:[%s12991_s9 + $0x1d8] sm:$0xff] }
 0xa63   : > { %4656 = vmatpush1.msra.mxu1 %v9323_v0  ;;  %4818 = vmatpush1.msra.mxu0 %v9340_v1  ;;  %v9390_v0 = vld [vmem:[%s12991_s9 + $0x1d0] sm:$0xff]  ;;  %v9389_v1 = vld [vmem:[%s12991_s9 + $0x1c8] sm:$0xff] }
 0xa64   : > { %4819 = vmatprep.subr.mxu0 %v9339_v3  ;;  %10342 = vmatprep.subr.mxu1 %v10553_v4  ;;  %v9388_v3 = vld [vmem:[%s12991_s9 + $0x1c0] sm:$0xff] }
 0xa65   : > { %4820 = vmatpush1.msra.mxu0 %v9338_v5 }
 0xa66   : > { %4821 = vmatprep.subr.mxu0 %v9337_v6 }
 0xa67   : > { %4822 = vmatpush1.msra.mxu0 %v9336_v7 }
 0xa68   : > { %10349 = vmatprep.subr.mxu0 %v10553_v4 }
 0xb17   : > { %v4447_v8 = vpop.f32.mrf.mxu0  ;;  %v4527_v9 = vpop.f32.mrf.mxu1 }
 0xb18   : > { %v4528_v10 = vadd.f32 %v4527_v9, %v4447_v8 }
 0xb19   : > { %v4449_v11 = vpop.f32.mrf.mxu0  ;;  %v4529_v36 = vpop.f32.mrf.mxu1 }
 0xb1a   : > { %v4530_v38 = vadd.f32 %v4529_v36, %v4449_v11  ;;  %v9414_v36 = vld [vmem:[%s12991_s9 + $0x240] sm:$0xff] }
 0xb1b   : > { %v4603_v12 = vpop.f32.mrf.mxu0 }
 0xb1c   : > { %9333 = vmatmul.mubr.msk.f32.vlgmr.msra.gmra.mxu1 %vm1083_vm6, %v4603_v12 }
 0xb1d   : > { %10343 = vmatpush3.msra.mxu1 %v11331_v30  ;;  %v10334_v13 = vpop.f32.mrf.mxu0  ;;  %10346 = vmatprep.mubr.msk.f32.mxu1 %vm10554_vm4, %v10553_v4 }
 0xb1e   : > { %10344 = vmatprep.subr.mxu1 %v10553_v4 }
 0xb1f   : > { %10345 = vmatpush3.msra.mxu1 %v11333_v32  ;;  %v4769_v16 = vpop.f32.mrf.mxu0 }
 0xb20   : > { %9346 = vmatmul.mubr.msk.f32.vlgmr.msra.gmra.mxu0 %vm1083_vm6, %v4769_v16  ;;  %10347 = vmatmul.mubr.msk.f32.vlgmr.msra.gmra.mxu1 %vm925_vm5, %v9347_v14  ;;  %v9399_v14 = vld [vmem:[%s12990_s8 + $0x40] sm:$0xff] }
 0xb21   : > { %10350 = vmatpush3.msra.mxu0 %v11331_v30  ;;  %10353 = vmatprep.mubr.msk.f32.mxu0 %vm10554_vm4, %v10553_v4  ;;  %v10341_v22 = vpop.f32.mrf.mxu0 }
 0xb22   : > { %10351 = vmatprep.subr.mxu0 %v10553_v4  ;;  %9357 = vmatprep.subr.msk.mxu1 %vm462_vm2, %v9356_v17  ;;  %v9406_v22 = vld [vmem:[%s12991_s9 + $0x228] sm:$0xff] }
 0xb23   : > { %10352 = vmatpush3.msra.mxu0 %v11333_v32  ;;  %9358 = vmatpush1.msk.msra.mxu1 %vm462_vm2, %v9355_v19  ;;  %v9408_v19 = vld [vmem:[%s12991_s9 + $0x238] sm:$0x1] }
 0xb24   : > { %10354 = vmatmul.mubr.msk.f32.vlgmr.msra.gmra.mxu0 %vm925_vm5, %v9360_v20  ;;  %4983 = vmatprep.subr.mxu1 %v9354_v21  ;;  %v9407_v20 = vld [vmem:[%s12991_s9 + $0x230] sm:$0x1]  ;;  %v9412_v21 = vld [vmem:[%s12990_s8 + $0x48] sm:$0xff] }
 0xb25   : > { %4984 = vmatpush1.msra.mxu1 %v9353_v23  ;;  %5021 = vmatprep.mubr.f32.mxu1 %v10553_v4 }
 0xb26   : > { %5187 = vmatprep.mubr.f32.mxu0 %v10553_v4  ;;  %4985 = vmatprep.subr.mxu1 %v9352_v24  ;;  %v9405_v24 = vld [vmem:[%s12991_s9 + $0x220] sm:$0xff] }
 0xb27   : > { %9370 = vmatprep.subr.msk.mxu0 %vm462_vm2, %v9369_v25  ;;  %4986 = vmatpush1.msra.mxu1 %v9351_v26  ;;  %v9404_v25 = vld [vmem:[%s12991_s9 + $0x218] sm:$0xff] }
 0xb28   : > { %9371 = vmatpush1.msk.msra.mxu0 %vm462_vm2, %v9368_v27  ;;  %4987 = vmatprep.subr.mxu1 %v9350_v28  ;;  %v9421_v26 = vld [vmem:[%s12991_s9 + $0x278] sm:$0x1]  ;;  %v9403_v27 = vld [vmem:[%s12991_s9 + $0x210] sm:$0xff] }
 0xb29   : > { %5149 = vmatprep.subr.mxu0 %v9367_v29  ;;  %4988 = vmatpush1.msra.mxu1 %v9349_v31  ;;  %v9420_v28 = vld [vmem:[%s12991_s9 + $0x270] sm:$0x1]  ;;  %v9402_v29 = vld [vmem:[%s12991_s9 + $0x208] sm:$0xff] }
 0xb2a   : > { %5150 = vmatpush1.msra.mxu0 %v9366_v15  ;;  %10356 = vmatprep.subr.mxu1 %v10553_v4  ;;  %v9419_v31 = vld [vmem:[%s12991_s9 + $0x268] sm:$0xff]  ;;  %v9401_v15 = vld [vmem:[%s12991_s9 + $0x200] sm:$0xff] }
 0xb2b   : > { %5151 = vmatprep.subr.mxu0 %v9365_v18  ;;  %v9418_v18 = vld [vmem:[%s12991_s9 + $0x260] sm:$0xff] }
 0xb2c   : > { %5152 = vmatpush1.msra.mxu0 %v9364_v33  ;;  %v9417_v33 = vld [vmem:[%s12991_s9 + $0x258] sm:$0xff] }
 0xb2d   : > { %5153 = vmatprep.subr.mxu0 %v9363_v34  ;;  %v9416_v34 = vld [vmem:[%s12991_s9 + $0x250] sm:$0xff] }
 0xb2e   : > { %5154 = vmatpush1.msra.mxu0 %v9362_v35  ;;  %v9415_v35 = vld [vmem:[%s12991_s9 + $0x248] sm:$0xff] }
 0xb2f   : > { %10363 = vmatprep.subr.mxu0 %v10553_v4 }
 0xbdc   : > { %v4691_v37 = vpop.f32.mrf.mxu1 }
 0xbdd   : > { %v4696_v39 = vadd.f32 %v4691_v37, %v4528_v10 }
 0xbde   : > { %v4693_v40 = vpop.f32.mrf.mxu1 }
 0xbdf   : > { %v4697_v41 = vadd.f32 %v4693_v40, %v4530_v38 }
 0xbe0   : > { %v4857_v42 = vpop.f32.mrf.mxu0  ;;  %v4935_v43 = vpop.f32.mrf.mxu1 }
 0xbe1   : > { %v4862_v44 = vadd.f32 %v4857_v42, %v4696_v39  ;;  %9359 = vmatmul.mubr.msk.f32.vlgmr.msra.gmra.mxu1 %vm1083_vm6, %v4935_v43 }
 0xbe2   : > { %10357 = vmatpush3.msra.mxu1 %v11331_v30  ;;  %v4859_v2 = vpop.f32.mrf.mxu0  ;;  %v10348_v45 = vpop.f32.mrf.mxu1  ;;  %10360 = vmatprep.mubr.msk.f32.mxu1 %vm10554_vm4, %v10553_v4 }
 0xbe3   : > { %v4863_v47 = vadd.f32 %v4859_v2, %v4697_v41  ;;  %10358 = vmatprep.subr.mxu1 %v10553_v4  ;;  %v9425_v45 = vld [vmem:[%s12990_s8 + $0x50] sm:$0xff] }
 0xbe4   : > { %10359 = vmatpush3.msra.mxu1 %v11333_v32  ;;  %v5101_v48 = vpop.f32.mrf.mxu0 }
 0xbe5   : > { %9372 = vmatmul.mubr.msk.f32.vlgmr.msra.gmra.mxu0 %vm1083_vm6, %v5101_v48  ;;  %10361 = vmatmul.mubr.msk.f32.vlgmr.msra.gmra.mxu1 %vm925_vm5, %v9373_v46  ;;  %v9434_v48 = vld [vmem:[%s12991_s9 + $0x2b8] sm:$0x1] }
 0xbe6   : > { %10364 = vmatpush3.msra.mxu0 %v11331_v30  ;;  %10367 = vmatprep.mubr.msk.f32.mxu0 %vm10554_vm4, %v10553_v4  ;;  %v10355_v53 = vpop.f32.mrf.mxu0 }
 0xbe7   : > { %10365 = vmatprep.subr.mxu0 %v10553_v4  ;;  %9383 = vmatprep.subr.msk.mxu1 %vm462_vm2, %v9382_v49  ;;  %v9433_v49 = vld [vmem:[%s12991_s9 + $0x2b0] sm:$0x1]  ;;  %v9431_v53 = vld [vmem:[%s12991_s9 + $0x2a0] sm:$0xff] }
 0xbe8   : > { %10366 = vmatpush3.msra.mxu0 %v11333_v32  ;;  %9384 = vmatpush1.msk.msra.mxu1 %vm462_vm2, %v9381_v50  ;;  %v9438_v50 = vld [vmem:[%s12990_s8 + $0x58] sm:$0xff] }
 0xbe9   : > { %10368 = vmatmul.mubr.msk.f32.vlgmr.msra.gmra.mxu0 %vm925_vm5, %v9386_v51  ;;  %5315 = vmatprep.subr.mxu1 %v9380_v52  ;;  %v9432_v51 = vld [vmem:[%s12991_s9 + $0x2a8] sm:$0xff] }
 0xbea   : > { %5316 = vmatpush1.msra.mxu1 %v9379_v54  ;;  %5353 = vmatprep.mubr.f32.mxu1 %v10553_v4  ;;  %v9430_v54 = vld [vmem:[%s12991_s9 + $0x298] sm:$0xff] }
 0xbeb   : > { %5519 = vmatprep.mubr.f32.mxu0 %v10553_v4  ;;  %5317 = vmatprep.subr.mxu1 %v9378_v55  ;;  %v9447_v55 = vld [vmem:[%s12991_s9 + $0x2f8] sm:$0x1] }
 0xbec   : > { %9396 = vmatprep.subr.msk.mxu0 %vm462_vm2, %v9395_v56  ;;  %5318 = vmatpush1.msra.mxu1 %v9377_v57  ;;  %v9429_v56 = vld [vmem:[%s12991_s9 + $0x290] sm:$0xff] }
 0xbed   : > { %9397 = vmatpush1.msk.msra.mxu0 %vm462_vm2, %v9394_v58  ;;  %5319 = vmatprep.subr.mxu1 %v9376_v59  ;;  %v9446_v57 = vld [vmem:[%s12991_s9 + $0x2f0] sm:$0x1]  ;;  %v9428_v58 = vld [vmem:[%s12991_s9 + $0x288] sm:$0xff] }
 0xbee   : > { %5481 = vmatprep.subr.mxu0 %v9393_v60  ;;  %5320 = vmatpush1.msra.mxu1 %v9375_v61  ;;  %v9445_v59 = vld [vmem:[%s12991_s9 + $0x2e8] sm:$0xff]  ;;  %v9427_v60 = vld [vmem:[%s12991_s9 + $0x280] sm:$0xff] }
 0xbef   : > { %5482 = vmatpush1.msra.mxu0 %v9392_v62  ;;  %10370 = vmatprep.subr.mxu1 %v10553_v4  ;;  %v9444_v61 = vld [vmem:[%s12991_s9 + $0x2e0] sm:$0xff]  ;;  %v9443_v62 = vld [vmem:[%s12991_s9 + $0x2d8] sm:$0xff] }
 0xbf0   : > { %5483 = vmatprep.subr.mxu0 %v9391_v63  ;;  %v9442_v63 = vld [vmem:[%s12991_s9 + $0x2d0] sm:$0xff] }
 0xbf1   : > { %5484 = vmatpush1.msra.mxu0 %v9390_v0  ;;  %v9441_v0 = vld [vmem:[%s12991_s9 + $0x2c8] sm:$0xff] }
 0xbf2   : > { %5485 = vmatprep.subr.mxu0 %v9389_v1  ;;  %v9440_v1 = vld [vmem:[%s12991_s9 + $0x2c0] sm:$0xff] }
 0xbf3   : > { %5486 = vmatpush1.msra.mxu0 %v9388_v3 }
 0xbf4   : > { %10377 = vmatprep.subr.mxu0 %v10553_v4 }
 0xca1   : > { %v5023_v5 = vpop.f32.mrf.mxu1 }
 0xca2   : > { %v5028_v6 = vadd.f32 %v5023_v5, %v4862_v44 }
 0xca3   : > { %v5025_v7 = vpop.f32.mrf.mxu1 }
 0xca4   : > { %v5029_v8 = vadd.f32 %v5025_v7, %v4863_v47 }
 0xca5   : > { %v5189_v9 = vpop.f32.mrf.mxu0  ;;  %v5267_v10 = vpop.f32.mrf.mxu1 }
 0xca6   : > { %v5194_v11 = vadd.f32 %v5189_v9, %v5028_v6  ;;  %9385 = vmatmul.mubr.msk.f32.vlgmr.msra.gmra.mxu1 %vm1083_vm6, %v5267_v10 }
 0xca7   : > { %10371 = vmatpush3.msra.mxu1 %v11331_v30  ;;  %v5191_v12 = vpop.f32.mrf.mxu0  ;;  %v10362_v13 = vpop.f32.mrf.mxu1  ;;  %10374 = vmatprep.mubr.msk.f32.mxu1 %vm10554_vm4, %v10553_v4 }
 0xca8   : > { %v5195_v16 = vadd.f32 %v5191_v12, %v5029_v8  ;;  %10372 = vmatprep.subr.mxu1 %v10553_v4  ;;  %v9451_v13 = vld [vmem:[%s12990_s8 + $0x60] sm:$0xff] }
 0xca9   : > { %10373 = vmatpush3.msra.mxu1 %v11333_v32  ;;  %v5433_v17 = vpop.f32.mrf.mxu0 }
 0xcaa   : > { %9398 = vmatmul.mubr.msk.f32.vlgmr.msra.gmra.mxu0 %vm1083_vm6, %v5433_v17  ;;  %10375 = vmatmul.mubr.msk.f32.vlgmr.msra.gmra.mxu1 %vm925_vm5, %v9399_v14  ;;  %v9460_v17 = vld [vmem:[%s12991_s9 + $0x338] sm:$0x1] }
 0xcab   : > { %10378 = vmatpush3.msra.mxu0 %v11331_v30  ;;  %10381 = vmatprep.mubr.msk.f32.mxu0 %vm10554_vm4, %v10553_v4  ;;  %v10369_v23 = vpop.f32.mrf.mxu0 }
 0xcac   : > { %10379 = vmatprep.subr.mxu0 %v10553_v4  ;;  %9409 = vmatprep.subr.msk.mxu1 %vm462_vm2, %v9408_v19  ;;  %v9459_v19 = vld [vmem:[%s12991_s9 + $0x330] sm:$0x1]  ;;  %v9457_v23 = vld [vmem:[%s12991_s9 + $0x320] sm:$0xff] }
 0xcad   : > { %10380 = vmatpush3.msra.mxu0 %v11333_v32  ;;  %9410 = vmatpush1.msk.msra.mxu1 %vm462_vm2, %v9407_v20  ;;  %v9464_v20 = vld [vmem:[%s12990_s8 + $0x68] sm:$0xff] }
 0xcae   : > { %10382 = vmatmul.mubr.msk.f32.vlgmr.msra.gmra.mxu0 %vm925_vm5, %v9412_v21  ;;  %5647 = vmatprep.subr.mxu1 %v9406_v22  ;;  %v9458_v21 = vld [vmem:[%s12991_s9 + $0x328] sm:$0xff] }
 0xcaf   : > { %5648 = vmatpush1.msra.mxu1 %v9405_v24  ;;  %5685 = vmatprep.mubr.f32.mxu1 %v10553_v4  ;;  %v9456_v24 = vld [vmem:[%s12991_s9 + $0x318] sm:$0xff] }
 0xcb0   : > { %5851 = vmatprep.mubr.f32.mxu0 %v10553_v4  ;;  %5649 = vmatprep.subr.mxu1 %v9404_v25  ;;  %v9473_v25 = vld [vmem:[%s12991_s9 + $0x378] sm:$0x1] }
 0xcb1   : > { %9422 = vmatprep.subr.msk.mxu0 %vm462_vm2, %v9421_v26  ;;  %5650 = vmatpush1.msra.mxu1 %v9403_v27  ;;  %v9455_v26 = vld [vmem:[%s12991_s9 + $0x310] sm:$0xff] }
 0xcb2   : > { %9423 = vmatpush1.msk.msra.mxu0 %vm462_vm2, %v9420_v28  ;;  %5651 = vmatprep.subr.mxu1 %v9402_v29  ;;  %v9472_v27 = vld [vmem:[%s12991_s9 + $0x370] sm:$0x1]  ;;  %v9454_v28 = vld [vmem:[%s12991_s9 + $0x308] sm:$0xff] }
 0xcb3   : > { %5813 = vmatprep.subr.mxu0 %v9419_v31  ;;  %5652 = vmatpush1.msra.mxu1 %v9401_v15  ;;  %v9471_v29 = vld [vmem:[%s12991_s9 + $0x368] sm:$0xff]  ;;  %v9453_v31 = vld [vmem:[%s12991_s9 + $0x300] sm:$0xff] }
 0xcb4   : > { %5814 = vmatpush1.msra.mxu0 %v9418_v18  ;;  %10384 = vmatprep.subr.mxu1 %v10553_v4  ;;  %v9470_v15 = vld [vmem:[%s12991_s9 + $0x360] sm:$0xff]  ;;  %v9469_v18 = vld [vmem:[%s12991_s9 + $0x358] sm:$0xff] }
 0xcb5   : > { %5815 = vmatprep.subr.mxu0 %v9417_v33  ;;  %v9468_v33 = vld [vmem:[%s12991_s9 + $0x350] sm:$0xff] }
 0xcb6   : > { %5816 = vmatpush1.msra.mxu0 %v9416_v34  ;;  %v9467_v34 = vld [vmem:[%s12991_s9 + $0x348] sm:$0xff] }
 0xcb7   : > { %5817 = vmatprep.subr.mxu0 %v9415_v35  ;;  %v9466_v35 = vld [vmem:[%s12991_s9 + $0x340] sm:$0xff] }
 0xcb8   : > { %5818 = vmatpush1.msra.mxu0 %v9414_v36 }
 0xcb9   : > { %10391 = vmatprep.subr.mxu0 %v10553_v4 }
 0xd66   : > { %v5355_v37 = vpop.f32.mrf.mxu1 }
 0xd67   : > { %v5360_v38 = vadd.f32 %v5355_v37, %v5194_v11 }
 0xd68   : > { %v5357_v39 = vpop.f32.mrf.mxu1 }
 0xd69   : > { %v5361_v40 = vadd.f32 %v5357_v39, %v5195_v16 }
 0xd6a   : > { %v5521_v41 = vpop.f32.mrf.mxu0  ;;  %v5599_v42 = vpop.f32.mrf.mxu1 }
 0xd6b   : > { %v5526_v43 = vadd.f32 %v5521_v41, %v5360_v38  ;;  %9411 = vmatmul.mubr.msk.f32.vlgmr.msra.gmra.mxu1 %vm1083_vm6, %v5599_v42 }
 0xd6c   : > { %10385 = vmatpush3.msra.mxu1 %v11331_v30  ;;  %v5523_v44 = vpop.f32.mrf.mxu0  ;;  %v10376_v2 = vpop.f32.mrf.mxu1  ;;  %10388 = vmatprep.mubr.msk.f32.mxu1 %vm10554_vm4, %v10553_v4 }
 0xd6d   : > { %v5527_v46 = vadd.f32 %v5523_v44, %v5361_v40  ;;  %10386 = vmatprep.subr.mxu1 %v10553_v4  ;;  %v9477_v2 = vld [vmem:[%s12990_s8 + $0x70] sm:$0xff] }
 0xd6e   : > { %10387 = vmatpush3.msra.mxu1 %v11333_v32  ;;  %v5765_v47 = vpop.f32.mrf.mxu0 }
 0xd6f   : > { %9424 = vmatmul.mubr.msk.f32.vlgmr.msra.gmra.mxu0 %vm1083_vm6, %v5765_v47  ;;  %10389 = vmatmul.mubr.msk.f32.vlgmr.msra.gmra.mxu1 %vm925_vm5, %v9425_v45  ;;  %v9486_v47 = vld [vmem:[%s12991_s9 + $0x3b8] sm:$0x1] }
 0xd70   : > { %10392 = vmatpush3.msra.mxu0 %v11331_v30  ;;  %10395 = vmatprep.mubr.msk.f32.mxu0 %vm10554_vm4, %v10553_v4  ;;  %v10383_v52 = vpop.f32.mrf.mxu0 }
 0xd71   : > { %10393 = vmatprep.subr.mxu0 %v10553_v4  ;;  %9435 = vmatprep.subr.msk.mxu1 %vm462_vm2, %v9434_v48  ;;  %v9485_v48 = vld [vmem:[%s12991_s9 + $0x3b0] sm:$0x1]  ;;  %v9483_v52 = vld [vmem:[%s12991_s9 + $0x3a0] sm:$0xff] }
 0xd72   : > { %10394 = vmatpush3.msra.mxu0 %v11333_v32  ;;  %9436 = vmatpush1.msk.msra.mxu1 %vm462_vm2, %v9433_v49  ;;  %v9490_v49 = vld [vmem:[%s12990_s8 + $0x78] sm:$0xff] }
 0xd73   : > { %10396 = vmatmul.mubr.msk.f32.vlgmr.msra.gmra.mxu0 %vm925_vm5, %v9438_v50  ;;  %5979 = vmatprep.subr.mxu1 %v9432_v51  ;;  %v9484_v50 = vld [vmem:[%s12991_s9 + $0x3a8] sm:$0xff] }
 0xd74   : > { %5980 = vmatpush1.msra.mxu1 %v9431_v53  ;;  %6017 = vmatprep.mubr.f32.mxu1 %v10553_v4  ;;  %v9482_v53 = vld [vmem:[%s12991_s9 + $0x398] sm:$0xff] }
 0xd75   : > { %6183 = vmatprep.mubr.f32.mxu0 %v10553_v4  ;;  %5981 = vmatprep.subr.mxu1 %v9430_v54  ;;  %v9499_v54 = vld [vmem:[%s12991_s9 + $0x3f8] sm:$0x1] }
 0xd76   : > { %9448 = vmatprep.subr.msk.mxu0 %vm462_vm2, %v9447_v55  ;;  %5982 = vmatpush1.msra.mxu1 %v9429_v56  ;;  %v9481_v55 = vld [vmem:[%s12991_s9 + $0x390] sm:$0xff] }
 0xd77   : > { %9449 = vmatpush1.msk.msra.mxu0 %vm462_vm2, %v9446_v57  ;;  %5983 = vmatprep.subr.mxu1 %v9428_v58  ;;  %v9498_v56 = vld [vmem:[%s12991_s9 + $0x3f0] sm:$0x1]  ;;  %v9480_v57 = vld [vmem:[%s12991_s9 + $0x388] sm:$0xff] }
 0xd78   : > { %6145 = vmatprep.subr.mxu0 %v9445_v59  ;;  %5984 = vmatpush1.msra.mxu1 %v9427_v60  ;;  %v9497_v58 = vld [vmem:[%s12991_s9 + $0x3e8] sm:$0xff]  ;;  %v9479_v59 = vld [vmem:[%s12991_s9 + $0x380] sm:$0xff] }
 0xd79   : > { %6146 = vmatpush1.msra.mxu0 %v9444_v61  ;;  %10398 = vmatprep.subr.mxu1 %v10553_v4  ;;  %v9496_v60 = vld [vmem:[%s12991_s9 + $0x3e0] sm:$0xff]  ;;  %v9495_v61 = vld [vmem:[%s12991_s9 + $0x3d8] sm:$0xff] }
 0xd7a   : > { %6147 = vmatprep.subr.mxu0 %v9443_v62  ;;  %v9494_v62 = vld [vmem:[%s12991_s9 + $0x3d0] sm:$0xff] }
 0xd7b   : > { %6148 = vmatpush1.msra.mxu0 %v9442_v63  ;;  %v9493_v63 = vld [vmem:[%s12991_s9 + $0x3c8] sm:$0xff] }
 0xd7c   : > { %6149 = vmatprep.subr.mxu0 %v9441_v0  ;;  %v9492_v0 = vld [vmem:[%s12991_s9 + $0x3c0] sm:$0xff] }
 0xd7d   : > { %6150 = vmatpush1.msra.mxu0 %v9440_v1 }
 0xd7e   : > { %10405 = vmatprep.subr.mxu0 %v10553_v4 }
 0xe2b   : > { %v5687_v3 = vpop.f32.mrf.mxu1 }
 0xe2c   : > { %v5692_v5 = vadd.f32 %v5687_v3, %v5526_v43 }
 0xe2d   : > { %v5689_v6 = vpop.f32.mrf.mxu1 }
 0xe2e   : > { %v5693_v7 = vadd.f32 %v5689_v6, %v5527_v46 }
 0xe2f   : > { %v5853_v8 = vpop.f32.mrf.mxu0  ;;  %v5931_v9 = vpop.f32.mrf.mxu1 }
 0xe30   : > { %v5858_v10 = vadd.f32 %v5853_v8, %v5692_v5  ;;  %9437 = vmatmul.mubr.msk.f32.vlgmr.msra.gmra.mxu1 %vm1083_vm6, %v5931_v9 }
 0xe31   : > { %10399 = vmatpush3.msra.mxu1 %v11331_v30  ;;  %v5855_v11 = vpop.f32.mrf.mxu0  ;;  %v10390_v12 = vpop.f32.mrf.mxu1  ;;  %10402 = vmatprep.mubr.msk.f32.mxu1 %vm10554_vm4, %v10553_v4 }
 0xe32   : > { %v5859_v14 = vadd.f32 %v5855_v11, %v5693_v7  ;;  %10400 = vmatprep.subr.mxu1 %v10553_v4  ;;  %v9503_v12 = vld [vmem:[%s12990_s8 + $0x80] sm:$0xff] }
 0xe33   : > { %10401 = vmatpush3.msra.mxu1 %v11333_v32  ;;  %v6097_v16 = vpop.f32.mrf.mxu0 }
 0xe34   : > { %9450 = vmatmul.mubr.msk.f32.vlgmr.msra.gmra.mxu0 %vm1083_vm6, %v6097_v16  ;;  %10403 = vmatmul.mubr.msk.f32.vlgmr.msra.gmra.mxu1 %vm925_vm5, %v9451_v13  ;;  %v9512_v16 = vld [vmem:[%s12991_s9 + $0x438] sm:$0x1] }
 0xe35   : > { %10406 = vmatpush3.msra.mxu0 %v11331_v30  ;;  %10409 = vmatprep.mubr.msk.f32.mxu0 %vm10554_vm4, %v10553_v4  ;;  %v10397_v22 = vpop.f32.mrf.mxu0 }
 0xe36   : > { %10407 = vmatprep.subr.mxu0 %v10553_v4  ;;  %9461 = vmatprep.subr.msk.mxu1 %vm462_vm2, %v9460_v17  ;;  %v9511_v17 = vld [vmem:[%s12991_s9 + $0x430] sm:$0x1]  ;;  %v9509_v22 = vld [vmem:[%s12991_s9 + $0x420] sm:$0xff] }
 0xe37   : > { %10408 = vmatpush3.msra.mxu0 %v11333_v32  ;;  %9462 = vmatpush1.msk.msra.mxu1 %vm462_vm2, %v9459_v19  ;;  %v9516_v19 = vld [vmem:[%s12990_s8 + $0x88] sm:$0xff] }
 0xe38   : > { %10410 = vmatmul.mubr.msk.f32.vlgmr.msra.gmra.mxu0 %vm925_vm5, %v9464_v20  ;;  %6311 = vmatprep.subr.mxu1 %v9458_v21  ;;  %v9510_v20 = vld [vmem:[%s12991_s9 + $0x428] sm:$0xff] }
 0xe39   : > { %6312 = vmatpush1.msra.mxu1 %v9457_v23  ;;  %6349 = vmatprep.mubr.f32.mxu1 %v10553_v4  ;;  %v9508_v23 = vld [vmem:[%s12991_s9 + $0x418] sm:$0xff] }
 0xe3a   : > { %6515 = vmatprep.mubr.f32.mxu0 %v10553_v4  ;;  %6313 = vmatprep.subr.mxu1 %v9456_v24  ;;  %v9525_v24 = vld [vmem:[%s12991_s9 + $0x478] sm:$0x1] }
 0xe3b   : > { %9474 = vmatprep.subr.msk.mxu0 %vm462_vm2, %v9473_v25  ;;  %6314 = vmatpush1.msra.mxu1 %v9455_v26  ;;  %v9507_v25 = vld [vmem:[%s12991_s9 + $0x410] sm:$0xff] }
 0xe3c   : > { %9475 = vmatpush1.msk.msra.mxu0 %vm462_vm2, %v9472_v27  ;;  %6315 = vmatprep.subr.mxu1 %v9454_v28  ;;  %v9524_v26 = vld [vmem:[%s12991_s9 + $0x470] sm:$0x1]  ;;  %v9506_v27 = vld [vmem:[%s12991_s9 + $0x408] sm:$0xff] }
 0xe3d   : > { %6477 = vmatprep.subr.mxu0 %v9471_v29  ;;  %6316 = vmatpush1.msra.mxu1 %v9453_v31  ;;  %v9523_v28 = vld [vmem:[%s12991_s9 + $0x468] sm:$0xff]  ;;  %v9505_v29 = vld [vmem:[%s12991_s9 + $0x400] sm:$0xff] }
 0xe3e   : > { %6478 = vmatpush1.msra.mxu0 %v9470_v15  ;;  %10412 = vmatprep.subr.mxu1 %v10553_v4  ;;  %v9522_v31 = vld [vmem:[%s12991_s9 + $0x460] sm:$0xff]  ;;  %v9521_v15 = vld [vmem:[%s12991_s9 + $0x458] sm:$0xff] }
 0xe3f   : > { %6479 = vmatprep.subr.mxu0 %v9469_v18  ;;  %v9520_v18 = vld [vmem:[%s12991_s9 + $0x450] sm:$0xff] }
 0xe40   : > { %6480 = vmatpush1.msra.mxu0 %v9468_v33  ;;  %v9519_v33 = vld [vmem:[%s12991_s9 + $0x448] sm:$0xff] }
 0xe41   : > { %6481 = vmatprep.subr.mxu0 %v9467_v34  ;;  %v9518_v34 = vld [vmem:[%s12991_s9 + $0x440] sm:$0xff] }
 0xe42   : > { %6482 = vmatpush1.msra.mxu0 %v9466_v35 }
 0xe43   : > { %10419 = vmatprep.subr.mxu0 %v10553_v4 }
 0xef0   : > { %v6019_v36 = vpop.f32.mrf.mxu1 }
 0xef1   : > { %v6024_v37 = vadd.f32 %v6019_v36, %v5858_v10 }
 0xef2   : > { %v6021_v38 = vpop.f32.mrf.mxu1 }
 0xef3   : > { %v6025_v39 = vadd.f32 %v6021_v38, %v5859_v14 }
 0xef4   : > { %v6185_v40 = vpop.f32.mrf.mxu0  ;;  %v6263_v41 = vpop.f32.mrf.mxu1 }
 0xef5   : > { %v6190_v42 = vadd.f32 %v6185_v40, %v6024_v37  ;;  %9463 = vmatmul.mubr.msk.f32.vlgmr.msra.gmra.mxu1 %vm1083_vm6, %v6263_v41 }
 0xef6   : > { %10413 = vmatpush3.msra.mxu1 %v11331_v30  ;;  %v6187_v43 = vpop.f32.mrf.mxu0  ;;  %v10404_v44 = vpop.f32.mrf.mxu1  ;;  %10416 = vmatprep.mubr.msk.f32.mxu1 %vm10554_vm4, %v10553_v4 }
 0xef7   : > { %v6191_v45 = vadd.f32 %v6187_v43, %v6025_v39  ;;  %10414 = vmatprep.subr.mxu1 %v10553_v4  ;;  %v9529_v44 = vld [vmem:[%s12990_s8 + $0x90] sm:$0xff] }
 0xef8   : > { %10415 = vmatpush3.msra.mxu1 %v11333_v32  ;;  %v6429_v46 = vpop.f32.mrf.mxu0 }
 0xef9   : > { %9476 = vmatmul.mubr.msk.f32.vlgmr.msra.gmra.mxu0 %vm1083_vm6, %v6429_v46  ;;  %10417 = vmatmul.mubr.msk.f32.vlgmr.msra.gmra.mxu1 %vm925_vm5, %v9477_v2  ;;  %v9538_v46 = vld [vmem:[%s12991_s9 + $0x4b8] sm:$0x1] }
 0xefa   : > { %10420 = vmatpush3.msra.mxu0 %v11331_v30  ;;  %10423 = vmatprep.mubr.msk.f32.mxu0 %vm10554_vm4, %v10553_v4  ;;  %v10411_v51 = vpop.f32.mrf.mxu0 }
 0xefb   : > { %10421 = vmatprep.subr.mxu0 %v10553_v4  ;;  %9487 = vmatprep.subr.msk.mxu1 %vm462_vm2, %v9486_v47  ;;  %v9537_v47 = vld [vmem:[%s12991_s9 + $0x4b0] sm:$0x1]  ;;  %v9535_v51 = vld [vmem:[%s12991_s9 + $0x4a0] sm:$0xff] }
 0xefc   : > { %10422 = vmatpush3.msra.mxu0 %v11333_v32  ;;  %9488 = vmatpush1.msk.msra.mxu1 %vm462_vm2, %v9485_v48  ;;  %v9542_v48 = vld [vmem:[%s12990_s8 + $0x98] sm:$0xff] }
 0xefd   : > { %10424 = vmatmul.mubr.msk.f32.vlgmr.msra.gmra.mxu0 %vm925_vm5, %v9490_v49  ;;  %6643 = vmatprep.subr.mxu1 %v9484_v50  ;;  %v9536_v49 = vld [vmem:[%s12991_s9 + $0x4a8] sm:$0xff] }
 0xefe   : > { %6644 = vmatpush1.msra.mxu1 %v9483_v52  ;;  %6681 = vmatprep.mubr.f32.mxu1 %v10553_v4  ;;  %v9534_v52 = vld [vmem:[%s12991_s9 + $0x498] sm:$0xff] }
 0xeff   : > { %6847 = vmatprep.mubr.f32.mxu0 %v10553_v4  ;;  %6645 = vmatprep.subr.mxu1 %v9482_v53  ;;  %v9551_v53 = vld [vmem:[%s12991_s9 + $0x4f8] sm:$0x1] }
 0xf00   : > { %9500 = vmatprep.subr.msk.mxu0 %vm462_vm2, %v9499_v54  ;;  %6646 = vmatpush1.msra.mxu1 %v9481_v55  ;;  %v9533_v54 = vld [vmem:[%s12991_s9 + $0x490] sm:$0xff] }
 0xf01   : > { %9501 = vmatpush1.msk.msra.mxu0 %vm462_vm2, %v9498_v56  ;;  %6647 = vmatprep.subr.mxu1 %v9480_v57  ;;  %v9550_v55 = vld [vmem:[%s12991_s9 + $0x4f0] sm:$0x1]  ;;  %v9532_v56 = vld [vmem:[%s12991_s9 + $0x488] sm:$0xff] }
 0xf02   : > { %6809 = vmatprep.subr.mxu0 %v9497_v58  ;;  %6648 = vmatpush1.msra.mxu1 %v9479_v59  ;;  %v9549_v57 = vld [vmem:[%s12991_s9 + $0x4e8] sm:$0xff]  ;;  %v9531_v58 = vld [vmem:[%s12991_s9 + $0x480] sm:$0xff] }
 0xf03   : > { %6810 = vmatpush1.msra.mxu0 %v9496_v60  ;;  %10426 = vmatprep.subr.mxu1 %v10553_v4  ;;  %v9548_v59 = vld [vmem:[%s12991_s9 + $0x4e0] sm:$0xff]  ;;  %v9547_v60 = vld [vmem:[%s12991_s9 + $0x4d8] sm:$0xff] }
 0xf04   : > { %6811 = vmatprep.subr.mxu0 %v9495_v61  ;;  %v9546_v61 = vld [vmem:[%s12991_s9 + $0x4d0] sm:$0xff] }
 0xf05   : > { %6812 = vmatpush1.msra.mxu0 %v9494_v62  ;;  %v9545_v62 = vld [vmem:[%s12991_s9 + $0x4c8] sm:$0xff] }
 0xf06   : > { %6813 = vmatprep.subr.mxu0 %v9493_v63  ;;  %v9544_v63 = vld [vmem:[%s12991_s9 + $0x4c0] sm:$0xff] }
 0xf07   : > { %6814 = vmatpush1.msra.mxu0 %v9492_v0 }
 0xf08   : > { %10433 = vmatprep.subr.mxu0 %v10553_v4 }
 0xfb5   : > { %v6351_v1 = vpop.f32.mrf.mxu1 }
 0xfb6   : > { %v6356_v3 = vadd.f32 %v6351_v1, %v6190_v42 }
 0xfb7   : > { %v6353_v5 = vpop.f32.mrf.mxu1 }
 0xfb8   : > { %v6357_v6 = vadd.f32 %v6353_v5, %v6191_v45 }
 0xfb9   : > { %v6517_v7 = vpop.f32.mrf.mxu0  ;;  %v6595_v8 = vpop.f32.mrf.mxu1 }
 0xfba   : > { %v6522_v9 = vadd.f32 %v6517_v7, %v6356_v3  ;;  %9489 = vmatmul.mubr.msk.f32.vlgmr.msra.gmra.mxu1 %vm1083_vm6, %v6595_v8 }
 0xfbb   : > { %10427 = vmatpush3.msra.mxu1 %v11331_v30  ;;  %v6519_v10 = vpop.f32.mrf.mxu0  ;;  %v10418_v11 = vpop.f32.mrf.mxu1  ;;  %10430 = vmatprep.mubr.msk.f32.mxu1 %vm10554_vm4, %v10553_v4 }
 0xfbc   : > { %v6523_v13 = vadd.f32 %v6519_v10, %v6357_v6  ;;  %10428 = vmatprep.subr.mxu1 %v10553_v4  ;;  %v9555_v11 = vld [vmem:[%s12990_s8 + $0xa0] sm:$0xff] }
 0xfbd   : > { %10429 = vmatpush3.msra.mxu1 %v11333_v32  ;;  %v6761_v14 = vpop.f32.mrf.mxu0 }
 0xfbe   : > { %9502 = vmatmul.mubr.msk.f32.vlgmr.msra.gmra.mxu0 %vm1083_vm6, %v6761_v14  ;;  %10431 = vmatmul.mubr.msk.f32.vlgmr.msra.gmra.mxu1 %vm925_vm5, %v9503_v12  ;;  %v9564_v14 = vld [vmem:[%s12991_s9 + $0x538] sm:$0x1] }
 0xfbf   : > { %10434 = vmatpush3.msra.mxu0 %v11331_v30  ;;  %10437 = vmatprep.mubr.msk.f32.mxu0 %vm10554_vm4, %v10553_v4  ;;  %v10425_v21 = vpop.f32.mrf.mxu0 }
 0xfc0   : > { %10435 = vmatprep.subr.mxu0 %v10553_v4  ;;  %9513 = vmatprep.subr.msk.mxu1 %vm462_vm2, %v9512_v16  ;;  %v9563_v16 = vld [vmem:[%s12991_s9 + $0x530] sm:$0x1]  ;;  %v9561_v21 = vld [vmem:[%s12991_s9 + $0x520] sm:$0xff] }
 0xfc1   : > { %10436 = vmatpush3.msra.mxu0 %v11333_v32  ;;  %9514 = vmatpush1.msk.msra.mxu1 %vm462_vm2, %v9511_v17  ;;  %v9568_v17 = vld [vmem:[%s12990_s8 + $0xa8] sm:$0xff] }
 0xfc2   : > { %10438 = vmatmul.mubr.msk.f32.vlgmr.msra.gmra.mxu0 %vm925_vm5, %v9516_v19  ;;  %6975 = vmatprep.subr.mxu1 %v9510_v20  ;;  %v9562_v19 = vld [vmem:[%s12991_s9 + $0x528] sm:$0xff] }
 0xfc3   : > { %6976 = vmatpush1.msra.mxu1 %v9509_v22  ;;  %7013 = vmatprep.mubr.f32.mxu1 %v10553_v4  ;;  %v9560_v22 = vld [vmem:[%s12991_s9 + $0x518] sm:$0xff] }
 0xfc4   : > { %7179 = vmatprep.mubr.f32.mxu0 %v10553_v4  ;;  %6977 = vmatprep.subr.mxu1 %v9508_v23  ;;  %v9577_v23 = vld [vmem:[%s12991_s9 + $0x578] sm:$0x1] }
 0xfc5   : > { %9526 = vmatprep.subr.msk.mxu0 %vm462_vm2, %v9525_v24  ;;  %6978 = vmatpush1.msra.mxu1 %v9507_v25  ;;  %v9559_v24 = vld [vmem:[%s12991_s9 + $0x510] sm:$0xff] }
 0xfc6   : > { %9527 = vmatpush1.msk.msra.mxu0 %vm462_vm2, %v9524_v26  ;;  %6979 = vmatprep.subr.mxu1 %v9506_v27  ;;  %v9576_v25 = vld [vmem:[%s12991_s9 + $0x570] sm:$0x1]  ;;  %v9558_v26 = vld [vmem:[%s12991_s9 + $0x508] sm:$0xff] }
 0xfc7   : > { %7141 = vmatprep.subr.mxu0 %v9523_v28  ;;  %6980 = vmatpush1.msra.mxu1 %v9505_v29  ;;  %v9575_v27 = vld [vmem:[%s12991_s9 + $0x568] sm:$0xff]  ;;  %v9557_v28 = vld [vmem:[%s12991_s9 + $0x500] sm:$0xff] }
 0xfc8   : > { %7142 = vmatpush1.msra.mxu0 %v9522_v31  ;;  %10440 = vmatprep.subr.mxu1 %v10553_v4  ;;  %v9574_v29 = vld [vmem:[%s12991_s9 + $0x560] sm:$0xff]  ;;  %v9573_v31 = vld [vmem:[%s12991_s9 + $0x558] sm:$0xff] }
 0xfc9   : > { %7143 = vmatprep.subr.mxu0 %v9521_v15  ;;  %v9572_v15 = vld [vmem:[%s12991_s9 + $0x550] sm:$0xff] }
 0xfca   : > { %7144 = vmatpush1.msra.mxu0 %v9520_v18  ;;  %v9571_v18 = vld [vmem:[%s12991_s9 + $0x548] sm:$0xff] }
 0xfcb   : > { %7145 = vmatprep.subr.mxu0 %v9519_v33  ;;  %v9570_v33 = vld [vmem:[%s12991_s9 + $0x540] sm:$0xff] }
 0xfcc   : > { %7146 = vmatpush1.msra.mxu0 %v9518_v34 }
 0xfcd   : > { %10447 = vmatprep.subr.mxu0 %v10553_v4 }
0x107a   : > { %v6683_v35 = vpop.f32.mrf.mxu1 }
0x107b   : > { %v6688_v36 = vadd.f32 %v6683_v35, %v6522_v9 }
0x107c   : > { %v6685_v37 = vpop.f32.mrf.mxu1 }
0x107d   : > { %v6689_v38 = vadd.f32 %v6685_v37, %v6523_v13 }
0x107e   : > { %v6849_v39 = vpop.f32.mrf.mxu0  ;;  %v6927_v40 = vpop.f32.mrf.mxu1 }
0x107f   : > { %v6854_v41 = vadd.f32 %v6849_v39, %v6688_v36  ;;  %9515 = vmatmul.mubr.msk.f32.vlgmr.msra.gmra.mxu1 %vm1083_vm6, %v6927_v40 }
0x1080   : > { %10441 = vmatpush3.msra.mxu1 %v11331_v30  ;;  %v6851_v42 = vpop.f32.mrf.mxu0  ;;  %v10432_v43 = vpop.f32.mrf.mxu1  ;;  %10444 = vmatprep.mubr.msk.f32.mxu1 %vm10554_vm4, %v10553_v4 }
0x1081   : > { %v6855_v2 = vadd.f32 %v6851_v42, %v6689_v38  ;;  %10442 = vmatprep.subr.mxu1 %v10553_v4  ;;  %v9581_v43 = vld [vmem:[%s12990_s8 + $0xb0] sm:$0xff] }
0x1082   : > { %10443 = vmatpush3.msra.mxu1 %v11333_v32  ;;  %v7093_v45 = vpop.f32.mrf.mxu0 }
0x1083   : > { %9528 = vmatmul.mubr.msk.f32.vlgmr.msra.gmra.mxu0 %vm1083_vm6, %v7093_v45  ;;  %10445 = vmatmul.mubr.msk.f32.vlgmr.msra.gmra.mxu1 %vm925_vm5, %v9529_v44  ;;  %v9590_v45 = vld [vmem:[%s12991_s9 + $0x5b8] sm:$0x1] }
0x1084   : > { %10448 = vmatpush3.msra.mxu0 %v11331_v30  ;;  %10451 = vmatprep.mubr.msk.f32.mxu0 %vm10554_vm4, %v10553_v4  ;;  %v10439_v50 = vpop.f32.mrf.mxu0 }
0x1085   : > { %10449 = vmatprep.subr.mxu0 %v10553_v4  ;;  %9539 = vmatprep.subr.msk.mxu1 %vm462_vm2, %v9538_v46  ;;  %v9589_v46 = vld [vmem:[%s12991_s9 + $0x5b0] sm:$0x1]  ;;  %v9587_v50 = vld [vmem:[%s12991_s9 + $0x5a0] sm:$0xff] }
0x1086   : > { %10450 = vmatpush3.msra.mxu0 %v11333_v32  ;;  %9540 = vmatpush1.msk.msra.mxu1 %vm462_vm2, %v9537_v47  ;;  %v9594_v47 = vld [vmem:[%s12990_s8 + $0xb8] sm:$0xff] }
0x1087   : > { %10452 = vmatmul.mubr.msk.f32.vlgmr.msra.gmra.mxu0 %vm925_vm5, %v9542_v48  ;;  %7307 = vmatprep.subr.mxu1 %v9536_v49  ;;  %v9588_v48 = vld [vmem:[%s12991_s9 + $0x5a8] sm:$0xff] }
0x1088   : > { %7308 = vmatpush1.msra.mxu1 %v9535_v51  ;;  %7345 = vmatprep.mubr.f32.mxu1 %v10553_v4  ;;  %v9586_v51 = vld [vmem:[%s12991_s9 + $0x598] sm:$0xff] }
0x1089   : > { %7511 = vmatprep.mubr.f32.mxu0 %v10553_v4  ;;  %7309 = vmatprep.subr.mxu1 %v9534_v52  ;;  %v9585_v52 = vld [vmem:[%s12991_s9 + $0x590] sm:$0xff] }
0x108a   : > { %9552 = vmatprep.subr.msk.mxu0 %vm462_vm2, %v9551_v53  ;;  %7310 = vmatpush1.msra.mxu1 %v9533_v54  ;;  %v9603_v53 = vld [vmem:[%s12991_s9 + $0x5f8] sm:$0x1]  ;;  %v9584_v54 = vld [vmem:[%s12991_s9 + $0x588] sm:$0xff] }
0x108b   : > { %9553 = vmatpush1.msk.msra.mxu0 %vm462_vm2, %v9550_v55  ;;  %7311 = vmatprep.subr.mxu1 %v9532_v56  ;;  %v9602_v55 = vld [vmem:[%s12991_s9 + $0x5f0] sm:$0x1]  ;;  %v9583_v56 = vld [vmem:[%s12991_s9 + $0x580] sm:$0xff] }
0x108c   : > { %7473 = vmatprep.subr.mxu0 %v9549_v57  ;;  %7312 = vmatpush1.msra.mxu1 %v9531_v58  ;;  %v9601_v57 = vld [vmem:[%s12991_s9 + $0x5e8] sm:$0xff]  ;;  %v9600_v58 = vld [vmem:[%s12991_s9 + $0x5e0] sm:$0xff] }
0x108d   : > { %7474 = vmatpush1.msra.mxu0 %v9548_v59  ;;  %10454 = vmatprep.subr.mxu1 %v10553_v4  ;;  %v9599_v59 = vld [vmem:[%s12991_s9 + $0x5d8] sm:$0xff] }
0x108e   : > { %7475 = vmatprep.subr.mxu0 %v9547_v60  ;;  %v9598_v60 = vld [vmem:[%s12991_s9 + $0x5d0] sm:$0xff] }
0x108f   : > { %7476 = vmatpush1.msra.mxu0 %v9546_v61  ;;  %v9597_v61 = vld [vmem:[%s12991_s9 + $0x5c8] sm:$0xff] }
0x1090   : > { %7477 = vmatprep.subr.mxu0 %v9545_v62  ;;  %v9596_v62 = vld [vmem:[%s12991_s9 + $0x5c0] sm:$0xff] }
0x1091   : > { %7478 = vmatpush1.msra.mxu0 %v9544_v63 }
0x1092   : > { %10461 = vmatprep.subr.mxu0 %v10553_v4 }
0x113f   : > { %v7015_v0 = vpop.f32.mrf.mxu1 }
0x1140   : > { %v7020_v1 = vadd.f32 %v7015_v0, %v6854_v41 }
0x1141   : > { %v7017_v3 = vpop.f32.mrf.mxu1 }
0x1142   : > { %v7021_v5 = vadd.f32 %v7017_v3, %v6855_v2 }
0x1143   : > { %v7181_v6 = vpop.f32.mrf.mxu0  ;;  %v7259_v7 = vpop.f32.mrf.mxu1 }
0x1144   : > { %v7186_v8 = vadd.f32 %v7181_v6, %v7020_v1  ;;  %9541 = vmatmul.mubr.msk.f32.vlgmr.msra.gmra.mxu1 %vm1083_vm6, %v7259_v7 }
0x1145   : > { %10455 = vmatpush3.msra.mxu1 %v11331_v30  ;;  %v7183_v9 = vpop.f32.mrf.mxu0  ;;  %v10446_v10 = vpop.f32.mrf.mxu1  ;;  %10458 = vmatprep.mubr.msk.f32.mxu1 %vm10554_vm4, %v10553_v4 }
0x1146   : > { %v7187_v12 = vadd.f32 %v7183_v9, %v7021_v5  ;;  %10456 = vmatprep.subr.mxu1 %v10553_v4  ;;  %v9607_v10 = vld [vmem:[%s12990_s8 + $0xc0] sm:$0xff] }
0x1147   : > { %10457 = vmatpush3.msra.mxu1 %v11333_v32  ;;  %v7425_v13 = vpop.f32.mrf.mxu0 }
0x1148   : > { %9554 = vmatmul.mubr.msk.f32.vlgmr.msra.gmra.mxu0 %vm1083_vm6, %v7425_v13  ;;  %10459 = vmatmul.mubr.msk.f32.vlgmr.msra.gmra.mxu1 %vm925_vm5, %v9555_v11  ;;  %v9615_v13 = vld [vmem:[%s12991_s9 + $0x630] sm:$0x1] }
0x1149   : > { %10462 = vmatpush3.msra.mxu0 %v11331_v30  ;;  %10465 = vmatprep.mubr.msk.f32.mxu0 %vm10554_vm4, %v10553_v4  ;;  %v10453_v20 = vpop.f32.mrf.mxu0 }
0x114a   : > { %10463 = vmatprep.subr.mxu0 %v10553_v4  ;;  %9565 = vmatprep.subr.msk.mxu1 %vm462_vm2, %v9564_v14  ;;  %v9614_v14 = vld [vmem:[%s12991_s9 + $0x628] sm:$0xff] }
0x114b   : > { %10464 = vmatpush3.msra.mxu0 %v11333_v32  ;;  %9566 = vmatpush1.msk.msra.mxu1 %vm462_vm2, %v9563_v16  ;;  %v9610_v20 = vld [vmem:[%s12991_s9 + $0x608] sm:$0xff] }
0x114c   : > { %10466 = vmatmul.mubr.msk.f32.vlgmr.msra.gmra.mxu0 %vm925_vm5, %v9568_v17  ;;  %7639 = vmatprep.subr.mxu1 %v9562_v19  ;;  %v9612_v17 = vld [vmem:[%s12991_s9 + $0x618] sm:$0xff]  ;;  %v9611_v19 = vld [vmem:[%s12991_s9 + $0x610] sm:$0xff] }
0x114d   : > { %7640 = vmatpush1.msra.mxu1 %v9561_v21  ;;  %7677 = vmatprep.mubr.f32.mxu1 %v10553_v4  ;;  %v9609_v21 = vld [vmem:[%s12991_s9 + $0x600] sm:$0xff] }
0x114e   : > { %7843 = vmatprep.mubr.f32.mxu0 %v10553_v4  ;;  %7641 = vmatprep.subr.mxu1 %v9560_v22  ;;  %v8464_v22 = vld [vmem:[%s12992_s10 + $0x350] sm:$0xff] }
0x114f   : > { %9578 = vmatprep.subr.msk.mxu0 %vm462_vm2, %v9577_v23  ;;  %7642 = vmatpush1.msra.mxu1 %v9559_v24  ;;  %v8466_v23 = vld [vmem:[%s12992_s10 + $0x360] sm:$0xff]  ;;  %v8463_v24 = vld [vmem:[%s12992_s10 + $0x348] sm:$0xff] }
0x1150   : > { %9579 = vmatpush1.msk.msra.mxu0 %vm462_vm2, %v9576_v25  ;;  %7643 = vmatprep.subr.mxu1 %v9558_v26  ;;  %v10557_v25 = vmov 3   ;;  %v8457_v26 = vld [vmem:[%s12992_s10 + $0x318] sm:$0xff] }
0x1151   : > { %7805 = vmatprep.subr.mxu0 %v9575_v27  ;;  %7644 = vmatpush1.msra.mxu1 %v9557_v28  ;;  %v12297_v27 = vld [vmem:[%s12994_s12] sm:$0xff]  ;;  %v8456_v28 = vld [vmem:[%s12992_s10 + $0x310] sm:$0xff] }
0x1152   : > { %7806 = vmatpush1.msra.mxu0 %v9574_v29  ;;  %10468 = vmatprep.subr.mxu1 %v10553_v4  ;;  %v8450_v29 = vld [vmem:[%s12992_s10 + $0x2e0] sm:$0xff] }
0x1153   : > { %7807 = vmatprep.subr.mxu0 %v9573_v31  ;;  %10510 = vset.pattern.permute.xlu1 %v10557_v25  ;;  %v8449_v31 = vld [vmem:[%s12992_s10 + $0x2d8] sm:$0xff] }
0x1154   : > { %7808 = vmatpush1.msra.mxu0 %v9572_v15  ;;  %8351 = vperm.xlu1 %10510, %v12297_v27   ;;  %v8443_v15 = vld [vmem:[%s12992_s10 + $0x2a8] sm:$0xff]  ;;  %v8437_v25 = vld [vmem:[%s12992_s10 + $0x278] sm:$0xff] }
0x1155   : > { %7809 = vmatprep.subr.mxu0 %v9571_v18  ;;  %v8442_v18 = vld [vmem:[%s12992_s10 + $0x2a0] sm:$0xff] }
0x1156   : > { %7810 = vmatpush1.msra.mxu0 %v9570_v33  ;;  %v8436_v33 = vld [vmem:[%s12992_s10 + $0x270] sm:$0xff] }
0x1157   : > { %10475 = vmatprep.subr.mxu0 %v10553_v4 }
0x1204   : > { %v7347_v34 = vpop.f32.mrf.mxu1 }
0x1205   : > { %v7352_v35 = vadd.f32 %v7347_v34, %v7186_v8  ;;  %v8435_v34 = vld [vmem:[%s12992_s10 + $0x268] sm:$0xff] }
0x1206   : > { %v7349_v36 = vpop.f32.mrf.mxu1 }
0x1207   : > { %v7353_v37 = vadd.f32 %v7349_v36, %v7187_v12  ;;  %v9616_v12 = vld [vmem:[%s12991_s9 + $0x638] sm:$0x1]  ;;  %v8428_v36 = vld [vmem:[%s12992_s10 + $0x230] sm:$0xff] }
0x1208   : > { %v7513_v38 = vpop.f32.mrf.mxu0  ;;  %v7591_v39 = vpop.f32.mrf.mxu1 }
0x1209   : > { %v7518_v40 = vadd.f32 %v7513_v38, %v7352_v35  ;;  %9567 = vmatmul.mubr.msk.f32.vlgmr.msra.gmra.mxu1 %vm1083_vm6, %v7591_v39  ;;  %v8429_v35 = vld [vmem:[%s12992_s10 + $0x238] sm:$0xff]  ;;  %v8415_v39 = vld [vmem:[%s12992_s10 + $0x1c8] sm:$0xff] }
0x120a   : > { %10469 = vmatpush3.msra.mxu1 %v11331_v30  ;;  %v7515_v41 = vpop.f32.mrf.mxu0  ;;  %v10460_v42 = vpop.f32.mrf.mxu1  ;;  %10472 = vmatprep.mubr.msk.f32.mxu1 %vm10554_vm4, %v10553_v4  ;;  %v8421_v38 = vld [vmem:[%s12992_s10 + $0x1f8] sm:$0xff] }
0x120b   : > { %v7519_v44 = vadd.f32 %v7515_v41, %v7353_v37  ;;  %10470 = vmatprep.subr.mxu1 %v10553_v4  ;;  %v8422_v37 = vld [vmem:[%s12992_s10 + $0x200] sm:$0xff]  ;;  %v8408_v41 = vld [vmem:[%s12992_s10 + $0x190] sm:$0xff]  ;;  %v8407_v42 = vld [vmem:[%s12992_s10 + $0x188] sm:$0xff] }
0x120c   : > { %10471 = vmatpush3.msra.mxu1 %v11333_v32  ;;  %v7757_v2 = vpop.f32.mrf.mxu0 }
0x120d   : > { %9580 = vmatmul.mubr.msk.f32.vlgmr.msra.gmra.mxu0 %vm1083_vm6, %v7757_v2  ;;  %10473 = vmatmul.mubr.msk.f32.vlgmr.msra.gmra.mxu1 %vm925_vm5, %v9581_v43  ;;  %v8401_v43 = vld [vmem:[%s12992_s10 + $0x158] sm:$0xff]  ;;  %v8394_v2 = vld [vmem:[%s12992_s10 + $0x120] sm:$0xff] }
0x120e   : > { %10476 = vmatpush3.msra.mxu0 %v11331_v30  ;;  %10479 = vmatprep.mubr.msk.f32.mxu0 %vm10554_vm4, %v10553_v4  ;;  %v10467_v49 = vpop.f32.mrf.mxu0 }
0x120f   : > { %10477 = vmatprep.subr.mxu0 %v10553_v4  ;;  %9591 = vmatprep.subr.msk.mxu1 %vm462_vm2, %v9590_v45  ;;  %v8393_v45 = vld [vmem:[%s12992_s10 + $0x118] sm:$0xff]  ;;  %v8379_v49 = vld [vmem:[%s12992_s10 + $0xa8] sm:$0xff] }
0x1210   : > { %10478 = vmatpush3.msra.mxu0 %v11333_v32  ;;  %9592 = vmatpush1.msk.msra.mxu1 %vm462_vm2, %v9589_v46  ;;  %v8387_v46 = vld [vmem:[%s12992_s10 + $0xe8] sm:$0xff] }
0x1211   : > { %10480 = vmatmul.mubr.msk.f32.vlgmr.msra.gmra.mxu0 %vm925_vm5, %v9594_v47  ;;  %7971 = vmatprep.subr.mxu1 %v9588_v48  ;;  %v8386_v47 = vld [vmem:[%s12992_s10 + $0xe0] sm:$0xff]  ;;  %v8380_v48 = vld [vmem:[%s12992_s10 + $0xb0] sm:$0xff] }
0x1212   : > { %7972 = vmatpush1.msra.mxu1 %v9587_v50  ;;  %8009 = vmatprep.mubr.f32.mxu1 %v10553_v4  ;;  %v8373_v50 = vld [vmem:[%s12992_s10 + $0x78] sm:$0xff] }
0x1213   : > { %8175 = vmatprep.mubr.f32.mxu0 %v10553_v4  ;;  %7973 = vmatprep.subr.mxu1 %v9586_v51  ;;  %v8372_v51 = vld [vmem:[%s12992_s10 + $0x70] sm:$0xff] }
0x1214   : > { %7974 = vmatpush1.msra.mxu1 %v9585_v52  ;;  %9604 = vmatprep.subr.msk.mxu0 %vm462_vm2, %v9603_v53  ;;  %v8366_v52 = vld [vmem:[%s12992_s10 + $0x40] sm:$0xff]  ;;  %v8365_v53 = vld [vmem:[%s12992_s10 + $0x38] sm:$0xff] }
0x1215   : > { %7975 = vmatprep.subr.mxu1 %v9584_v54  ;;  %9605 = vmatpush1.msk.msra.mxu0 %vm462_vm2, %v9602_v55  ;;  %v8359_v54 = vld [vmem:[%s12992_s10 + $0x8] sm:$0xff]  ;;  %v8358_v55 = vld [vmem:[%s12992_s10] sm:$0xff] }
0x1216   : > { %7976 = vmatpush1.msra.mxu1 %v9583_v56  ;;  %8137 = vmatprep.subr.mxu0 %v9601_v57  ;;  %v8555_v56 = vld [vmem:[%s12992_s10 + $0x628] sm:$0x1]  ;;  %v8554_v57 = vld [vmem:[%s12992_s10 + $0x620] sm:$0x1] }
0x1217   : > { %8138 = vmatpush1.msra.mxu0 %v9600_v58  ;;  %10482 = vmatprep.subr.mxu1 %v10553_v4  ;;  %v8548_v58 = vld [vmem:[%s12992_s10 + $0x5f0] sm:$0xff] }
0x1218   : > { %8139 = vmatprep.subr.mxu0 %v9599_v59  ;;  %v8547_v59 = vld [vmem:[%s12992_s10 + $0x5e8] sm:$0xff] }
0x1219   : > { %8140 = vmatpush1.msra.mxu0 %v9598_v60  ;;  %v8541_v60 = vld [vmem:[%s12992_s10 + $0x5b8] sm:$0xff] }
0x121a   : > { %8141 = vmatprep.subr.mxu0 %v9597_v61  ;;  %v8540_v61 = vld [vmem:[%s12992_s10 + $0x5b0] sm:$0xff] }
0x121b   : > { %8142 = vmatpush1.msra.mxu0 %v9596_v62  ;;  %v8534_v62 = vld [vmem:[%s12992_s10 + $0x580] sm:$0xff] }
0x121c   : > { %8586 = vmatprep.subr.mxu0 %v8464_v22  ;;  %v8445_v22 = vld [vmem:[%s12992_s10 + $0x2b8] sm:$0xff] }
0x12c9   : > { %v7679_v63 = vpop.f32.mrf.mxu1 }
0x12ca   : > { %v7684_v0 = vadd.f32 %v7679_v63, %v7518_v40  ;;  %v8414_v40 = vld [vmem:[%s12992_s10 + $0x1c0] sm:$0xff]  ;;  %v8533_v63 = vld [vmem:[%s12992_s10 + $0x578] sm:$0xff] }
0x12cb   : > { %v7681_v1 = vpop.f32.mrf.mxu1 }
0x12cc   : > { %v7685_v3 = vadd.f32 %v7681_v1, %v7519_v44  ;;  %v8400_v44 = vld [vmem:[%s12992_s10 + $0x150] sm:$0xff]  ;;  %v8526_v1 = vld [vmem:[%s12992_s10 + $0x540] sm:$0xff] }
0x12cd   : > { %v7845_v5 = vpop.f32.mrf.mxu0  ;;  %v7923_v6 = vpop.f32.mrf.mxu1 }
0x12ce   : > { %v12240_v7 = vadd.f32 %v7845_v5, %v7684_v0  ;;  %9593 = vmatmul.mubr.msk.f32.vlgmr.msra.gmra.mxu1 %vm1083_vm6, %v7923_v6  ;;  %v8527_v0 = vld [vmem:[%s12992_s10 + $0x548] sm:$0xff]  ;;  %v8513_v6 = vld [vmem:[%s12992_s10 + $0x4d8] sm:$0xff] }
0x12cf   : > { %10483 = vmatpush3.msra.mxu1 %v11331_v30  ;;  %v7847_v8 = vpop.f32.mrf.mxu0  ;;  %v10474_v9 = vpop.f32.mrf.mxu1  ;;  %10486 = vmatprep.mubr.msk.f32.mxu1 %vm10554_vm4, %v10553_v4  ;;  %v8519_v5 = vld [vmem:[%s12992_s10 + $0x508] sm:$0xff] }
0x12d0   : > { %v12249_v11 = vadd.f32 %v7847_v8, %v7685_v3  ;;  %10484 = vmatprep.subr.mxu1 %v10553_v4  ;;  %v8520_v3 = vld [vmem:[%s12992_s10 + $0x510] sm:$0xff]  ;;  %v8506_v9 = vld [vmem:[%s12992_s10 + $0x4a0] sm:$0xff] }
0x12d1   : > { %10485 = vmatpush3.msra.mxu1 %v11333_v32  ;;  %v8089_v30 = vpop.f32.mrf.mxu0  ;;  %v9613_v32 = vld [vmem:[%s12991_s9 + $0x620] sm:$0xff]  ;;  %v8512_v8 = vld [vmem:[%s12992_s10 + $0x4d0] sm:$0xff] }
0x12d2   : > { %9606 = vmatmul.mubr.msk.f32.vlgmr.msra.gmra.mxu0 %vm1083_vm6, %v8089_v30  ;;  %10487 = vmatmul.mubr.msk.f32.vlgmr.msra.gmra.mxu1 %vm925_vm5, %v9607_v10  ;;  %v8505_v10 = vld [vmem:[%s12992_s10 + $0x498] sm:$0xff] }
0x12d3   : > { %9617 = vmatprep.subr.msk.mxu1 %vm462_vm2, %v9616_v12  ;;  %v10481_v16 = vpop.f32.mrf.mxu0  ;;  %8341 = vmatprep.mubr.f32.mxu1 %v10553_v4  ;;  %v8499_v12 = vld [vmem:[%s12992_s10 + $0x468] sm:$0xff] }
0x12d4   : > { %9618 = vmatpush1.msk.msra.mxu1 %vm462_vm2, %v9615_v13  ;;  %8587 = vmatpush1.msra.mxu0 %v8463_v24  ;;  %v8438_v24 = vld [vmem:[%s12992_s10 + $0x280] sm:$0xff] }
0x12d5   : > { %8303 = vmatprep.subr.mxu1 %v9614_v14  ;;  %8588 = vmatprep.subr.mxu0 %v8457_v26  ;;  %v8431_v26 = vld [vmem:[%s12992_s10 + $0x248] sm:$0xff] }
0x12d6   : > { %8304 = vmatpush1.msra.mxu1 %v9613_v32  ;;  %8589 = vmatpush1.msra.mxu0 %v8456_v28  ;;  %v8465_v32 = vld [vmem:[%s12992_s10 + $0x358] sm:$0xff]  ;;  %v8430_v28 = vld [vmem:[%s12992_s10 + $0x240] sm:$0xff] }
0x12d7   : > { %8305 = vmatprep.subr.mxu1 %v9612_v17  ;;  %8590 = vmatprep.subr.mxu0 %v8450_v29  ;;  %v8424_v29 = vld [vmem:[%s12992_s10 + $0x210] sm:$0xff] }
0x12d8   : > { %8306 = vmatpush1.msra.mxu1 %v9611_v19  ;;  %8591 = vmatpush1.msra.mxu0 %v8449_v31  ;;  %v8459_v19 = vld [vmem:[%s12992_s10 + $0x328] sm:$0xff] }
0x12d9   : > { %8307 = vmatprep.subr.mxu1 %v9610_v20  ;;  %8592 = vmatprep.subr.mxu0 %v8443_v15  ;;  %v8423_v31 = vld [vmem:[%s12992_s10 + $0x208] sm:$0xff]  ;;  %v8417_v15 = vld [vmem:[%s12992_s10 + $0x1d8] sm:$0xff] }
0x12da   : > { %8308 = vmatpush1.msra.mxu1 %v9609_v21  ;;  %8593 = vmatpush1.msra.mxu0 %v8442_v18  ;;  %v8451_v21 = vld [vmem:[%s12992_s10 + $0x2e8] sm:$0xff]  ;;  %v8416_v18 = vld [vmem:[%s12992_s10 + $0x1d0] sm:$0xff] }
0x12db   : > { %8657 = vmatprep.subr.mxu1 %v8466_v23  ;;  %8594 = vmatprep.subr.mxu0 %v8436_v33  ;;  %v8444_v23 = vld [vmem:[%s12992_s10 + $0x2b0] sm:$0xff]  ;;  %v8410_v33 = vld [vmem:[%s12992_s10 + $0x1a0] sm:$0xff] }
0x12dc   : > { %8595 = vmatpush1.msra.mxu0 %v8435_v34  ;;  %v8409_v34 = vld [vmem:[%s12992_s10 + $0x198] sm:$0xff] }
0x12dd   : > { %8596 = vmatprep.subr.mxu0 %v8429_v35  ;;  %v8403_v35 = vld [vmem:[%s12992_s10 + $0x168] sm:$0xff] }
0x12de   : > { %8597 = vmatpush1.msra.mxu0 %v8428_v36  ;;  %v8402_v36 = vld [vmem:[%s12992_s10 + $0x160] sm:$0xff] }
0x12df   : > { %8598 = vmatprep.subr.mxu0 %v8422_v37  ;;  %v8396_v37 = vld [vmem:[%s12992_s10 + $0x130] sm:$0xff] }
0x12e0   : > { %8599 = vmatpush1.msra.mxu0 %v8421_v38  ;;  %v8395_v38 = vld [vmem:[%s12992_s10 + $0x128] sm:$0xff] }
0x12e1   : > { %8600 = vmatprep.subr.mxu0 %v8415_v39  ;;  %v8389_v39 = vld [vmem:[%s12992_s10 + $0xf8] sm:$0xff] }
0x12e2   : > { %8601 = vmatpush1.msra.mxu0 %v8414_v40  ;;  %v8388_v40 = vld [vmem:[%s12992_s10 + $0xf0] sm:$0xff] }
0x12e3   : > { %8602 = vmatprep.subr.mxu0 %v8408_v41  ;;  %v8382_v41 = vld [vmem:[%s12992_s10 + $0xc0] sm:$0xff] }
0x12e4   : > { %8603 = vmatpush1.msra.mxu0 %v8407_v42  ;;  %v8381_v42 = vld [vmem:[%s12992_s10 + $0xb8] sm:$0xff] }
0x12e5   : > { %8604 = vmatprep.subr.mxu0 %v8401_v43  ;;  %v8375_v43 = vld [vmem:[%s12992_s10 + $0x88] sm:$0xff] }
0x12e6   : > { %8605 = vmatpush1.msra.mxu0 %v8400_v44  ;;  %v8374_v44 = vld [vmem:[%s12992_s10 + $0x80] sm:$0xff] }
0x12e7   : > { %8606 = vmatprep.subr.mxu0 %v8394_v2  ;;  %v8368_v2 = vld [vmem:[%s12992_s10 + $0x50] sm:$0xff] }
0x12e8   : > { %8607 = vmatpush1.msra.mxu0 %v8393_v45  ;;  %v8367_v45 = vld [vmem:[%s12992_s10 + $0x48] sm:$0xff] }
0x12e9   : > { %8608 = vmatprep.subr.mxu0 %v8387_v46  ;;  %v8361_v46 = vld [vmem:[%s12992_s10 + $0x18] sm:$0xff] }
0x12ea   : > { %8609 = vmatpush1.msra.mxu0 %v8386_v47  ;;  %v8360_v47 = vld [vmem:[%s12992_s10 + $0x10] sm:$0xff] }
0x12eb   : > { %8610 = vmatprep.subr.mxu0 %v8380_v48  ;;  %v8557_v48 = vld [vmem:[%s12992_s10 + $0x638] sm:$0x1] }
0x12ec   : > { %8611 = vmatpush1.msra.mxu0 %v8379_v49  ;;  %v8556_v49 = vld [vmem:[%s12992_s10 + $0x630] sm:$0x1] }
0x12ed   : > { %8612 = vmatprep.subr.mxu0 %v8373_v50  ;;  %v8550_v50 = vld [vmem:[%s12992_s10 + $0x600] sm:$0xff] }
0x12ee   : > { %8613 = vmatpush1.msra.mxu0 %v8372_v51  ;;  %v8549_v51 = vld [vmem:[%s12992_s10 + $0x5f8] sm:$0xff] }
0x12ef   : > { %8614 = vmatprep.subr.mxu0 %v8366_v52  ;;  %v8543_v52 = vld [vmem:[%s12992_s10 + $0x5c8] sm:$0xff] }
0x12f0   : > { %8615 = vmatpush1.msra.mxu0 %v8365_v53  ;;  %v8542_v53 = vld [vmem:[%s12992_s10 + $0x5c0] sm:$0xff] }
0x12f1   : > { %8616 = vmatprep.subr.mxu0 %v8359_v54  ;;  %v8536_v54 = vld [vmem:[%s12992_s10 + $0x590] sm:$0xff] }
0x12f2   : > { %8617 = vmatpush1.msra.mxu0 %v8358_v55  ;;  %v8535_v55 = vld [vmem:[%s12992_s10 + $0x588] sm:$0xff] }
0x12f3   : > { %9620 = vmatprep.subr.msk.mxu0 %vm462_vm2, %v8555_v56  ;;  %v8529_v56 = vld [vmem:[%s12992_s10 + $0x558] sm:$0xff] }
0x12f4   : > { %9621 = vmatpush2.msk.msra.mxu0 %vm462_vm2, %v8554_v57  ;;  %v8528_v57 = vld [vmem:[%s12992_s10 + $0x550] sm:$0xff] }
0x12f5   : > { %8626 = vmatprep.subr.mxu0 %v8548_v58  ;;  %v8522_v58 = vld [vmem:[%s12992_s10 + $0x520] sm:$0xff] }
0x12f6   : > { %8627 = vmatpush2.msra.mxu0 %v8547_v59  ;;  %v8521_v59 = vld [vmem:[%s12992_s10 + $0x518] sm:$0xff] }
0x12f7   : > { %8628 = vmatprep.subr.mxu0 %v8541_v60  ;;  %v8515_v60 = vld [vmem:[%s12992_s10 + $0x4e8] sm:$0xff] }
0x12f8   : > { %8629 = vmatpush2.msra.mxu0 %v8540_v61  ;;  %v8514_v61 = vld [vmem:[%s12992_s10 + $0x4e0] sm:$0xff] }
0x12f9   : > { %8630 = vmatprep.subr.mxu0 %v8534_v62  ;;  %v8508_v62 = vld [vmem:[%s12992_s10 + $0x4b0] sm:$0xff] }
0x12fa   : > { %8631 = vmatpush2.msra.mxu0 %v8533_v63  ;;  %v8507_v63 = vld [vmem:[%s12992_s10 + $0x4a8] sm:$0xff] }
0x12fb   : > { %8632 = vmatprep.subr.mxu0 %v8527_v0  ;;  %v8501_v0 = vld [vmem:[%s12992_s10 + $0x478] sm:$0xff] }
0x12fc   : > { %8633 = vmatpush2.msra.mxu0 %v8526_v1  ;;  %v8498_v1 = vld [vmem:[%s12992_s10 + $0x460] sm:$0xff] }
0x12fd   : > { %8634 = vmatprep.subr.mxu0 %v8520_v3  ;;  %v8500_v3 = vld [vmem:[%s12992_s10 + $0x470] sm:$0xff] }
0x12fe   : > { %8635 = vmatpush2.msra.mxu0 %v8519_v5  ;;  %v8492_v5 = vld [vmem:[%s12992_s10 + $0x430] sm:$0xff] }
0x12ff   : > { %8636 = vmatprep.subr.mxu0 %v8513_v6  ;;  %v8494_v6 = vld [vmem:[%s12992_s10 + $0x440] sm:$0xff] }
0x1300   : > { %8637 = vmatpush2.msra.mxu0 %v8512_v8  ;;  %v8491_v8 = vld [vmem:[%s12992_s10 + $0x428] sm:$0xff] }
0x1301   : > { %8638 = vmatprep.subr.mxu0 %v8506_v9  ;;  %v8493_v9 = vld [vmem:[%s12992_s10 + $0x438] sm:$0xff] }
0x1302   : > { %8639 = vmatpush2.msra.mxu0 %v8505_v10  ;;  %v8485_v10 = vld [vmem:[%s12992_s10 + $0x3f8] sm:$0xff] }
0x1303   : > { %8640 = vmatprep.subr.mxu0 %v8499_v12  ;;  %v8487_v12 = vld [vmem:[%s12992_s10 + $0x408] sm:$0xff] }
0x1304   : > { %8641 = vmatpush2.msra.mxu0 %v8498_v1  ;;  %v8397_v1 = vld [vmem:[%s12992_s10 + $0x138] sm:$0xff] }
0x1305   : > { %8642 = vmatprep.subr.mxu0 %v8492_v5  ;;  %v8391_v5 = vld [vmem:[%s12992_s10 + $0x108] sm:$0xff] }
0x1306   : > { %8643 = vmatpush2.msra.mxu0 %v8491_v8  ;;  %v8392_v8 = vld [vmem:[%s12992_s10 + $0x110] sm:$0xff] }
0x1307   : > { %8644 = vmatprep.subr.mxu0 %v8485_v10  ;;  %v8383_v10 = vld [vmem:[%s12992_s10 + $0xc8] sm:$0xff] }
0x138e   : > { %v8011_v30 = vpop.f32.mrf.mxu1 }
0x138f   : > { %v12441_v13 = vadd.f32 %v8011_v30, %v12240_v7  ;;  %v8458_v7 = vld [vmem:[%s12992_s10 + $0x320] sm:$0xff]  ;;  %v8484_v30 = vld [vmem:[%s12992_s10 + $0x3f0] sm:$0xff] }
0x1390   : > { %v8013_v14 = vpop.f32.mrf.mxu1  ;;  %8645 = vmatpush2.msra.mxu0 %v8484_v30  ;;  %v8377_v30 = vld [vmem:[%s12992_s10 + $0x98] sm:$0xff] }
0x1391   : > { %v12444_v16 = vadd.f32 %v8013_v14, %v12249_v11  ;;  %v8452_v11 = vld [vmem:[%s12992_s10 + $0x2f0] sm:$0xff]  ;;  %v8486_v14 = vld [vmem:[%s12992_s10 + $0x400] sm:$0xff] }
0x1392   : > { %v8255_v17 = vpop.f32.mrf.mxu1 }
0x1393   : > { %9619 = vmatmul.mubr.msk.f32.vlgmr.msra.gmra.mxu1 %vm1083_vm6, %v8255_v17  ;;  %v8480_v17 = vld [vmem:[%s12992_s10 + $0x3d0] sm:$0xff] }
0x1394   : > { %v10488_v20 = vpop.f32.mrf.mxu1  ;;  %8658 = vmatpush1.msra.mxu1 %v8465_v32  ;;  %v8478_v32 = vld [vmem:[%s12992_s10 + $0x3c0] sm:$0xff] }
0x1395   : > { %8659 = vmatprep.subr.mxu1 %v8459_v19  ;;  %8646 = vmatprep.subr.mxu0 %v8478_v32  ;;  %v8477_v19 = vld [vmem:[%s12992_s10 + $0x3b8] sm:$0xff]  ;;  %v8471_v20 = vld [vmem:[%s12992_s10 + $0x388] sm:$0xff]  ;;  %v8378_v32 = vld [vmem:[%s12992_s10 + $0xa0] sm:$0xff] }
0x1396   : > { %8660 = vmatpush1.msra.mxu1 %v8458_v7  ;;  %v8479_v7 = vld [vmem:[%s12992_s10 + $0x3c8] sm:$0xff]  ;;  %8647 = vmatpush2.msra.mxu0 %v8477_v19  ;;  %v8369_v19 = vld [vmem:[%s12992_s10 + $0x58] sm:$0xff] }
0x1397   : > { %8661 = vmatprep.subr.mxu1 %v8452_v11  ;;  %v8473_v11 = vld [vmem:[%s12992_s10 + $0x398] sm:$0xff]  ;;  %8648 = vmatprep.subr.mxu0 %v8471_v20  ;;  %v8363_v20 = vld [vmem:[%s12992_s10 + $0x28] sm:$0xff] }
0x1398   : > { %8662 = vmatpush1.msra.mxu1 %v8451_v21  ;;  %v8470_v21 = vld [vmem:[%s12992_s10 + $0x380] sm:$0xff] }
0x1399   : > { %8663 = vmatprep.subr.mxu1 %v8445_v22  ;;  %v8472_v22 = vld [vmem:[%s12992_s10 + $0x390] sm:$0xff]  ;;  %8649 = vmatpush2.msra.mxu0 %v8470_v21 }
0x139a   : > { %8664 = vmatpush1.msra.mxu1 %v8444_v23  ;;  %v8468_v23 = vld [vmem:[%s12992_s10 + $0x370] sm:$0xff] }
0x139b   : > { %8665 = vmatprep.subr.mxu1 %v8438_v24  ;;  %8728 = vmatprep.subr.mxu0 %v8468_v23  ;;  %v10558_v24 = vmov 4   ;;  %v8364_v21 = vld [vmem:[%s12992_s10 + $0x30] sm:$0xff]  ;;  %v8558_v23 = vld [vmem:[%s12992_s10 + $0x640] sm:$0x1] }
0x139c   : > { %8666 = vmatpush1.msra.mxu1 %v8437_v25  ;;  %10511 = vset.pattern.permute.xlu1 %v10558_v24  ;;  %v8177_v25 = vpop.f32.mrf.mxu0 }
0x139d   : > { %8667 = vmatprep.subr.mxu1 %v8431_v26  ;;  %10512 = vset.pattern.permute.xlu0 %v10558_v24  ;;  %v8560_v24 = vld [vmem:[%s12992_s10 + $0x650] sm:$0x1] }
0x139e   : > { %8668 = vmatpush1.msra.mxu1 %v8430_v28  ;;  %8927 = vperm.xlu1 %10511, %v12297_v27   ;;  %v8179_v26 = vpop.f32.mrf.mxu0  ;;  %v8182_v28 = vadd.f32 %v8177_v25, %v12441_v13  ;;  %v8467_v27 = vld [vmem:[%s12992_s10 + $0x368] sm:$0xff]  ;;  %v8469_v13 = vld [vmem:[%s12992_s10 + $0x378] sm:$0xff]  ;;  %v8552_v25 = vld [vmem:[%s12992_s10 + $0x610] sm:$0xff] }
0x139f   : > { %8669 = vmatprep.subr.mxu1 %v8424_v29 }
0x13a0   : > { %8670 = vmatpush1.msra.mxu1 %v8423_v31  ;;  %v8183_v31 = vadd.f32 %v8179_v26, %v12444_v16  ;;  %v8461_v16 = vld [vmem:[%s12992_s10 + $0x338] sm:$0xff]  ;;  %v8551_v26 = vld [vmem:[%s12992_s10 + $0x608] sm:$0xff] }
0x13a1   : > { %8671 = vmatprep.subr.mxu1 %v8417_v15 }
0x13a2   : > { %8672 = vmatpush1.msra.mxu1 %v8416_v18  ;;  %v8352_v18 = vpop.permute.xlu1 %8351 }
0x13a3   : > { %8673 = vmatprep.subr.mxu1 %v8410_v33 }
0x13a4   : > { %8674 = vmatpush1.msra.mxu1 %v8409_v34 }
0x13a5   : > { %8675 = vmatprep.subr.mxu1 %v8403_v35 }
0x13a6   : > { %8676 = vmatpush1.msra.mxu1 %v8402_v36 }
0x13a7   : > { %8677 = vmatprep.subr.mxu1 %v8396_v37 }
0x13a8   : > { %8678 = vmatpush1.msra.mxu1 %v8395_v38 }
0x13a9   : > { %8679 = vmatprep.subr.mxu1 %v8389_v39  ;;  %v8460_v39 = vld [vmem:[%s12992_s10 + $0x330] sm:$0xff] }
0x13aa   : > { %8680 = vmatpush1.msra.mxu1 %v8388_v40  ;;  %v8462_v40 = vld [vmem:[%s12992_s10 + $0x340] sm:$0xff] }
0x13ab   : > { %8681 = vmatprep.subr.mxu1 %v8382_v41  ;;  %v8454_v41 = vld [vmem:[%s12992_s10 + $0x300] sm:$0xff] }
0x13ac   : > { %8682 = vmatpush1.msra.mxu1 %v8381_v42  ;;  %v8453_v42 = vld [vmem:[%s12992_s10 + $0x2f8] sm:$0xff] }
0x13ad   : > { %8683 = vmatprep.subr.mxu1 %v8375_v43  ;;  %v8455_v43 = vld [vmem:[%s12992_s10 + $0x308] sm:$0xff] }
0x13ae   : > { %8684 = vmatpush1.msra.mxu1 %v8374_v44  ;;  %v8447_v44 = vld [vmem:[%s12992_s10 + $0x2c8] sm:$0xff] }
0x13af   : > { %8685 = vmatprep.subr.mxu1 %v8368_v2  ;;  %v8446_v2 = vld [vmem:[%s12992_s10 + $0x2c0] sm:$0xff] }
0x13b0   : > { %8686 = vmatpush1.msra.mxu1 %v8367_v45  ;;  %v8448_v45 = vld [vmem:[%s12992_s10 + $0x2d0] sm:$0xff] }
0x13b1   : > { %8687 = vmatprep.subr.mxu1 %v8361_v46  ;;  %v8440_v46 = vld [vmem:[%s12992_s10 + $0x290] sm:$0xff] }
0x13b2   : > { %8688 = vmatpush1.msra.mxu1 %v8360_v47  ;;  %v8439_v47 = vld [vmem:[%s12992_s10 + $0x288] sm:$0xff] }
0x13b3   : > { %9623 = vmatprep.subr.msk.mxu1 %vm462_vm2, %v8557_v48  ;;  %v8441_v48 = vld [vmem:[%s12992_s10 + $0x298] sm:$0xff] }
0x13b4   : > { %9624 = vmatpush2.msk.msra.mxu1 %vm462_vm2, %v8556_v49  ;;  %v8433_v49 = vld [vmem:[%s12992_s10 + $0x258] sm:$0xff] }
0x13b5   : > { %8697 = vmatprep.subr.mxu1 %v8550_v50  ;;  %v8432_v50 = vld [vmem:[%s12992_s10 + $0x250] sm:$0xff] }
0x13b6   : > { %8698 = vmatpush2.msra.mxu1 %v8549_v51  ;;  %v8434_v51 = vld [vmem:[%s12992_s10 + $0x260] sm:$0xff] }
0x13b7   : > { %8699 = vmatprep.subr.mxu1 %v8543_v52  ;;  %v8426_v52 = vld [vmem:[%s12992_s10 + $0x220] sm:$0xff] }
0x13b8   : > { %8700 = vmatpush2.msra.mxu1 %v8542_v53  ;;  %v8425_v53 = vld [vmem:[%s12992_s10 + $0x218] sm:$0xff] }
0x13b9   : > { %8701 = vmatprep.subr.mxu1 %v8536_v54  ;;  %v8427_v54 = vld [vmem:[%s12992_s10 + $0x228] sm:$0xff] }
0x13ba   : > { %8702 = vmatpush2.msra.mxu1 %v8535_v55  ;;  %v8419_v55 = vld [vmem:[%s12992_s10 + $0x1e8] sm:$0xff] }
0x13bb   : > { %8703 = vmatprep.subr.mxu1 %v8529_v56  ;;  %v8418_v56 = vld [vmem:[%s12992_s10 + $0x1e0] sm:$0xff] }
0x13bc   : > { %8704 = vmatpush2.msra.mxu1 %v8528_v57  ;;  %v8420_v57 = vld [vmem:[%s12992_s10 + $0x1f0] sm:$0xff] }
0x13bd   : > { %8705 = vmatprep.subr.mxu1 %v8522_v58  ;;  %v8412_v58 = vld [vmem:[%s12992_s10 + $0x1b0] sm:$0xff] }
0x13be   : > { %8706 = vmatpush2.msra.mxu1 %v8521_v59  ;;  %v8411_v59 = vld [vmem:[%s12992_s10 + $0x1a8] sm:$0xff] }
0x13bf   : > { %8707 = vmatprep.subr.mxu1 %v8515_v60  ;;  %v8413_v60 = vld [vmem:[%s12992_s10 + $0x1b8] sm:$0xff] }
0x13c0   : > { %8708 = vmatpush2.msra.mxu1 %v8514_v61  ;;  %v8405_v61 = vld [vmem:[%s12992_s10 + $0x178] sm:$0xff] }
0x13c1   : > { %8709 = vmatprep.subr.mxu1 %v8508_v62  ;;  %v8404_v62 = vld [vmem:[%s12992_s10 + $0x170] sm:$0xff] }
0x13c2   : > { %8710 = vmatpush2.msra.mxu1 %v8507_v63  ;;  %v8406_v63 = vld [vmem:[%s12992_s10 + $0x180] sm:$0xff] }
0x13c3   : > { %8711 = vmatprep.subr.mxu1 %v8501_v0  ;;  %v8398_v0 = vld [vmem:[%s12992_s10 + $0x140] sm:$0xff] }
0x13c4   : > { %8712 = vmatpush2.msra.mxu1 %v8500_v3  ;;  %v8399_v3 = vld [vmem:[%s12992_s10 + $0x148] sm:$0xff] }
0x13c5   : > { %8713 = vmatprep.subr.mxu1 %v8494_v6  ;;  %v8390_v6 = vld [vmem:[%s12992_s10 + $0x100] sm:$0xff] }
0x13c6   : > { %8714 = vmatpush2.msra.mxu1 %v8493_v9  ;;  %v8384_v9 = vld [vmem:[%s12992_s10 + $0xd0] sm:$0xff] }
0x13c7   : > { %8715 = vmatprep.subr.mxu1 %v8487_v12  ;;  %v8385_v12 = vld [vmem:[%s12992_s10 + $0xd8] sm:$0xff] }
0x13c8   : > { %8716 = vmatpush2.msra.mxu1 %v8486_v14  ;;  %v8376_v14 = vld [vmem:[%s12992_s10 + $0x90] sm:$0xff] }
0x13c9   : > { %8717 = vmatprep.subr.mxu1 %v8480_v17  ;;  %v8370_v17 = vld [vmem:[%s12992_s10 + $0x60] sm:$0xff] }
0x13ca   : > { %8718 = vmatpush2.msra.mxu1 %v8479_v7  ;;  %v8371_v7 = vld [vmem:[%s12992_s10 + $0x68] sm:$0xff] }
0x13cb   : > { %8719 = vmatprep.subr.mxu1 %v8473_v11  ;;  %v8362_v11 = vld [vmem:[%s12992_s10 + $0x20] sm:$0xff] }
0x13cc   : > { %8720 = vmatpush2.msra.mxu1 %v8472_v22  ;;  %v8559_v22 = vld [vmem:[%s12992_s10 + $0x648] sm:$0x1] }
0x13cd   : > { %8799 = vmatprep.subr.mxu1 %v10553_v4 }
0x1453   : > { %v8343_v29 = vpop.f32.mrf.mxu1 }
0x1454   : > { %v8348_v15 = vadd.f32 %v8343_v29, %v8182_v28  ;;  %v8553_v28 = vld [vmem:[%s12992_s10 + $0x618] sm:$0xff] }
0x1455   : > { %v8345_v33 = vpop.f32.mrf.mxu1  ;;  %v8545_v29 = vld [vmem:[%s12992_s10 + $0x5d8] sm:$0xff] }
0x1456   : > { %v8349_v34 = vadd.f32 %v8345_v33, %v8183_v31  ;;  %v8354_v35 = vadd.f32 %v8352_v18, %v8348_v15  ;;  %v8544_v31 = vld [vmem:[%s12992_s10 + $0x5d0] sm:$0xff]  ;;  %v8546_v15 = vld [vmem:[%s12992_s10 + $0x5e0] sm:$0xff]  ;;  %v8537_v33 = vld [vmem:[%s12992_s10 + $0x598] sm:$0xff] }
0x1458   : > { %v8355_v36 = vadd.f32 %v8352_v18, %v8349_v34  ;;  %v12654_v38 = vmax.f32 %v8354_v35, 0.0  ;;  %v8538_v18 = vld [vmem:[%s12992_s10 + $0x5a0] sm:$0xff]  ;;  %v8539_v34 = vld [vmem:[%s12992_s10 + $0x5a8] sm:$0xff] }
0x1459   : > { %v8531_v35 = vld [vmem:[%s12992_s10 + $0x568] sm:$0xff] }
0x145a   : > { %v8357_v37 = vmax.f32 %v8355_v36, 0.0  ;;  %v8530_v36 = vld [vmem:[%s12992_s10 + $0x560] sm:$0xff] }
0x145c   : > { %9622 = vmatprep.mubr.msk.f32.mxu0 %vm8561_vm9, %v8357_v37  ;;  %9625 = vmatprep.mubr.msk.f32.mxu1 %vm8561_vm9, %v8357_v37 }
0x145d   : > { %8651 = vmatmul.mubr.f32.vlgmr.msra.gmra.mxu0 %v12654_v38  ;;  %8722 = vmatmul.mubr.f32.vlgmr.msra.gmra.mxu1 %v12654_v38 }
0x145e   : > { %8729 = vmatpush1.msra.mxu0 %v8467_v27  ;;  %8800 = vmatpush1.msra.mxu1 %v8469_v13  ;;  %v8524_v27 = vld [vmem:[%s12992_s10 + $0x530] sm:$0xff]  ;;  %v8523_v13 = vld [vmem:[%s12992_s10 + $0x528] sm:$0xff] }
0x145f   : > { %8730 = vmatprep.subr.mxu0 %v8461_v16  ;;  %9628 = vmatprep.mubr.msk.f32.mxu0 %vm8561_vm9, %v8357_v37  ;;  %v8525_v16 = vld [vmem:[%s12992_s10 + $0x538] sm:$0xff] }
0x1460   : > { %8801 = vmatprep.subr.mxu1 %v10553_v4  ;;  %9630 = vmatprep.mubr.msk.f32.mxu1 %vm8561_vm9, %v8357_v37  ;;  %v8532_v37 = vld [vmem:[%s12992_s10 + $0x570] sm:$0xff] }
0x1461   : > { %8731 = vmatpush1.msra.mxu0 %v8460_v39  ;;  %8802 = vmatpush1.msra.mxu1 %v8462_v40  ;;  %v8517_v39 = vld [vmem:[%s12992_s10 + $0x4f8] sm:$0xff]  ;;  %v8516_v40 = vld [vmem:[%s12992_s10 + $0x4f0] sm:$0xff] }
0x1462   : > { %8732 = vmatprep.subr.mxu0 %v8454_v41  ;;  %8803 = vmatprep.subr.mxu1 %v10553_v4  ;;  %v8518_v41 = vld [vmem:[%s12992_s10 + $0x500] sm:$0xff] }
0x1463   : > { %8733 = vmatpush1.msra.mxu0 %v8453_v42  ;;  %8804 = vmatpush1.msra.mxu1 %v8455_v43  ;;  %v8510_v42 = vld [vmem:[%s12992_s10 + $0x4c0] sm:$0xff]  ;;  %v8509_v43 = vld [vmem:[%s12992_s10 + $0x4b8] sm:$0xff] }
0x1464   : > { %8734 = vmatprep.subr.mxu0 %v8447_v44  ;;  %8805 = vmatprep.subr.mxu1 %v10553_v4  ;;  %v8511_v44 = vld [vmem:[%s12992_s10 + $0x4c8] sm:$0xff] }
0x1465   : > { %8735 = vmatpush1.msra.mxu0 %v8446_v2  ;;  %8806 = vmatpush1.msra.mxu1 %v8448_v45  ;;  %v8503_v2 = vld [vmem:[%s12992_s10 + $0x488] sm:$0xff]  ;;  %v8502_v45 = vld [vmem:[%s12992_s10 + $0x480] sm:$0xff] }
0x1466   : > { %8736 = vmatprep.subr.mxu0 %v8440_v46  ;;  %8807 = vmatprep.subr.mxu1 %v10553_v4  ;;  %v8504_v46 = vld [vmem:[%s12992_s10 + $0x490] sm:$0xff] }
0x1467   : > { %8737 = vmatpush1.msra.mxu0 %v8439_v47  ;;  %8808 = vmatpush1.msra.mxu1 %v8441_v48  ;;  %v8496_v47 = vld [vmem:[%s12992_s10 + $0x450] sm:$0xff]  ;;  %v8495_v48 = vld [vmem:[%s12992_s10 + $0x448] sm:$0xff] }
0x1468   : > { %8738 = vmatprep.subr.mxu0 %v8433_v49  ;;  %8809 = vmatprep.subr.mxu1 %v10553_v4  ;;  %v8497_v49 = vld [vmem:[%s12992_s10 + $0x458] sm:$0xff] }
0x1469   : > { %8739 = vmatpush1.msra.mxu0 %v8432_v50  ;;  %8810 = vmatpush1.msra.mxu1 %v8434_v51  ;;  %v8489_v50 = vld [vmem:[%s12992_s10 + $0x418] sm:$0xff]  ;;  %v8488_v51 = vld [vmem:[%s12992_s10 + $0x410] sm:$0xff] }
0x146a   : > { %8740 = vmatprep.subr.mxu0 %v8426_v52  ;;  %8811 = vmatprep.subr.mxu1 %v10553_v4  ;;  %v8490_v52 = vld [vmem:[%s12992_s10 + $0x420] sm:$0xff] }
0x146b   : > { %8741 = vmatpush1.msra.mxu0 %v8425_v53  ;;  %8812 = vmatpush1.msra.mxu1 %v8427_v54  ;;  %v8482_v53 = vld [vmem:[%s12992_s10 + $0x3e0] sm:$0xff]  ;;  %v8481_v54 = vld [vmem:[%s12992_s10 + $0x3d8] sm:$0xff] }
0x146c   : > { %8742 = vmatprep.subr.mxu0 %v8419_v55  ;;  %8813 = vmatprep.subr.mxu1 %v10553_v4  ;;  %v8483_v55 = vld [vmem:[%s12992_s10 + $0x3e8] sm:$0xff] }
0x146d   : > { %8743 = vmatpush1.msra.mxu0 %v8418_v56  ;;  %8814 = vmatpush1.msra.mxu1 %v8420_v57  ;;  %v8475_v56 = vld [vmem:[%s12992_s10 + $0x3a8] sm:$0xff]  ;;  %v8474_v57 = vld [vmem:[%s12992_s10 + $0x3a0] sm:$0xff] }
0x146e   : > { %8744 = vmatprep.subr.mxu0 %v8412_v58  ;;  %8815 = vmatprep.subr.mxu1 %v10553_v4  ;;  %v8476_v58 = vld [vmem:[%s12992_s10 + $0x3b0] sm:$0xff] }
0x146f   : > { %8745 = vmatpush1.msra.mxu0 %v8411_v59  ;;  %8816 = vmatpush1.msra.mxu1 %v8413_v60 }
0x1470   : > { %8746 = vmatprep.subr.mxu0 %v8405_v61  ;;  %8817 = vmatprep.subr.mxu1 %v10553_v4 }
0x1471   : > { %8747 = vmatpush1.msra.mxu0 %v8404_v62  ;;  %8818 = vmatpush1.msra.mxu1 %v8406_v63  ;;  %v8870_v62 = vld [vmem:[%s12993_s11 + $0x8] sm:$0xff] }
0x1472   : > { %8748 = vmatprep.subr.mxu0 %v8398_v0  ;;  %8819 = vmatprep.subr.mxu1 %v10553_v4  ;;  %v8872_v0 = vld [vmem:[%s12993_s11 + $0x18] sm:$0xff] }
0x1473   : > { %8749 = vmatpush1.msra.mxu0 %v8397_v1  ;;  %8820 = vmatpush1.msra.mxu1 %v8399_v3 }
0x1474   : > { %8750 = vmatprep.subr.mxu0 %v8391_v5  ;;  %8821 = vmatprep.subr.mxu1 %v10553_v4 }
0x1475   : > { %8751 = vmatpush1.msra.mxu0 %v8390_v6  ;;  %8822 = vmatpush1.msra.mxu1 %v8392_v8 }
0x1476   : > { %8752 = vmatprep.subr.mxu0 %v8384_v9  ;;  %8823 = vmatprep.subr.mxu1 %v10553_v4 }
0x1477   : > { %8753 = vmatpush1.msra.mxu0 %v8383_v10  ;;  %8824 = vmatpush1.msra.mxu1 %v8385_v12 }
0x1478   : > { %8754 = vmatprep.subr.mxu0 %v8377_v30  ;;  %8825 = vmatprep.subr.mxu1 %v10553_v4 }
0x1479   : > { %8755 = vmatpush1.msra.mxu0 %v8376_v14  ;;  %8826 = vmatpush1.msra.mxu1 %v8378_v32 }
0x147a   : > { %8756 = vmatprep.subr.mxu0 %v8370_v17  ;;  %8827 = vmatprep.subr.mxu1 %v10553_v4 }
0x147b   : > { %8757 = vmatpush1.msra.mxu0 %v8369_v19  ;;  %8828 = vmatpush1.msra.mxu1 %v8371_v7 }
0x147c   : > { %8758 = vmatprep.subr.mxu0 %v8363_v20  ;;  %8829 = vmatprep.subr.mxu1 %v10553_v4 }
0x147d   : > { %8759 = vmatpush1.msra.mxu0 %v8362_v11  ;;  %8830 = vmatpush1.msra.mxu1 %v8364_v21 }
0x147e   : > { %9626 = vmatprep.subr.msk.mxu0 %vm462_vm2, %v8559_v22  ;;  %8837 = vmatprep.subr.mxu1 %v10553_v4 }
0x147f   : > { %9627 = vmatpush2.msk.msra.mxu0 %vm462_vm2, %v8558_v23  ;;  %9629 = vmatpush2.msk.msra.mxu1 %vm462_vm2, %v8560_v24 }
0x1480   : > { %8768 = vmatprep.subr.mxu0 %v8552_v25  ;;  %8839 = vmatprep.subr.mxu1 %v10553_v4 }
0x1481   : > { %8769 = vmatpush2.msra.mxu0 %v8551_v26  ;;  %8840 = vmatpush2.msra.mxu1 %v8553_v28 }
0x1482   : > { %8770 = vmatprep.subr.mxu0 %v8545_v29  ;;  %8841 = vmatprep.subr.mxu1 %v10553_v4 }
0x1483   : > { %8771 = vmatpush2.msra.mxu0 %v8544_v31  ;;  %8842 = vmatpush2.msra.mxu1 %v8546_v15 }
0x1484   : > { %8772 = vmatprep.subr.mxu0 %v8538_v18  ;;  %8843 = vmatprep.subr.mxu1 %v10553_v4 }
0x1485   : > { %8773 = vmatpush2.msra.mxu0 %v8537_v33  ;;  %8844 = vmatpush2.msra.mxu1 %v8539_v34  ;;  %v8928_v34 = vpop.permute.xlu1 %8927 }
0x1486   : > { %8774 = vmatprep.subr.mxu0 %v8531_v35  ;;  %8845 = vmatprep.subr.mxu1 %v10553_v4 }
0x1487   : > { %8775 = vmatpush2.msra.mxu0 %v8530_v36  ;;  %8846 = vmatpush2.msra.mxu1 %v8532_v37  ;;  %v8873_v36 = vld [vmem:[%s12993_s11 + $0x20] sm:$0xff]  ;;  %v8875_v37 = vld [vmem:[%s12993_s11 + $0x30] sm:$0xff] }
0x1488   : > { %8776 = vmatprep.subr.mxu0 %v8524_v27  ;;  %8847 = vmatprep.subr.mxu1 %v10553_v4 }
0x1489   : > { %8777 = vmatpush2.msra.mxu0 %v8523_v13  ;;  %8848 = vmatpush2.msra.mxu1 %v8525_v16 }
0x148a   : > { %8778 = vmatprep.subr.mxu0 %v8517_v39  ;;  %8849 = vmatprep.subr.mxu1 %v10553_v4 }
0x148b   : > { %8779 = vmatpush2.msra.mxu0 %v8516_v40  ;;  %8850 = vmatpush2.msra.mxu1 %v8518_v41  ;;  %v8874_v40 = vld [vmem:[%s12993_s11 + $0x28] sm:$0xff] }
0x148c   : > { %8780 = vmatprep.subr.mxu0 %v8510_v42  ;;  %8851 = vmatprep.subr.mxu1 %v10553_v4 }
0x148d   : > { %8781 = vmatpush2.msra.mxu0 %v8509_v43  ;;  %8852 = vmatpush2.msra.mxu1 %v8511_v44 }
0x148e   : > { %8782 = vmatprep.subr.mxu0 %v8503_v2  ;;  %8853 = vmatprep.subr.mxu1 %v10553_v4 }
0x148f   : > { %8783 = vmatpush2.msra.mxu0 %v8502_v45  ;;  %8854 = vmatpush2.msra.mxu1 %v8504_v46 }
0x1490   : > { %8784 = vmatprep.subr.mxu0 %v8496_v47  ;;  %8855 = vmatprep.subr.mxu1 %v10553_v4 }
0x1491   : > { %8785 = vmatpush2.msra.mxu0 %v8495_v48  ;;  %8856 = vmatpush2.msra.mxu1 %v8497_v49 }
0x1492   : > { %8786 = vmatprep.subr.mxu0 %v8489_v50  ;;  %8857 = vmatprep.subr.mxu1 %v10553_v4 }
0x1493   : > { %8787 = vmatpush2.msra.mxu0 %v8488_v51  ;;  %8858 = vmatpush2.msra.mxu1 %v8490_v52 }
0x1494   : > { %8788 = vmatprep.subr.mxu0 %v8482_v53  ;;  %8859 = vmatprep.subr.mxu1 %v10553_v4 }
0x1495   : > { %8789 = vmatpush2.msra.mxu0 %v8481_v54  ;;  %8860 = vmatpush2.msra.mxu1 %v8483_v55 }
0x1496   : > { %8790 = vmatprep.subr.mxu0 %v8475_v56  ;;  %8861 = vmatprep.subr.mxu1 %v10553_v4  ;;  %v8869_v4 = vld [vmem:[%s12993_s11] sm:$0xff] }
0x1497   : > { %8791 = vmatpush2.msra.mxu0 %v8474_v57  ;;  %8862 = vmatpush2.msra.mxu1 %v8476_v58 }
0x1498   : > { %8793 = vmatmul.mubr.f32.vlgmr.msra.gmra.mxu0 %v12654_v38  ;;  %8864 = vmatmul.mubr.f32.vlgmr.msra.gmra.mxu1 %v12654_v38  ;;  %v8871_v38 = vld [vmem:[%s12993_s11 + $0x10] sm:$0xff] }
0x151d   : > { %v8652_v59 = vpop.f32.mrf.mxu0  ;;  %v8723_v60 = vpop.f32.mrf.mxu1 }
0x151e   : > { %v8876_v5 = vmul.f32 %v8869_v4, %v8652_v59  ;;  %v8878_v6 = vmul.f32 %v8871_v38, %v8723_v60 }
0x151f   : > { %v8654_v61 = vpop.f32.mrf.mxu0  ;;  %v8725_v63 = vpop.f32.mrf.mxu1 }
0x1520   : > { %v8877_v1 = vmul.f32 %v8870_v62, %v8654_v61  ;;  %v8879_v3 = vmul.f32 %v8872_v0, %v8725_v63  ;;  %v8883_v10 = vrot.slane %v8876_v5, 4  ;;  %v8895_v12 = vrot.slane %v8878_v6, 4 }
0x1522   : > { %v8889_v8 = vrot.slane %v8877_v1, 4  ;;  %v8901_v9 = vrot.slane %v8879_v3, 4  ;;  %v8884_v32 = vadd.f32 %v8883_v10, %v8876_v5  ;;  %v8896_v17 = vadd.f32 %v8895_v12, %v8878_v6 }
0x1524   : > { %v8890_v30 = vadd.f32 %v8889_v8, %v8877_v1  ;;  %v8902_v14 = vadd.f32 %v8901_v9, %v8879_v3  ;;  %v8885_v20 = vrot.slane %v8884_v32, 2  ;;  %v8897_v11 = vrot.slane %v8896_v17, 2 }
0x1526   : > { %v8891_v19 = vrot.slane %v8890_v30, 2  ;;  %v8903_v7 = vrot.slane %v8902_v14, 2  ;;  %v8886_v23 = vadd.f32 %v8885_v20, %v8884_v32  ;;  %v8898_v24 = vadd.f32 %v8897_v11, %v8896_v17 }
0x1528   : > { %v8892_v21 = vadd.f32 %v8891_v19, %v8890_v30  ;;  %v8904_v22 = vadd.f32 %v8903_v7, %v8902_v14  ;;  %v8887_v28 = vrot.slane %v8886_v23, 1  ;;  %v8899_v29 = vrot.slane %v8898_v24, 1 }
0x152a   : > { %v8893_v25 = vrot.slane %v8892_v21, 1  ;;  %v8905_v26 = vrot.slane %v8904_v22, 1  ;;  %v8888_v18 = vadd.f32 %v8887_v28, %v8886_v23  ;;  %v8900_v33 = vadd.f32 %v8899_v29, %v8898_v24 }
0x152c   : > { %v8894_v31 = vadd.f32 %v8893_v25, %v8892_v21  ;;  %v8906_v15 = vadd.f32 %v8905_v26, %v8904_v22  ;;  %v8930_v13 = vadd.f32 %v8928_v34, %v8888_v18  ;;  %v8932_v41 = vadd.f32 %v8928_v34, %v8900_v33 }
0x152e   : > { %v8931_v35 = vadd.f32 %v8928_v34, %v8894_v31  ;;  %v8933_v27 = vadd.f32 %v8928_v34, %v8906_v15  ;;  %v8937_v50 = vsub.f32 0.0, %v8930_v13  ;;  %v8939_v52 = vsub.f32 0.0, %v8932_v41 }
0x1530   : > { %v8938_v44 = vsub.f32 0.0, %v8931_v35  ;;  %v8940_v46 = vsub.f32 0.0, %v8933_v27  ;;  %v8944_v60 = vmul.f32 1.442695, %v8937_v50  ;;  %v8948_v62 = vmul.f32 1.442695, %v8939_v52 }
0x1531   : > { %v10559_v35 = vmov 1966171168  }
0x1532   : > { %v8946_v55 = vmul.f32 1.442695, %v8938_v44  ;;  %v8950_v57 = vmul.f32 1.442695, %v8940_v46 }
0x1534   : > { %10513 = vpow2.f32 %v8946_v55 }
0x1535   : > { %10515 = vpow2.f32 %v8950_v57 }
0x1536   : > { %10517 = vpow2.f32 %v8944_v60 }
0x1537   : > { %10519 = vpow2.f32 %v8948_v62 }
0x1541   : > { %v10514_v11 = vpop.eup %10513 }
0x1542   : > { %v10516_v21 = vpop.eup %10515  ;;  %v8959_v24 = vadd.f32 1.0, %v10514_v11 }
0x1543   : > { %v10518_v22 = vpop.eup %10517  ;;  %v8961_v25 = vadd.f32 1.0, %v10516_v21 }
0x1544   : > { %v10520_v23 = vpop.eup %10519  ;;  %v8958_v26 = vadd.f32 1.0, %v10518_v22 }
0x1545   : > { %v8960_v28 = vadd.f32 1.0, %v10520_v23 }
0x1558   : > { %v8794_v16 = vpop.f32.mrf.mxu0  ;;  %v8865_v39 = vpop.f32.mrf.mxu1 }
0x1559   : > { %v8880_v42 = vmul.f32 %v8873_v36, %v8794_v16  ;;  %v8882_v43 = vmul.f32 %v8875_v37, %v8865_v39  ;;  %v8990_v36 = vunpack.c.l.s4 %v10559_v35  ;;  %v8992_v37 = vlaneseq }
0x155a   : > { %v8796_v2 = vpop.f32.mrf.mxu0  ;;  %v8867_v45 = vpop.f32.mrf.mxu1 }
0x155b   : > { %v8907_v47 = vrot.slane %v8880_v42, 4  ;;  %v8919_v48 = vsel %vm925_vm5, %v8882_v43, 0.0  ;;  %v8881_v49 = vmul.f32 %v8874_v40, %v8796_v2  ;;  %v8991_v13 = vunpack.c.0.s8 %v8990_v36 }
0x155c   : > { %v8920_v51 = vrot.slane %v8919_v48, 4  ;;  %v8993_v16 = vshrl.u32 %v8992_v37, 7  ;;  %vm9037_vm10 = vcmp.lt.s32.totalorder %v8992_v37, 784 }
0x155d   : > { %v8908_v53 = vadd.f32 %v8907_v47, %v8880_v42  ;;  %v8913_v54 = vrot.slane %v8881_v49, 4 }
0x155e   : > { %v8921_v56 = vadd.f32 %v8920_v51, %v8919_v48  ;;  %v8994_v42 = vsub.s32 %v8991_v13, %v8993_v16 }
0x155f   : > { %v8909_v58 = vrot.slane %v8908_v53, 2  ;;  %v8914_v59 = vadd.f32 %v8913_v54, %v8881_v49 }
0x1560   : > { %v8922_v61 = vrot.slane %v8921_v56, 2 }
0x1561   : > { %v8910_v63 = vadd.f32 %v8909_v58, %v8908_v53  ;;  %v8915_v0 = vrot.slane %v8914_v59, 2 }
0x1562   : > { %v8923_v4 = vadd.f32 %v8922_v61, %v8921_v56 }
0x1563   : > { %v8911_v38 = vrot.slane %v8910_v63, 1  ;;  %v8916_v1 = vadd.f32 %v8915_v0, %v8914_v59 }
0x1564   : > { %v8924_v3 = vrot.slane %v8923_v4, 1 }
0x1565   : > { %v8912_v5 = vadd.f32 %v8911_v38, %v8910_v63  ;;  %v8917_v6 = vrot.slane %v8916_v1, 1 }
0x1566   : > { %v8925_v8 = vadd.f32 %v8924_v3, %v8923_v4 }
0x1567   : > { %v8934_v9 = vadd.f32 %v8928_v34, %v8912_v5  ;;  %v8918_v10 = vadd.f32 %v8917_v6, %v8916_v1 }
0x1568   : > { %v8936_v12 = vadd.f32 %v8928_v34, %v8925_v8 }
0x1569   : > { %v8941_v30 = vsub.f32 0.0, %v8934_v9  ;;  %v8935_v14 = vadd.f32 %v8928_v34, %v8918_v10 }
0x156a   : > { %v8943_v32 = vsub.f32 0.0, %v8936_v12 }
0x156b   : > { %v8952_v17 = vmul.f32 1.442695, %v8941_v30  ;;  %v8942_v19 = vsub.f32 0.0, %v8935_v14 }
0x156c   : > { %v8956_v7 = vmul.f32 1.442695, %v8943_v32 }
0x156d   : > { %10521 = vpow2.f32 %v8952_v17  ;;  %v8954_v20 = vmul.f32 1.442695, %v8942_v19 }
0x156e   : > { %10523 = vpow2.f32 %v8956_v7 }
0x156f   : > { %10525 = vpow2.f32 %v8954_v20 }
0x1570   : > { %10527 = vrcp.f32 %v8959_v24 }
0x1571   : > { %10529 = vrcp.f32 %v8961_v25 }
0x1572   : > { %10531 = vrcp.f32 %v8958_v26 }
0x1573   : > { %10533 = vrcp.f32 %v8960_v28 }
0x157a   : > { %v10522_v29 = vpop.eup %10521 }
0x157b   : > { %v10524_v31 = vpop.eup %10523  ;;  %v8962_v15 = vadd.f32 1.0, %v10522_v29 }
0x157c   : > { %v10526_v18 = vpop.eup %10525  ;;  %v8964_v33 = vadd.f32 1.0, %v10524_v31 }
0x157d   : > { %10535 = vrcp.f32 %v8962_v15  ;;  %v8963_v34 = vadd.f32 1.0, %v10526_v18  ;;  %v10528_v27 = vpop.eup %10527 }
0x157e   : > { %10537 = vrcp.f32 %v8964_v33  ;;  %v10530_v39 = vpop.eup %10529 }
0x157f   : > { %10539 = vrcp.f32 %v8963_v34  ;;  %v10532_v40 = vpop.eup %10531 }
0x1580   : > { %v10534_v41 = vpop.eup %10533  ;;  %v8986_v43 = vcombine.low %v10532_v40, %v10528_v27 }
0x1581   : > { %v8987_v44 = vcombine.low %v10534_v41, %v10530_v39 }
0x1582   : > { %v8995_v46 = vrot.slane %v8986_v43, %v8994_v42 }
0x1583   : > { %v9002_v47 = vrot.slane %v8987_v44, %v8994_v42 }
0x1585   : > { %v9017_v50 = vcombine.low %v8995_v46, %v9002_v47 }
0x1587   : > { %v9025_v54 = vrot.slane %v9017_v50, %v8994_v42 }
0x158a   : > { %v10536_v2 = vpop.eup %10535 }
0x158b   : > { %v10538_v45 = vpop.eup %10537 }
0x158c   : > { %v10540_v48 = vpop.eup %10539  ;;  %v9016_v51 = vrot.slane %v10538_v45, %v8994_v42 }
0x158d   : > { %v8988_v49 = vcombine.low %v10536_v2, %v10540_v48 }
0x158f   : > { %v9009_v52 = vrot.slane %v8988_v49, %v8994_v42 }
0x1591   : > { %v9018_v53 = vcombine.low %v9009_v52, %v9016_v51 }
0x1593   : > { %v9032_v55 = vrot.slane %v9018_v53, %v8994_v42 }
0x1595   : > { %v9033_v56 = vcombine.low %v9025_v54, %v9032_v55 }
0x1597   : > { %9039 = vst.msk [vmem:[%s438_s27] sm:$0x7f] %vm9037_vm10, %v9033_v56 }
0x1598 PF: > { %s23_s25 = sadd.s32 1, %s10550_s25  }
0x1599   : > { %p20_p4 = scmp.ge.s32.totalorder %s23_s25, 4  }
0x159b   :  { %22 = sbr.rel (!%p20_p4) target bundleno = 1 (0x1), region = 188 }

</bundles_post_ra>
